<compile_context>
chip_gen: v7x
topology: tpu7x:2x2x1
jax: 0.10.0
libtpu: 0.0.40
codegen_flags: <defaults>
</compile_context>

<pallas_src>
import jax
import jax.numpy as jnp
from jax.experimental import pallas as pl
from jax.experimental.pallas import tpu as pltpu

# --------------------------- model dimensions ---------------------------
NTH = 1
F_IN = 32 * 7                      # 224  LSTM input features
F_IN_PAD = 256                     # lane-padded
H = 128                            # LSTM hidden
X_DIM = 32 * (9 + NTH) + 16        # 336  side-input features
X_DIM_PAD = 384                    # lane-padded
D = 512                            # MLP width
P_OUT = 32
V_OUT = 1
PV_OUT = P_OUT + V_OUT             # 33 (fused p/v head)
PV_PAD = 128                       # lane-padded fused head
EPS = 1e-5
INV_D = 1.0 / D
BF16 = jnp.bfloat16


# --------------------------- fused forward kernel ---------------------------
def fused_kernel(z_ref, x_ref,
                 wih_ref, whh_ref, bl_ref,
                 w1h_ref, w1x_ref, b1_ref, g1_ref, be1_ref,
                 w2_hbm, b2_ref, g2_ref, be2_ref,
                 w3_hbm, b3_ref, g3_ref, be3_ref,
                 w4_hbm, b4_ref, g4_ref, be4_ref,
                 wpv_hbm, bpv_ref,
                 out_ref,
                 w2_vmem, w3_vmem, w4_vmem, wpv_vmem, sem):
    B = x_ref.shape[0]
    T = z_ref.shape[0] // B

    # ---- kick off MLP-weight DMAs; not needed until after the recurrence ----
    cp2 = pltpu.make_async_copy(w2_hbm, w2_vmem, sem.at[0]); cp2.start()
    cp3 = pltpu.make_async_copy(w3_hbm, w3_vmem, sem.at[1]); cp3.start()
    cp4 = pltpu.make_async_copy(w4_hbm, w4_vmem, sem.at[2]); cp4.start()
    cpp = pltpu.make_async_copy(wpv_hbm, wpv_vmem, sem.at[3]); cpp.start()

    # ---- LSTM ----
    # Hoisted input projection: one (T*B, F_IN_PAD) x (F_IN_PAD, 4H) bf16
    # MXU matmul with f32 accumulation, bias (b_ih + b_hh) folded in once.
    zproj = (jnp.dot(z_ref[...].astype(BF16), wih_ref[...],
                     preferred_element_type=jnp.float32)
             + bl_ref[...])                                 # (T*B, 4H) f32

    h = jnp.zeros((B, H), jnp.float32)
    c = jnp.zeros((B, H), jnp.float32)

    # Static unrolled recurrence (T known at trace time, small).
    for t in range(T):
        gates = zproj[t * B:(t + 1) * B, :] + jnp.dot(
            h.astype(BF16), whh_ref[...],
            preferred_element_type=jnp.float32)             # (B, 4H) f32
        i = jax.nn.sigmoid(gates[:, 0 * H:1 * H])
        f = jax.nn.sigmoid(gates[:, 1 * H:2 * H])
        g = jnp.tanh(gates[:, 2 * H:3 * H])
        o = jax.nn.sigmoid(gates[:, 3 * H:4 * H])
        c = f * c + i * g
        h = o * jnp.tanh(c)

    # ---- MLP head (f32 LayerNorm, bf16 matmul operands) ----
    def ln_relu(y, gamma, beta):
        # var = E[y^2] - mu^2: the two cross-lane reductions are independent.
        mu = jnp.sum(y, axis=-1, keepdims=True) * INV_D
        ms = jnp.sum(y * y, axis=-1, keepdims=True) * INV_D
        var = ms - mu * mu
        y = (y - mu) * jax.lax.rsqrt(var + EPS) * gamma + beta
        return jnp.maximum(y, 0.0)        # ReLU; Dropout(eval) == identity

    # fc1 without the concat: h @ W1h + x @ W1x + b1
    y = (jnp.dot(h.astype(BF16), w1h_ref[...],
                 preferred_element_type=jnp.float32)
         + jnp.dot(x_ref[...].astype(BF16), w1x_ref[...],
                   preferred_element_type=jnp.float32)
         + b1_ref[...])
    y = ln_relu(y, g1_ref[...], be1_ref[...])

    cp2.wait()
    y = ln_relu(jnp.dot(y.astype(BF16), w2_vmem[...],
                        preferred_element_type=jnp.float32) + b2_ref[...],
                g2_ref[...], be2_ref[...])
    cp3.wait()
    y = ln_relu(jnp.dot(y.astype(BF16), w3_vmem[...],
                        preferred_element_type=jnp.float32) + b3_ref[...],
                g3_ref[...], be3_ref[...])
    cp4.wait()
    y = ln_relu(jnp.dot(y.astype(BF16), w4_vmem[...],
                        preferred_element_type=jnp.float32) + b4_ref[...],
                g4_ref[...], be4_ref[...])

    # Fused, lane-padded p/v head: one (B, D) x (D, 128) matmul.
    cpp.wait()
    out_ref[...] = (jnp.dot(y.astype(BF16), wpv_vmem[...],
                            preferred_element_type=jnp.float32)
                    + bpv_ref[...])


def run_fused(z2d, x_pad, params):
    """z2d: (T*B_pad, F_IN_PAD) time-major flattened; x_pad: (B_pad, X_DIM_PAD)."""
    b_pad = x_pad.shape[0]
    vmem = lambda: pl.BlockSpec(memory_space=pltpu.MemorySpace.VMEM)
    hbm = lambda: pl.BlockSpec(memory_space=pl.ANY)   # manual DMA inside kernel
    in_specs = [vmem(), vmem(),                       # z, x
                vmem(), vmem(), vmem(),               # wih, whh, b_lstm
                vmem(), vmem(), vmem(), vmem(), vmem(),   # w1h, w1x, b1, g1, be1
                hbm(), vmem(), vmem(), vmem(),        # w2 (HBM), b2, g2, be2
                hbm(), vmem(), vmem(), vmem(),        # w3 (HBM), b3, g3, be3
                hbm(), vmem(), vmem(), vmem(),        # w4 (HBM), b4, g4, be4
                hbm(), vmem()]                        # wpv (HBM), bpv
    return pl.pallas_call(
        fused_kernel,
        out_shape=jax.ShapeDtypeStruct((b_pad, PV_PAD), jnp.float32),
        in_specs=in_specs,
        out_specs=vmem(),
        scratch_shapes=[pltpu.VMEM((D, D), BF16),
                        pltpu.VMEM((D, D), BF16),
                        pltpu.VMEM((D, D), BF16),
                        pltpu.VMEM((D, PV_PAD), BF16),
                        pltpu.SemaphoreType.DMA((4,))],
    )(z2d, x_pad, *params)


# ------------------------------ param setup ------------------------------
def init_params(key):
    ks = iter(jax.random.split(key, 40))

    def u(k, shape, scale):
        return jax.random.uniform(k, shape, jnp.float32, -scale, scale)

    s_lstm = 1.0 / jnp.sqrt(H)
    wih = u(next(ks), (F_IN, 4 * H), s_lstm)                       # = W_ih^T
    wih_p = jnp.zeros((F_IN_PAD, 4 * H), jnp.float32).at[:F_IN].set(wih)
    whh = u(next(ks), (H, 4 * H), s_lstm)                          # = W_hh^T
    b_lstm = u(next(ks), (1, 4 * H), s_lstm) + u(next(ks), (1, 4 * H), s_lstm)

    def linear(kw, kb, din, dout):
        s = 1.0 / jnp.sqrt(din)
        return u(kw, (din, dout), s), u(kb, (1, dout), s)

    ones = lambda: jnp.ones((1, D), jnp.float32)
    zeros = lambda: jnp.zeros((1, D), jnp.float32)

    # fc1 split into the h-half and the (padded) x-half (avoids the concat).
    w1, b1 = linear(next(ks), next(ks), H + X_DIM, D)
    w1h = w1[:H, :]
    w1x_p = jnp.zeros((X_DIM_PAD, D), jnp.float32).at[:X_DIM].set(w1[H:, :])
    g1, be1 = ones(), zeros()

    w2, b2 = linear(next(ks), next(ks), D, D); g2, be2 = ones(), zeros()
    w3, b3 = linear(next(ks), next(ks), D, D); g3, be3 = ones(), zeros()
    w4, b4 = linear(next(ks), next(ks), D, D); g4, be4 = ones(), zeros()

    wp, bp = linear(next(ks), next(ks), D, P_OUT)
    wv, bv = linear(next(ks), next(ks), D, V_OUT)
    wpv = jnp.concatenate([wp, wv], axis=1)                        # (D, 33)
    bpv = jnp.concatenate([bp, bv], axis=1)                        # (1, 33)
    wpv_p = jnp.zeros((D, PV_PAD), jnp.float32).at[:, :PV_OUT].set(wpv)
    bpv_p = jnp.zeros((1, PV_PAD), jnp.float32).at[:, :PV_OUT].set(bpv)

    bf = lambda a: a.astype(BF16)   # weight matrices stored bf16 in HBM
    return (bf(wih_p), bf(whh), b_lstm,
            bf(w1h), bf(w1x_p), b1, g1, be1,
            bf(w2), b2, g2, be2,
            bf(w3), b3, g3, be3,
            bf(w4), b4, g4, be4,
            bf(wpv_p), bpv_p)


# ------------------------------ full forward ------------------------------
@jax.jit
def model_forward(z, x, params):
    """z: (B, T, F_IN) batch-first (PyTorch layout), x: (B, X_DIM)."""
    B, T, _ = z.shape
    b_pad = max(8, ((B + 7) // 8) * 8)                 # pad batch to sublanes
    z_tm = jnp.transpose(z, (1, 0, 2))                 # (T, B, F_IN)
    z_tm = jnp.pad(z_tm, ((0, 0), (0, b_pad - B), (0, F_IN_PAD - F_IN)))
    z2d = z_tm.reshape(T * b_pad, F_IN_PAD)            # (T*B_pad, 256)
    x_pad = jnp.pad(x, ((0, b_pad - B), (0, X_DIM_PAD - X_DIM)))
    out = run_fused(z2d, x_pad, params)                # (B_pad, 128)
    return out[:B, :P_OUT], out[:B, P_OUT:PV_OUT]
    # TODO(synk): for large batches on v7x, add a batch-parallel grid
    # (dimension_semantics=("parallel",)) to engage the second TensorCore.


# ------------------------- pure-JAX reference check -------------------------
def reference_forward(z, x, params):
    """Mirrors the kernel's numerics (bf16 weights / bf16 matmul operands,
    f32 accumulation, f32 LayerNorm) in plain JAX."""
    (wih, whh, bl,
     w1h, w1x, b1, g1, be1,
     w2, b2, g2, be2,
     w3, b3, g3, be3,
     w4, b4, g4, be4,
     wpv, bpv) = params

    def mm(a, w):
        return jnp.dot(a.astype(BF16), w, preferred_element_type=jnp.float32)

    B, T, _ = z.shape
    wih_v = wih[:F_IN, :]
    w1x_v = w1x[:X_DIM, :]
    h = jnp.zeros((B, H), jnp.float32)
    c = jnp.zeros((B, H), jnp.float32)
    for t in range(T):
        gates = mm(z[:, t, :], wih_v) + mm(h, whh) + bl
        i = jax.nn.sigmoid(gates[:, 0 * H:1 * H])
        f = jax.nn.sigmoid(gates[:, 1 * H:2 * H])
        g = jnp.tanh(gates[:, 2 * H:3 * H])
        o = jax.nn.sigmoid(gates[:, 3 * H:4 * H])
        c = f * c + i * g
        h = o * jnp.tanh(c)

    def ln_relu(y, gamma, beta):
        mu = jnp.mean(y, axis=-1, keepdims=True)
        var = jnp.mean((y - mu) ** 2, axis=-1, keepdims=True)
        return jnp.maximum((y - mu) * jax.lax.rsqrt(var + EPS) * gamma + beta, 0.0)

    y = ln_relu(mm(h, w1h) + mm(x, w1x_v) + b1, g1, be1)
    y = ln_relu(mm(y, w2) + b2, g2, be2)
    y = ln_relu(mm(y, w3) + b3, g3, be3)
    y = ln_relu(mm(y, w4) + b4, g4, be4)
    pv = mm(y, wpv) + bpv
    return pv[:, :P_OUT], pv[:, P_OUT:PV_OUT]


if __name__ == "__main__":
    B, T = 2, 8
    key = jax.random.PRNGKey(0)
    k_z, k_x, k_p = jax.random.split(key, 3)

    z = jax.random.normal(k_z, (B, T, F_IN), jnp.float32)
    x = jax.random.normal(k_x, (B, X_DIM), jnp.float32)
    params = init_params(k_p)

    p, v = model_forward(z, x, params)
    jax.block_until_ready((p, v))

    assert p.shape == (B, P_OUT) and v.shape == (B, V_OUT)
    assert jnp.all(jnp.isfinite(p)) and jnp.all(jnp.isfinite(v))

    # Numerical check against a pure-JAX reference with identical numerics.
    p_ref, v_ref = reference_forward(z, x, params)
    assert jnp.allclose(p, p_ref, atol=2e-3, rtol=2e-3)
    assert jnp.allclose(v, v_ref, atol=2e-3, rtol=2e-3)

    print("KERNEL_OK")
</pallas_src>

<mosaic_0001>
module attributes {stable_mosaic.version = 11 : i64} {
  func.func @fused_kernel(%arg0: memref<64x256xf32, #tpu.memory_space<vmem>>, %arg1: memref<8x384xf32, #tpu.memory_space<vmem>>, %arg2: memref<256x512xbf16, #tpu.memory_space<vmem>>, %arg3: memref<128x512xbf16, #tpu.memory_space<vmem>>, %arg4: memref<1x512xf32, #tpu.memory_space<vmem>>, %arg5: memref<128x512xbf16, #tpu.memory_space<vmem>>, %arg6: memref<384x512xbf16, #tpu.memory_space<vmem>>, %arg7: memref<1x512xf32, #tpu.memory_space<vmem>>, %arg8: memref<1x512xf32, #tpu.memory_space<vmem>>, %arg9: memref<1x512xf32, #tpu.memory_space<vmem>>, %arg10: memref<512x512xbf16, #tpu.memory_space<any>>, %arg11: memref<1x512xf32, #tpu.memory_space<vmem>>, %arg12: memref<1x512xf32, #tpu.memory_space<vmem>>, %arg13: memref<1x512xf32, #tpu.memory_space<vmem>>, %arg14: memref<512x512xbf16, #tpu.memory_space<any>>, %arg15: memref<1x512xf32, #tpu.memory_space<vmem>>, %arg16: memref<1x512xf32, #tpu.memory_space<vmem>>, %arg17: memref<1x512xf32, #tpu.memory_space<vmem>>, %arg18: memref<512x512xbf16, #tpu.memory_space<any>>, %arg19: memref<1x512xf32, #tpu.memory_space<vmem>>, %arg20: memref<1x512xf32, #tpu.memory_space<vmem>>, %arg21: memref<1x512xf32, #tpu.memory_space<vmem>>, %arg22: memref<512x128xbf16, #tpu.memory_space<any>>, %arg23: memref<1x128xf32, #tpu.memory_space<vmem>>, %arg24: memref<8x128xf32, #tpu.memory_space<vmem>>, %arg25: memref<512x512xbf16, #tpu.memory_space<vmem>>, %arg26: memref<512x512xbf16, #tpu.memory_space<vmem>>, %arg27: memref<512x512xbf16, #tpu.memory_space<vmem>>, %arg28: memref<512x128xbf16, #tpu.memory_space<vmem>>, %arg29: memref<4x!tpu.dma_semaphore, #tpu.memory_space<semaphore_mem>>) attributes {dimension_semantics = [], scalar_prefetch = 0 : i64, scratch_operands = 5 : i64, tpu.core_type = #tpu.core_type<tc>} {
    %c0_i32 = arith.constant 0 : i32
    %0 = tpu.memref_slice %arg29[%c0_i32] : memref<4x!tpu.dma_semaphore, #tpu.memory_space<semaphore_mem>> -> memref<1x!tpu.dma_semaphore, #tpu.memory_space<semaphore_mem>>
    %1 = tpu.memref_squeeze %0 : memref<1x!tpu.dma_semaphore, #tpu.memory_space<semaphore_mem>> -> memref<!tpu.dma_semaphore, #tpu.memory_space<semaphore_mem>>
    tpu.enqueue_dma source(%arg10 : memref<512x512xbf16, #tpu.memory_space<any>>) target(%arg25 : memref<512x512xbf16, #tpu.memory_space<vmem>>) target_semaphore(%1 : memref<!tpu.dma_semaphore, #tpu.memory_space<semaphore_mem>>)
    %c1_i32 = arith.constant 1 : i32
    %2 = tpu.memref_slice %arg29[%c1_i32] : memref<4x!tpu.dma_semaphore, #tpu.memory_space<semaphore_mem>> -> memref<1x!tpu.dma_semaphore, #tpu.memory_space<semaphore_mem>>
    %3 = tpu.memref_squeeze %2 : memref<1x!tpu.dma_semaphore, #tpu.memory_space<semaphore_mem>> -> memref<!tpu.dma_semaphore, #tpu.memory_space<semaphore_mem>>
    tpu.enqueue_dma source(%arg14 : memref<512x512xbf16, #tpu.memory_space<any>>) target(%arg26 : memref<512x512xbf16, #tpu.memory_space<vmem>>) target_semaphore(%3 : memref<!tpu.dma_semaphore, #tpu.memory_space<semaphore_mem>>)
    %c2_i32 = arith.constant 2 : i32
    %4 = tpu.memref_slice %arg29[%c2_i32] : memref<4x!tpu.dma_semaphore, #tpu.memory_space<semaphore_mem>> -> memref<1x!tpu.dma_semaphore, #tpu.memory_space<semaphore_mem>>
    %5 = tpu.memref_squeeze %4 : memref<1x!tpu.dma_semaphore, #tpu.memory_space<semaphore_mem>> -> memref<!tpu.dma_semaphore, #tpu.memory_space<semaphore_mem>>
    tpu.enqueue_dma source(%arg18 : memref<512x512xbf16, #tpu.memory_space<any>>) target(%arg27 : memref<512x512xbf16, #tpu.memory_space<vmem>>) target_semaphore(%5 : memref<!tpu.dma_semaphore, #tpu.memory_space<semaphore_mem>>)
    %c3_i32 = arith.constant 3 : i32
    %6 = tpu.memref_slice %arg29[%c3_i32] : memref<4x!tpu.dma_semaphore, #tpu.memory_space<semaphore_mem>> -> memref<1x!tpu.dma_semaphore, #tpu.memory_space<semaphore_mem>>
    %7 = tpu.memref_squeeze %6 : memref<1x!tpu.dma_semaphore, #tpu.memory_space<semaphore_mem>> -> memref<!tpu.dma_semaphore, #tpu.memory_space<semaphore_mem>>
    tpu.enqueue_dma source(%arg22 : memref<512x128xbf16, #tpu.memory_space<any>>) target(%arg28 : memref<512x128xbf16, #tpu.memory_space<vmem>>) target_semaphore(%7 : memref<!tpu.dma_semaphore, #tpu.memory_space<semaphore_mem>>)
    %c0 = arith.constant 0 : index
    %c0_0 = arith.constant 0 : index
    %8 = vector.load %arg0[%c0, %c0_0] : memref<64x256xf32, #tpu.memory_space<vmem>>, vector<64x256xf32>
    %9 = arith.truncf %8 : vector<64x256xf32> to vector<64x256xbf16>
    %c0_1 = arith.constant 0 : index
    %c0_2 = arith.constant 0 : index
    %10 = vector.load %arg2[%c0_1, %c0_2] : memref<256x512xbf16, #tpu.memory_space<vmem>>, vector<256x512xbf16>
    %cst = arith.constant dense<0.000000e+00> : vector<64x512xf32>
    %11 = tpu.matmul %9, %10, %cst {dimension_numbers = #tpu.dot_dimension_numbers<[1], [0], [0], [1], [0, 0, 1, 1], [], []>} : vector<64x256xbf16>, vector<256x512xbf16>, vector<64x512xf32> -> vector<64x512xf32>
    %c0_3 = arith.constant 0 : index
    %c0_4 = arith.constant 0 : index
    %12 = vector.load %arg4[%c0_3, %c0_4] : memref<1x512xf32, #tpu.memory_space<vmem>>, vector<1x512xf32>
    %13 = vector.broadcast %12 : vector<1x512xf32> to vector<64x512xf32>
    %14 = arith.addf %11, %13 : vector<64x512xf32>
    %cst_5 = arith.constant 0.000000e+00 : f32
    %15 = vector.broadcast %cst_5 : f32 to vector<8x128xf32>
    %cst_6 = arith.constant 0.000000e+00 : f32
    %16 = vector.broadcast %cst_6 : f32 to vector<8x128xf32>
    %17 = vector.extract_strided_slice %14 {offsets = [0, 0], sizes = [8, 512], strides = [1, 1]} : vector<64x512xf32> to vector<8x512xf32>
    %18 = arith.truncf %15 : vector<8x128xf32> to vector<8x128xbf16>
    %c0_7 = arith.constant 0 : index
    %c0_8 = arith.constant 0 : index
    %19 = vector.load %arg3[%c0_7, %c0_8] : memref<128x512xbf16, #tpu.memory_space<vmem>>, vector<128x512xbf16>
    %cst_9 = arith.constant dense<0.000000e+00> : vector<8x512xf32>
    %20 = tpu.matmul %18, %19, %cst_9 {dimension_numbers = #tpu.dot_dimension_numbers<[1], [0], [0], [1], [0, 0, 1, 1], [], []>} : vector<8x128xbf16>, vector<128x512xbf16>, vector<8x512xf32> -> vector<8x512xf32>
    %21 = arith.addf %17, %20 : vector<8x512xf32>
    %22 = vector.extract_strided_slice %21 {offsets = [0, 0], sizes = [8, 128], strides = [1, 1]} : vector<8x512xf32> to vector<8x128xf32>
    %23 = arith.negf %22 : vector<8x128xf32>
    %24 = math.exp %23 : vector<8x128xf32>
    %cst_10 = arith.constant 1.000000e+00 : f32
    %25 = vector.broadcast %cst_10 : f32 to vector<8x128xf32>
    %26 = arith.addf %25, %24 : vector<8x128xf32>
    %27 = arith.divf %25, %26 : vector<8x128xf32>
    %28 = vector.extract_strided_slice %21 {offsets = [0, 128], sizes = [8, 128], strides = [1, 1]} : vector<8x512xf32> to vector<8x128xf32>
    %29 = arith.negf %28 : vector<8x128xf32>
    %30 = math.exp %29 : vector<8x128xf32>
    %cst_11 = arith.constant 1.000000e+00 : f32
    %31 = vector.broadcast %cst_11 : f32 to vector<8x128xf32>
    %32 = arith.addf %31, %30 : vector<8x128xf32>
    %33 = arith.divf %31, %32 : vector<8x128xf32>
    %34 = vector.extract_strided_slice %21 {offsets = [0, 256], sizes = [8, 128], strides = [1, 1]} : vector<8x512xf32> to vector<8x128xf32>
    %35 = math.tanh %34 : vector<8x128xf32>
    %36 = vector.extract_strided_slice %21 {offsets = [0, 384], sizes = [8, 128], strides = [1, 1]} : vector<8x512xf32> to vector<8x128xf32>
    %37 = arith.negf %36 : vector<8x128xf32>
    %38 = math.exp %37 : vector<8x128xf32>
    %cst_12 = arith.constant 1.000000e+00 : f32
    %39 = vector.broadcast %cst_12 : f32 to vector<8x128xf32>
    %40 = arith.addf %39, %38 : vector<8x128xf32>
    %41 = arith.divf %39, %40 : vector<8x128xf32>
    %42 = arith.mulf %33, %16 : vector<8x128xf32>
    %43 = arith.mulf %27, %35 : vector<8x128xf32>
    %44 = arith.addf %42, %43 : vector<8x128xf32>
    %45 = math.tanh %44 : vector<8x128xf32>
    %46 = arith.mulf %41, %45 : vector<8x128xf32>
    %47 = vector.extract_strided_slice %14 {offsets = [8, 0], sizes = [8, 512], strides = [1, 1]} : vector<64x512xf32> to vector<8x512xf32>
    %48 = arith.truncf %46 : vector<8x128xf32> to vector<8x128xbf16>
    %c0_13 = arith.constant 0 : index
    %c0_14 = arith.constant 0 : index
    %49 = vector.load %arg3[%c0_13, %c0_14] : memref<128x512xbf16, #tpu.memory_space<vmem>>, vector<128x512xbf16>
    %cst_15 = arith.constant dense<0.000000e+00> : vector<8x512xf32>
    %50 = tpu.matmul %48, %49, %cst_15 {dimension_numbers = #tpu.dot_dimension_numbers<[1], [0], [0], [1], [0, 0, 1, 1], [], []>} : vector<8x128xbf16>, vector<128x512xbf16>, vector<8x512xf32> -> vector<8x512xf32>
    %51 = arith.addf %47, %50 : vector<8x512xf32>
    %52 = vector.extract_strided_slice %51 {offsets = [0, 0], sizes = [8, 128], strides = [1, 1]} : vector<8x512xf32> to vector<8x128xf32>
    %53 = arith.negf %52 : vector<8x128xf32>
    %54 = math.exp %53 : vector<8x128xf32>
    %cst_16 = arith.constant 1.000000e+00 : f32
    %55 = vector.broadcast %cst_16 : f32 to vector<8x128xf32>
    %56 = arith.addf %55, %54 : vector<8x128xf32>
    %57 = arith.divf %55, %56 : vector<8x128xf32>
    %58 = vector.extract_strided_slice %51 {offsets = [0, 128], sizes = [8, 128], strides = [1, 1]} : vector<8x512xf32> to vector<8x128xf32>
    %59 = arith.negf %58 : vector<8x128xf32>
    %60 = math.exp %59 : vector<8x128xf32>
    %cst_17 = arith.constant 1.000000e+00 : f32
    %61 = vector.broadcast %cst_17 : f32 to vector<8x128xf32>
    %62 = arith.addf %61, %60 : vector<8x128xf32>
    %63 = arith.divf %61, %62 : vector<8x128xf32>
    %64 = vector.extract_strided_slice %51 {offsets = [0, 256], sizes = [8, 128], strides = [1, 1]} : vector<8x512xf32> to vector<8x128xf32>
    %65 = math.tanh %64 : vector<8x128xf32>
    %66 = vector.extract_strided_slice %51 {offsets = [0, 384], sizes = [8, 128], strides = [1, 1]} : vector<8x512xf32> to vector<8x128xf32>
    %67 = arith.negf %66 : vector<8x128xf32>
    %68 = math.exp %67 : vector<8x128xf32>
    %cst_18 = arith.constant 1.000000e+00 : f32
    %69 = vector.broadcast %cst_18 : f32 to vector<8x128xf32>
    %70 = arith.addf %69, %68 : vector<8x128xf32>
    %71 = arith.divf %69, %70 : vector<8x128xf32>
    %72 = arith.mulf %63, %44 : vector<8x128xf32>
    %73 = arith.mulf %57, %65 : vector<8x128xf32>
    %74 = arith.addf %72, %73 : vector<8x128xf32>
    %75 = math.tanh %74 : vector<8x128xf32>
    %76 = arith.mulf %71, %75 : vector<8x128xf32>
    %77 = vector.extract_strided_slice %14 {offsets = [16, 0], sizes = [8, 512], strides = [1, 1]} : vector<64x512xf32> to vector<8x512xf32>
    %78 = arith.truncf %76 : vector<8x128xf32> to vector<8x128xbf16>
    %c0_19 = arith.constant 0 : index
    %c0_20 = arith.constant 0 : index
    %79 = vector.load %arg3[%c0_19, %c0_20] : memref<128x512xbf16, #tpu.memory_space<vmem>>, vector<128x512xbf16>
    %cst_21 = arith.constant dense<0.000000e+00> : vector<8x512xf32>
    %80 = tpu.matmul %78, %79, %cst_21 {dimension_numbers = #tpu.dot_dimension_numbers<[1], [0], [0], [1], [0, 0, 1, 1], [], []>} : vector<8x128xbf16>, vector<128x512xbf16>, vector<8x512xf32> -> vector<8x512xf32>
    %81 = arith.addf %77, %80 : vector<8x512xf32>
    %82 = vector.extract_strided_slice %81 {offsets = [0, 0], sizes = [8, 128], strides = [1, 1]} : vector<8x512xf32> to vector<8x128xf32>
    %83 = arith.negf %82 : vector<8x128xf32>
    %84 = math.exp %83 : vector<8x128xf32>
    %cst_22 = arith.constant 1.000000e+00 : f32
    %85 = vector.broadcast %cst_22 : f32 to vector<8x128xf32>
    %86 = arith.addf %85, %84 : vector<8x128xf32>
    %87 = arith.divf %85, %86 : vector<8x128xf32>
    %88 = vector.extract_strided_slice %81 {offsets = [0, 128], sizes = [8, 128], strides = [1, 1]} : vector<8x512xf32> to vector<8x128xf32>
    %89 = arith.negf %88 : vector<8x128xf32>
    %90 = math.exp %89 : vector<8x128xf32>
    %cst_23 = arith.constant 1.000000e+00 : f32
    %91 = vector.broadcast %cst_23 : f32 to vector<8x128xf32>
    %92 = arith.addf %91, %90 : vector<8x128xf32>
    %93 = arith.divf %91, %92 : vector<8x128xf32>
    %94 = vector.extract_strided_slice %81 {offsets = [0, 256], sizes = [8, 128], strides = [1, 1]} : vector<8x512xf32> to vector<8x128xf32>
    %95 = math.tanh %94 : vector<8x128xf32>
    %96 = vector.extract_strided_slice %81 {offsets = [0, 384], sizes = [8, 128], strides = [1, 1]} : vector<8x512xf32> to vector<8x128xf32>
    %97 = arith.negf %96 : vector<8x128xf32>
    %98 = math.exp %97 : vector<8x128xf32>
    %cst_24 = arith.constant 1.000000e+00 : f32
    %99 = vector.broadcast %cst_24 : f32 to vector<8x128xf32>
    %100 = arith.addf %99, %98 : vector<8x128xf32>
    %101 = arith.divf %99, %100 : vector<8x128xf32>
    %102 = arith.mulf %93, %74 : vector<8x128xf32>
    %103 = arith.mulf %87, %95 : vector<8x128xf32>
    %104 = arith.addf %102, %103 : vector<8x128xf32>
    %105 = math.tanh %104 : vector<8x128xf32>
    %106 = arith.mulf %101, %105 : vector<8x128xf32>
    %107 = vector.extract_strided_slice %14 {offsets = [24, 0], sizes = [8, 512], strides = [1, 1]} : vector<64x512xf32> to vector<8x512xf32>
    %108 = arith.truncf %106 : vector<8x128xf32> to vector<8x128xbf16>
    %c0_25 = arith.constant 0 : index
    %c0_26 = arith.constant 0 : index
    %109 = vector.load %arg3[%c0_25, %c0_26] : memref<128x512xbf16, #tpu.memory_space<vmem>>, vector<128x512xbf16>
    %cst_27 = arith.constant dense<0.000000e+00> : vector<8x512xf32>
    %110 = tpu.matmul %108, %109, %cst_27 {dimension_numbers = #tpu.dot_dimension_numbers<[1], [0], [0], [1], [0, 0, 1, 1], [], []>} : vector<8x128xbf16>, vector<128x512xbf16>, vector<8x512xf32> -> vector<8x512xf32>
    %111 = arith.addf %107, %110 : vector<8x512xf32>
    %112 = vector.extract_strided_slice %111 {offsets = [0, 0], sizes = [8, 128], strides = [1, 1]} : vector<8x512xf32> to vector<8x128xf32>
    %113 = arith.negf %112 : vector<8x128xf32>
    %114 = math.exp %113 : vector<8x128xf32>
    %cst_28 = arith.constant 1.000000e+00 : f32
    %115 = vector.broadcast %cst_28 : f32 to vector<8x128xf32>
    %116 = arith.addf %115, %114 : vector<8x128xf32>
    %117 = arith.divf %115, %116 : vector<8x128xf32>
    %118 = vector.extract_strided_slice %111 {offsets = [0, 128], sizes = [8, 128], strides = [1, 1]} : vector<8x512xf32> to vector<8x128xf32>
    %119 = arith.negf %118 : vector<8x128xf32>
    %120 = math.exp %119 : vector<8x128xf32>
    %cst_29 = arith.constant 1.000000e+00 : f32
    %121 = vector.broadcast %cst_29 : f32 to vector<8x128xf32>
    %122 = arith.addf %121, %120 : vector<8x128xf32>
    %123 = arith.divf %121, %122 : vector<8x128xf32>
    %124 = vector.extract_strided_slice %111 {offsets = [0, 256], sizes = [8, 128], strides = [1, 1]} : vector<8x512xf32> to vector<8x128xf32>
    %125 = math.tanh %124 : vector<8x128xf32>
    %126 = vector.extract_strided_slice %111 {offsets = [0, 384], sizes = [8, 128], strides = [1, 1]} : vector<8x512xf32> to vector<8x128xf32>
    %127 = arith.negf %126 : vector<8x128xf32>
    %128 = math.exp %127 : vector<8x128xf32>
    %cst_30 = arith.constant 1.000000e+00 : f32
    %129 = vector.broadcast %cst_30 : f32 to vector<8x128xf32>
    %130 = arith.addf %129, %128 : vector<8x128xf32>
    %131 = arith.divf %129, %130 : vector<8x128xf32>
    %132 = arith.mulf %123, %104 : vector<8x128xf32>
    %133 = arith.mulf %117, %125 : vector<8x128xf32>
    %134 = arith.addf %132, %133 : vector<8x128xf32>
    %135 = math.tanh %134 : vector<8x128xf32>
    %136 = arith.mulf %131, %135 : vector<8x128xf32>
    %137 = vector.extract_strided_slice %14 {offsets = [32, 0], sizes = [8, 512], strides = [1, 1]} : vector<64x512xf32> to vector<8x512xf32>
    %138 = arith.truncf %136 : vector<8x128xf32> to vector<8x128xbf16>
    %c0_31 = arith.constant 0 : index
    %c0_32 = arith.constant 0 : index
    %139 = vector.load %arg3[%c0_31, %c0_32] : memref<128x512xbf16, #tpu.memory_space<vmem>>, vector<128x512xbf16>
    %cst_33 = arith.constant dense<0.000000e+00> : vector<8x512xf32>
    %140 = tpu.matmul %138, %139, %cst_33 {dimension_numbers = #tpu.dot_dimension_numbers<[1], [0], [0], [1], [0, 0, 1, 1], [], []>} : vector<8x128xbf16>, vector<128x512xbf16>, vector<8x512xf32> -> vector<8x512xf32>
    %141 = arith.addf %137, %140 : vector<8x512xf32>
    %142 = vector.extract_strided_slice %141 {offsets = [0, 0], sizes = [8, 128], strides = [1, 1]} : vector<8x512xf32> to vector<8x128xf32>
    %143 = arith.negf %142 : vector<8x128xf32>
    %144 = math.exp %143 : vector<8x128xf32>
    %cst_34 = arith.constant 1.000000e+00 : f32
    %145 = vector.broadcast %cst_34 : f32 to vector<8x128xf32>
    %146 = arith.addf %145, %144 : vector<8x128xf32>
    %147 = arith.divf %145, %146 : vector<8x128xf32>
    %148 = vector.extract_strided_slice %141 {offsets = [0, 128], sizes = [8, 128], strides = [1, 1]} : vector<8x512xf32> to vector<8x128xf32>
    %149 = arith.negf %148 : vector<8x128xf32>
    %150 = math.exp %149 : vector<8x128xf32>
    %cst_35 = arith.constant 1.000000e+00 : f32
    %151 = vector.broadcast %cst_35 : f32 to vector<8x128xf32>
    %152 = arith.addf %151, %150 : vector<8x128xf32>
    %153 = arith.divf %151, %152 : vector<8x128xf32>
    %154 = vector.extract_strided_slice %141 {offsets = [0, 256], sizes = [8, 128], strides = [1, 1]} : vector<8x512xf32> to vector<8x128xf32>
    %155 = math.tanh %154 : vector<8x128xf32>
    %156 = vector.extract_strided_slice %141 {offsets = [0, 384], sizes = [8, 128], strides = [1, 1]} : vector<8x512xf32> to vector<8x128xf32>
    %157 = arith.negf %156 : vector<8x128xf32>
    %158 = math.exp %157 : vector<8x128xf32>
    %cst_36 = arith.constant 1.000000e+00 : f32
    %159 = vector.broadcast %cst_36 : f32 to vector<8x128xf32>
    %160 = arith.addf %159, %158 : vector<8x128xf32>
    %161 = arith.divf %159, %160 : vector<8x128xf32>
    %162 = arith.mulf %153, %134 : vector<8x128xf32>
    %163 = arith.mulf %147, %155 : vector<8x128xf32>
    %164 = arith.addf %162, %163 : vector<8x128xf32>
    %165 = math.tanh %164 : vector<8x128xf32>
    %166 = arith.mulf %161, %165 : vector<8x128xf32>
    %167 = vector.extract_strided_slice %14 {offsets = [40, 0], sizes = [8, 512], strides = [1, 1]} : vector<64x512xf32> to vector<8x512xf32>
    %168 = arith.truncf %166 : vector<8x128xf32> to vector<8x128xbf16>
    %c0_37 = arith.constant 0 : index
    %c0_38 = arith.constant 0 : index
    %169 = vector.load %arg3[%c0_37, %c0_38] : memref<128x512xbf16, #tpu.memory_space<vmem>>, vector<128x512xbf16>
    %cst_39 = arith.constant dense<0.000000e+00> : vector<8x512xf32>
    %170 = tpu.matmul %168, %169, %cst_39 {dimension_numbers = #tpu.dot_dimension_numbers<[1], [0], [0], [1], [0, 0, 1, 1], [], []>} : vector<8x128xbf16>, vector<128x512xbf16>, vector<8x512xf32> -> vector<8x512xf32>
    %171 = arith.addf %167, %170 : vector<8x512xf32>
    %172 = vector.extract_strided_slice %171 {offsets = [0, 0], sizes = [8, 128], strides = [1, 1]} : vector<8x512xf32> to vector<8x128xf32>
    %173 = arith.negf %172 : vector<8x128xf32>
    %174 = math.exp %173 : vector<8x128xf32>
    %cst_40 = arith.constant 1.000000e+00 : f32
    %175 = vector.broadcast %cst_40 : f32 to vector<8x128xf32>
    %176 = arith.addf %175, %174 : vector<8x128xf32>
    %177 = arith.divf %175, %176 : vector<8x128xf32>
    %178 = vector.extract_strided_slice %171 {offsets = [0, 128], sizes = [8, 128], strides = [1, 1]} : vector<8x512xf32> to vector<8x128xf32>
    %179 = arith.negf %178 : vector<8x128xf32>
    %180 = math.exp %179 : vector<8x128xf32>
    %cst_41 = arith.constant 1.000000e+00 : f32
    %181 = vector.broadcast %cst_41 : f32 to vector<8x128xf32>
    %182 = arith.addf %181, %180 : vector<8x128xf32>
    %183 = arith.divf %181, %182 : vector<8x128xf32>
    %184 = vector.extract_strided_slice %171 {offsets = [0, 256], sizes = [8, 128], strides = [1, 1]} : vector<8x512xf32> to vector<8x128xf32>
    %185 = math.tanh %184 : vector<8x128xf32>
    %186 = vector.extract_strided_slice %171 {offsets = [0, 384], sizes = [8, 128], strides = [1, 1]} : vector<8x512xf32> to vector<8x128xf32>
    %187 = arith.negf %186 : vector<8x128xf32>
    %188 = math.exp %187 : vector<8x128xf32>
    %cst_42 = arith.constant 1.000000e+00 : f32
    %189 = vector.broadcast %cst_42 : f32 to vector<8x128xf32>
    %190 = arith.addf %189, %188 : vector<8x128xf32>
    %191 = arith.divf %189, %190 : vector<8x128xf32>
    %192 = arith.mulf %183, %164 : vector<8x128xf32>
    %193 = arith.mulf %177, %185 : vector<8x128xf32>
    %194 = arith.addf %192, %193 : vector<8x128xf32>
    %195 = math.tanh %194 : vector<8x128xf32>
    %196 = arith.mulf %191, %195 : vector<8x128xf32>
    %197 = vector.extract_strided_slice %14 {offsets = [48, 0], sizes = [8, 512], strides = [1, 1]} : vector<64x512xf32> to vector<8x512xf32>
    %198 = arith.truncf %196 : vector<8x128xf32> to vector<8x128xbf16>
    %c0_43 = arith.constant 0 : index
    %c0_44 = arith.constant 0 : index
    %199 = vector.load %arg3[%c0_43, %c0_44] : memref<128x512xbf16, #tpu.memory_space<vmem>>, vector<128x512xbf16>
    %cst_45 = arith.constant dense<0.000000e+00> : vector<8x512xf32>
    %200 = tpu.matmul %198, %199, %cst_45 {dimension_numbers = #tpu.dot_dimension_numbers<[1], [0], [0], [1], [0, 0, 1, 1], [], []>} : vector<8x128xbf16>, vector<128x512xbf16>, vector<8x512xf32> -> vector<8x512xf32>
    %201 = arith.addf %197, %200 : vector<8x512xf32>
    %202 = vector.extract_strided_slice %201 {offsets = [0, 0], sizes = [8, 128], strides = [1, 1]} : vector<8x512xf32> to vector<8x128xf32>
    %203 = arith.negf %202 : vector<8x128xf32>
    %204 = math.exp %203 : vector<8x128xf32>
    %cst_46 = arith.constant 1.000000e+00 : f32
    %205 = vector.broadcast %cst_46 : f32 to vector<8x128xf32>
    %206 = arith.addf %205, %204 : vector<8x128xf32>
    %207 = arith.divf %205, %206 : vector<8x128xf32>
    %208 = vector.extract_strided_slice %201 {offsets = [0, 128], sizes = [8, 128], strides = [1, 1]} : vector<8x512xf32> to vector<8x128xf32>
    %209 = arith.negf %208 : vector<8x128xf32>
    %210 = math.exp %209 : vector<8x128xf32>
    %cst_47 = arith.constant 1.000000e+00 : f32
    %211 = vector.broadcast %cst_47 : f32 to vector<8x128xf32>
    %212 = arith.addf %211, %210 : vector<8x128xf32>
    %213 = arith.divf %211, %212 : vector<8x128xf32>
    %214 = vector.extract_strided_slice %201 {offsets = [0, 256], sizes = [8, 128], strides = [1, 1]} : vector<8x512xf32> to vector<8x128xf32>
    %215 = math.tanh %214 : vector<8x128xf32>
    %216 = vector.extract_strided_slice %201 {offsets = [0, 384], sizes = [8, 128], strides = [1, 1]} : vector<8x512xf32> to vector<8x128xf32>
    %217 = arith.negf %216 : vector<8x128xf32>
    %218 = math.exp %217 : vector<8x128xf32>
    %cst_48 = arith.constant 1.000000e+00 : f32
    %219 = vector.broadcast %cst_48 : f32 to vector<8x128xf32>
    %220 = arith.addf %219, %218 : vector<8x128xf32>
    %221 = arith.divf %219, %220 : vector<8x128xf32>
    %222 = arith.mulf %213, %194 : vector<8x128xf32>
    %223 = arith.mulf %207, %215 : vector<8x128xf32>
    %224 = arith.addf %222, %223 : vector<8x128xf32>
    %225 = math.tanh %224 : vector<8x128xf32>
    %226 = arith.mulf %221, %225 : vector<8x128xf32>
    %227 = vector.extract_strided_slice %14 {offsets = [56, 0], sizes = [8, 512], strides = [1, 1]} : vector<64x512xf32> to vector<8x512xf32>
    %228 = arith.truncf %226 : vector<8x128xf32> to vector<8x128xbf16>
    %c0_49 = arith.constant 0 : index
    %c0_50 = arith.constant 0 : index
    %229 = vector.load %arg3[%c0_49, %c0_50] : memref<128x512xbf16, #tpu.memory_space<vmem>>, vector<128x512xbf16>
    %cst_51 = arith.constant dense<0.000000e+00> : vector<8x512xf32>
    %230 = tpu.matmul %228, %229, %cst_51 {dimension_numbers = #tpu.dot_dimension_numbers<[1], [0], [0], [1], [0, 0, 1, 1], [], []>} : vector<8x128xbf16>, vector<128x512xbf16>, vector<8x512xf32> -> vector<8x512xf32>
    %231 = arith.addf %227, %230 : vector<8x512xf32>
    %232 = vector.extract_strided_slice %231 {offsets = [0, 0], sizes = [8, 128], strides = [1, 1]} : vector<8x512xf32> to vector<8x128xf32>
    %233 = arith.negf %232 : vector<8x128xf32>
    %234 = math.exp %233 : vector<8x128xf32>
    %cst_52 = arith.constant 1.000000e+00 : f32
    %235 = vector.broadcast %cst_52 : f32 to vector<8x128xf32>
    %236 = arith.addf %235, %234 : vector<8x128xf32>
    %237 = arith.divf %235, %236 : vector<8x128xf32>
    %238 = vector.extract_strided_slice %231 {offsets = [0, 128], sizes = [8, 128], strides = [1, 1]} : vector<8x512xf32> to vector<8x128xf32>
    %239 = arith.negf %238 : vector<8x128xf32>
    %240 = math.exp %239 : vector<8x128xf32>
    %cst_53 = arith.constant 1.000000e+00 : f32
    %241 = vector.broadcast %cst_53 : f32 to vector<8x128xf32>
    %242 = arith.addf %241, %240 : vector<8x128xf32>
    %243 = arith.divf %241, %242 : vector<8x128xf32>
    %244 = vector.extract_strided_slice %231 {offsets = [0, 256], sizes = [8, 128], strides = [1, 1]} : vector<8x512xf32> to vector<8x128xf32>
    %245 = math.tanh %244 : vector<8x128xf32>
    %246 = vector.extract_strided_slice %231 {offsets = [0, 384], sizes = [8, 128], strides = [1, 1]} : vector<8x512xf32> to vector<8x128xf32>
    %247 = arith.negf %246 : vector<8x128xf32>
    %248 = math.exp %247 : vector<8x128xf32>
    %cst_54 = arith.constant 1.000000e+00 : f32
    %249 = vector.broadcast %cst_54 : f32 to vector<8x128xf32>
    %250 = arith.addf %249, %248 : vector<8x128xf32>
    %251 = arith.divf %249, %250 : vector<8x128xf32>
    %252 = arith.mulf %243, %224 : vector<8x128xf32>
    %253 = arith.mulf %237, %245 : vector<8x128xf32>
    %254 = arith.addf %252, %253 : vector<8x128xf32>
    %255 = math.tanh %254 : vector<8x128xf32>
    %256 = arith.mulf %251, %255 : vector<8x128xf32>
    %257 = arith.truncf %256 : vector<8x128xf32> to vector<8x128xbf16>
    %c0_55 = arith.constant 0 : index
    %c0_56 = arith.constant 0 : index
    %258 = vector.load %arg5[%c0_55, %c0_56] : memref<128x512xbf16, #tpu.memory_space<vmem>>, vector<128x512xbf16>
    %cst_57 = arith.constant dense<0.000000e+00> : vector<8x512xf32>
    %259 = tpu.matmul %257, %258, %cst_57 {dimension_numbers = #tpu.dot_dimension_numbers<[1], [0], [0], [1], [0, 0, 1, 1], [], []>} : vector<8x128xbf16>, vector<128x512xbf16>, vector<8x512xf32> -> vector<8x512xf32>
    %c0_58 = arith.constant 0 : index
    %c0_59 = arith.constant 0 : index
    %260 = vector.load %arg1[%c0_58, %c0_59] : memref<8x384xf32, #tpu.memory_space<vmem>>, vector<8x384xf32>
    %261 = arith.truncf %260 : vector<8x384xf32> to vector<8x384xbf16>
    %c0_60 = arith.constant 0 : index
    %c0_61 = arith.constant 0 : index
    %262 = vector.load %arg6[%c0_60, %c0_61] : memref<384x512xbf16, #tpu.memory_space<vmem>>, vector<384x512xbf16>
    %cst_62 = arith.constant dense<0.000000e+00> : vector<8x512xf32>
    %263 = tpu.matmul %261, %262, %cst_62 {dimension_numbers = #tpu.dot_dimension_numbers<[1], [0], [0], [1], [0, 0, 1, 1], [], []>} : vector<8x384xbf16>, vector<384x512xbf16>, vector<8x512xf32> -> vector<8x512xf32>
    %264 = arith.addf %259, %263 : vector<8x512xf32>
    %c0_63 = arith.constant 0 : index
    %c0_64 = arith.constant 0 : index
    %265 = vector.load %arg7[%c0_63, %c0_64] : memref<1x512xf32, #tpu.memory_space<vmem>>, vector<1x512xf32>
    %266 = vector.broadcast %265 : vector<1x512xf32> to vector<8x512xf32>
    %267 = arith.addf %264, %266 : vector<8x512xf32>
    %c0_65 = arith.constant 0 : index
    %c0_66 = arith.constant 0 : index
    %268 = vector.load %arg8[%c0_65, %c0_66] : memref<1x512xf32, #tpu.memory_space<vmem>>, vector<1x512xf32>
    %c0_67 = arith.constant 0 : index
    %c0_68 = arith.constant 0 : index
    %269 = vector.load %arg9[%c0_67, %c0_68] : memref<1x512xf32, #tpu.memory_space<vmem>>, vector<1x512xf32>
    %cst_69 = arith.constant dense<0.000000e+00> : vector<8xf32>
    %270 = vector.multi_reduction <add>, %267, %cst_69 [1] : vector<8x512xf32> to vector<8xf32>
    %271 = vector.shape_cast %270 : vector<8xf32> to vector<8x1xf32>
    %cst_70 = arith.constant 0.001953125 : f32
    %272 = vector.broadcast %cst_70 : f32 to vector<8x1xf32>
    %273 = arith.mulf %271, %272 : vector<8x1xf32>
    %274 = arith.mulf %267, %267 : vector<8x512xf32>
    %cst_71 = arith.constant dense<0.000000e+00> : vector<8xf32>
    %275 = vector.multi_reduction <add>, %274, %cst_71 [1] : vector<8x512xf32> to vector<8xf32>
    %276 = vector.shape_cast %275 : vector<8xf32> to vector<8x1xf32>
    %cst_72 = arith.constant 0.001953125 : f32
    %277 = vector.broadcast %cst_72 : f32 to vector<8x1xf32>
    %278 = arith.mulf %276, %277 : vector<8x1xf32>
    %279 = arith.mulf %273, %273 : vector<8x1xf32>
    %280 = arith.subf %278, %279 : vector<8x1xf32>
    %281 = vector.broadcast %273 : vector<8x1xf32> to vector<8x512xf32>
    %282 = arith.subf %267, %281 : vector<8x512xf32>
    %cst_73 = arith.constant 9.99999974E-6 : f32
    %283 = vector.broadcast %cst_73 : f32 to vector<8x1xf32>
    %284 = arith.addf %280, %283 : vector<8x1xf32>
    %285 = math.rsqrt %284 : vector<8x1xf32>
    %286 = vector.broadcast %285 : vector<8x1xf32> to vector<8x512xf32>
    %287 = arith.mulf %282, %286 : vector<8x512xf32>
    %288 = vector.broadcast %268 : vector<1x512xf32> to vector<8x512xf32>
    %289 = arith.mulf %287, %288 : vector<8x512xf32>
    %290 = vector.broadcast %269 : vector<1x512xf32> to vector<8x512xf32>
    %291 = arith.addf %289, %290 : vector<8x512xf32>
    %cst_74 = arith.constant 0.000000e+00 : f32
    %292 = vector.broadcast %cst_74 : f32 to vector<8x512xf32>
    %293 = arith.maximumf %291, %292 : vector<8x512xf32>
    %c0_i32_75 = arith.constant 0 : i32
    %294 = tpu.memref_slice %arg29[%c0_i32_75] : memref<4x!tpu.dma_semaphore, #tpu.memory_space<semaphore_mem>> -> memref<1x!tpu.dma_semaphore, #tpu.memory_space<semaphore_mem>>
    %295 = tpu.memref_squeeze %294 : memref<1x!tpu.dma_semaphore, #tpu.memory_space<semaphore_mem>> -> memref<!tpu.dma_semaphore, #tpu.memory_space<semaphore_mem>>
    tpu.wait_dma2 semaphore(%295 : memref<!tpu.dma_semaphore, #tpu.memory_space<semaphore_mem>>) src(%arg10 : memref<512x512xbf16, #tpu.memory_space<any>>) dst(%arg25 : memref<512x512xbf16, #tpu.memory_space<vmem>>)
    %296 = arith.truncf %293 : vector<8x512xf32> to vector<8x512xbf16>
    %c0_76 = arith.constant 0 : index
    %c0_77 = arith.constant 0 : index
    %297 = vector.load %arg25[%c0_76, %c0_77] : memref<512x512xbf16, #tpu.memory_space<vmem>>, vector<512x512xbf16>
    %cst_78 = arith.constant dense<0.000000e+00> : vector<8x512xf32>
    %298 = tpu.matmul %296, %297, %cst_78 {dimension_numbers = #tpu.dot_dimension_numbers<[1], [0], [0], [1], [0, 0, 1, 1], [], []>} : vector<8x512xbf16>, vector<512x512xbf16>, vector<8x512xf32> -> vector<8x512xf32>
    %c0_79 = arith.constant 0 : index
    %c0_80 = arith.constant 0 : index
    %299 = vector.load %arg11[%c0_79, %c0_80] : memref<1x512xf32, #tpu.memory_space<vmem>>, vector<1x512xf32>
    %300 = vector.broadcast %299 : vector<1x512xf32> to vector<8x512xf32>
    %301 = arith.addf %298, %300 : vector<8x512xf32>
    %c0_81 = arith.constant 0 : index
    %c0_82 = arith.constant 0 : index
    %302 = vector.load %arg12[%c0_81, %c0_82] : memref<1x512xf32, #tpu.memory_space<vmem>>, vector<1x512xf32>
    %c0_83 = arith.constant 0 : index
    %c0_84 = arith.constant 0 : index
    %303 = vector.load %arg13[%c0_83, %c0_84] : memref<1x512xf32, #tpu.memory_space<vmem>>, vector<1x512xf32>
    %cst_85 = arith.constant dense<0.000000e+00> : vector<8xf32>
    %304 = vector.multi_reduction <add>, %301, %cst_85 [1] : vector<8x512xf32> to vector<8xf32>
    %305 = vector.shape_cast %304 : vector<8xf32> to vector<8x1xf32>
    %cst_86 = arith.constant 0.001953125 : f32
    %306 = vector.broadcast %cst_86 : f32 to vector<8x1xf32>
    %307 = arith.mulf %305, %306 : vector<8x1xf32>
    %308 = arith.mulf %301, %301 : vector<8x512xf32>
    %cst_87 = arith.constant dense<0.000000e+00> : vector<8xf32>
    %309 = vector.multi_reduction <add>, %308, %cst_87 [1] : vector<8x512xf32> to vector<8xf32>
    %310 = vector.shape_cast %309 : vector<8xf32> to vector<8x1xf32>
    %cst_88 = arith.constant 0.001953125 : f32
    %311 = vector.broadcast %cst_88 : f32 to vector<8x1xf32>
    %312 = arith.mulf %310, %311 : vector<8x1xf32>
    %313 = arith.mulf %307, %307 : vector<8x1xf32>
    %314 = arith.subf %312, %313 : vector<8x1xf32>
    %315 = vector.broadcast %307 : vector<8x1xf32> to vector<8x512xf32>
    %316 = arith.subf %301, %315 : vector<8x512xf32>
    %cst_89 = arith.constant 9.99999974E-6 : f32
    %317 = vector.broadcast %cst_89 : f32 to vector<8x1xf32>
    %318 = arith.addf %314, %317 : vector<8x1xf32>
    %319 = math.rsqrt %318 : vector<8x1xf32>
    %320 = vector.broadcast %319 : vector<8x1xf32> to vector<8x512xf32>
    %321 = arith.mulf %316, %320 : vector<8x512xf32>
    %322 = vector.broadcast %302 : vector<1x512xf32> to vector<8x512xf32>
    %323 = arith.mulf %321, %322 : vector<8x512xf32>
    %324 = vector.broadcast %303 : vector<1x512xf32> to vector<8x512xf32>
    %325 = arith.addf %323, %324 : vector<8x512xf32>
    %cst_90 = arith.constant 0.000000e+00 : f32
    %326 = vector.broadcast %cst_90 : f32 to vector<8x512xf32>
    %327 = arith.maximumf %325, %326 : vector<8x512xf32>
    %c1_i32_91 = arith.constant 1 : i32
    %328 = tpu.memref_slice %arg29[%c1_i32_91] : memref<4x!tpu.dma_semaphore, #tpu.memory_space<semaphore_mem>> -> memref<1x!tpu.dma_semaphore, #tpu.memory_space<semaphore_mem>>
    %329 = tpu.memref_squeeze %328 : memref<1x!tpu.dma_semaphore, #tpu.memory_space<semaphore_mem>> -> memref<!tpu.dma_semaphore, #tpu.memory_space<semaphore_mem>>
    tpu.wait_dma2 semaphore(%329 : memref<!tpu.dma_semaphore, #tpu.memory_space<semaphore_mem>>) src(%arg14 : memref<512x512xbf16, #tpu.memory_space<any>>) dst(%arg26 : memref<512x512xbf16, #tpu.memory_space<vmem>>)
    %330 = arith.truncf %327 : vector<8x512xf32> to vector<8x512xbf16>
    %c0_92 = arith.constant 0 : index
    %c0_93 = arith.constant 0 : index
    %331 = vector.load %arg26[%c0_92, %c0_93] : memref<512x512xbf16, #tpu.memory_space<vmem>>, vector<512x512xbf16>
    %cst_94 = arith.constant dense<0.000000e+00> : vector<8x512xf32>
    %332 = tpu.matmul %330, %331, %cst_94 {dimension_numbers = #tpu.dot_dimension_numbers<[1], [0], [0], [1], [0, 0, 1, 1], [], []>} : vector<8x512xbf16>, vector<512x512xbf16>, vector<8x512xf32> -> vector<8x512xf32>
    %c0_95 = arith.constant 0 : index
    %c0_96 = arith.constant 0 : index
    %333 = vector.load %arg15[%c0_95, %c0_96] : memref<1x512xf32, #tpu.memory_space<vmem>>, vector<1x512xf32>
    %334 = vector.broadcast %333 : vector<1x512xf32> to vector<8x512xf32>
    %335 = arith.addf %332, %334 : vector<8x512xf32>
    %c0_97 = arith.constant 0 : index
    %c0_98 = arith.constant 0 : index
    %336 = vector.load %arg16[%c0_97, %c0_98] : memref<1x512xf32, #tpu.memory_space<vmem>>, vector<1x512xf32>
    %c0_99 = arith.constant 0 : index
    %c0_100 = arith.constant 0 : index
    %337 = vector.load %arg17[%c0_99, %c0_100] : memref<1x512xf32, #tpu.memory_space<vmem>>, vector<1x512xf32>
    %cst_101 = arith.constant dense<0.000000e+00> : vector<8xf32>
    %338 = vector.multi_reduction <add>, %335, %cst_101 [1] : vector<8x512xf32> to vector<8xf32>
    %339 = vector.shape_cast %338 : vector<8xf32> to vector<8x1xf32>
    %cst_102 = arith.constant 0.001953125 : f32
    %340 = vector.broadcast %cst_102 : f32 to vector<8x1xf32>
    %341 = arith.mulf %339, %340 : vector<8x1xf32>
    %342 = arith.mulf %335, %335 : vector<8x512xf32>
    %cst_103 = arith.constant dense<0.000000e+00> : vector<8xf32>
    %343 = vector.multi_reduction <add>, %342, %cst_103 [1] : vector<8x512xf32> to vector<8xf32>
    %344 = vector.shape_cast %343 : vector<8xf32> to vector<8x1xf32>
    %cst_104 = arith.constant 0.001953125 : f32
    %345 = vector.broadcast %cst_104 : f32 to vector<8x1xf32>
    %346 = arith.mulf %344, %345 : vector<8x1xf32>
    %347 = arith.mulf %341, %341 : vector<8x1xf32>
    %348 = arith.subf %346, %347 : vector<8x1xf32>
    %349 = vector.broadcast %341 : vector<8x1xf32> to vector<8x512xf32>
    %350 = arith.subf %335, %349 : vector<8x512xf32>
    %cst_105 = arith.constant 9.99999974E-6 : f32
    %351 = vector.broadcast %cst_105 : f32 to vector<8x1xf32>
    %352 = arith.addf %348, %351 : vector<8x1xf32>
    %353 = math.rsqrt %352 : vector<8x1xf32>
    %354 = vector.broadcast %353 : vector<8x1xf32> to vector<8x512xf32>
    %355 = arith.mulf %350, %354 : vector<8x512xf32>
    %356 = vector.broadcast %336 : vector<1x512xf32> to vector<8x512xf32>
    %357 = arith.mulf %355, %356 : vector<8x512xf32>
    %358 = vector.broadcast %337 : vector<1x512xf32> to vector<8x512xf32>
    %359 = arith.addf %357, %358 : vector<8x512xf32>
    %cst_106 = arith.constant 0.000000e+00 : f32
    %360 = vector.broadcast %cst_106 : f32 to vector<8x512xf32>
    %361 = arith.maximumf %359, %360 : vector<8x512xf32>
    %c2_i32_107 = arith.constant 2 : i32
    %362 = tpu.memref_slice %arg29[%c2_i32_107] : memref<4x!tpu.dma_semaphore, #tpu.memory_space<semaphore_mem>> -> memref<1x!tpu.dma_semaphore, #tpu.memory_space<semaphore_mem>>
    %363 = tpu.memref_squeeze %362 : memref<1x!tpu.dma_semaphore, #tpu.memory_space<semaphore_mem>> -> memref<!tpu.dma_semaphore, #tpu.memory_space<semaphore_mem>>
    tpu.wait_dma2 semaphore(%363 : memref<!tpu.dma_semaphore, #tpu.memory_space<semaphore_mem>>) src(%arg18 : memref<512x512xbf16, #tpu.memory_space<any>>) dst(%arg27 : memref<512x512xbf16, #tpu.memory_space<vmem>>)
    %364 = arith.truncf %361 : vector<8x512xf32> to vector<8x512xbf16>
    %c0_108 = arith.constant 0 : index
    %c0_109 = arith.constant 0 : index
    %365 = vector.load %arg27[%c0_108, %c0_109] : memref<512x512xbf16, #tpu.memory_space<vmem>>, vector<512x512xbf16>
    %cst_110 = arith.constant dense<0.000000e+00> : vector<8x512xf32>
    %366 = tpu.matmul %364, %365, %cst_110 {dimension_numbers = #tpu.dot_dimension_numbers<[1], [0], [0], [1], [0, 0, 1, 1], [], []>} : vector<8x512xbf16>, vector<512x512xbf16>, vector<8x512xf32> -> vector<8x512xf32>
    %c0_111 = arith.constant 0 : index
    %c0_112 = arith.constant 0 : index
    %367 = vector.load %arg19[%c0_111, %c0_112] : memref<1x512xf32, #tpu.memory_space<vmem>>, vector<1x512xf32>
    %368 = vector.broadcast %367 : vector<1x512xf32> to vector<8x512xf32>
    %369 = arith.addf %366, %368 : vector<8x512xf32>
    %c0_113 = arith.constant 0 : index
    %c0_114 = arith.constant 0 : index
    %370 = vector.load %arg20[%c0_113, %c0_114] : memref<1x512xf32, #tpu.memory_space<vmem>>, vector<1x512xf32>
    %c0_115 = arith.constant 0 : index
    %c0_116 = arith.constant 0 : index
    %371 = vector.load %arg21[%c0_115, %c0_116] : memref<1x512xf32, #tpu.memory_space<vmem>>, vector<1x512xf32>
    %cst_117 = arith.constant dense<0.000000e+00> : vector<8xf32>
    %372 = vector.multi_reduction <add>, %369, %cst_117 [1] : vector<8x512xf32> to vector<8xf32>
    %373 = vector.shape_cast %372 : vector<8xf32> to vector<8x1xf32>
    %cst_118 = arith.constant 0.001953125 : f32
    %374 = vector.broadcast %cst_118 : f32 to vector<8x1xf32>
    %375 = arith.mulf %373, %374 : vector<8x1xf32>
    %376 = arith.mulf %369, %369 : vector<8x512xf32>
    %cst_119 = arith.constant dense<0.000000e+00> : vector<8xf32>
    %377 = vector.multi_reduction <add>, %376, %cst_119 [1] : vector<8x512xf32> to vector<8xf32>
    %378 = vector.shape_cast %377 : vector<8xf32> to vector<8x1xf32>
    %cst_120 = arith.constant 0.001953125 : f32
    %379 = vector.broadcast %cst_120 : f32 to vector<8x1xf32>
    %380 = arith.mulf %378, %379 : vector<8x1xf32>
    %381 = arith.mulf %375, %375 : vector<8x1xf32>
    %382 = arith.subf %380, %381 : vector<8x1xf32>
    %383 = vector.broadcast %375 : vector<8x1xf32> to vector<8x512xf32>
    %384 = arith.subf %369, %383 : vector<8x512xf32>
    %cst_121 = arith.constant 9.99999974E-6 : f32
    %385 = vector.broadcast %cst_121 : f32 to vector<8x1xf32>
    %386 = arith.addf %382, %385 : vector<8x1xf32>
    %387 = math.rsqrt %386 : vector<8x1xf32>
    %388 = vector.broadcast %387 : vector<8x1xf32> to vector<8x512xf32>
    %389 = arith.mulf %384, %388 : vector<8x512xf32>
    %390 = vector.broadcast %370 : vector<1x512xf32> to vector<8x512xf32>
    %391 = arith.mulf %389, %390 : vector<8x512xf32>
    %392 = vector.broadcast %371 : vector<1x512xf32> to vector<8x512xf32>
    %393 = arith.addf %391, %392 : vector<8x512xf32>
    %cst_122 = arith.constant 0.000000e+00 : f32
    %394 = vector.broadcast %cst_122 : f32 to vector<8x512xf32>
    %395 = arith.maximumf %393, %394 : vector<8x512xf32>
    %c3_i32_123 = arith.constant 3 : i32
    %396 = tpu.memref_slice %arg29[%c3_i32_123] : memref<4x!tpu.dma_semaphore, #tpu.memory_space<semaphore_mem>> -> memref<1x!tpu.dma_semaphore, #tpu.memory_space<semaphore_mem>>
    %397 = tpu.memref_squeeze %396 : memref<1x!tpu.dma_semaphore, #tpu.memory_space<semaphore_mem>> -> memref<!tpu.dma_semaphore, #tpu.memory_space<semaphore_mem>>
    tpu.wait_dma2 semaphore(%397 : memref<!tpu.dma_semaphore, #tpu.memory_space<semaphore_mem>>) src(%arg22 : memref<512x128xbf16, #tpu.memory_space<any>>) dst(%arg28 : memref<512x128xbf16, #tpu.memory_space<vmem>>)
    %398 = arith.truncf %395 : vector<8x512xf32> to vector<8x512xbf16>
    %c0_124 = arith.constant 0 : index
    %c0_125 = arith.constant 0 : index
    %399 = vector.load %arg28[%c0_124, %c0_125] : memref<512x128xbf16, #tpu.memory_space<vmem>>, vector<512x128xbf16>
    %cst_126 = arith.constant dense<0.000000e+00> : vector<8x128xf32>
    %400 = tpu.matmul %398, %399, %cst_126 {dimension_numbers = #tpu.dot_dimension_numbers<[1], [0], [0], [1], [0, 0, 1, 1], [], []>} : vector<8x512xbf16>, vector<512x128xbf16>, vector<8x128xf32> -> vector<8x128xf32>
    %c0_127 = arith.constant 0 : index
    %c0_128 = arith.constant 0 : index
    %401 = vector.load %arg23[%c0_127, %c0_128] : memref<1x128xf32, #tpu.memory_space<vmem>>, vector<1x128xf32>
    %402 = vector.broadcast %401 : vector<1x128xf32> to vector<8x128xf32>
    %403 = arith.addf %400, %402 : vector<8x128xf32>
    %c0_129 = arith.constant 0 : index
    %c0_130 = arith.constant 0 : index
    %404 = vector.load %arg24[%c0_129, %c0_130] : memref<8x128xf32, #tpu.memory_space<vmem>>, vector<8x128xf32>
    tpu.vector_store %arg24[%c0_129, %c0_130], %403 {strides = array<i32>} : memref<8x128xf32, #tpu.memory_space<vmem>>, vector<8x128xf32>,
    return
  }
}

</mosaic_0001>

<bundles_post_ra>
// kernel: model_forward.1
= control target key start
LH: loop header
LB: loop body
LE: loop exit
PB: predicated region body
PF: predicated region fallthrough
CT: control target
= control target key end

     0   :  { %s6849_s0 = inlined_call_operand.vmem [shape: f32[64,256], index: 0, kind: input, shape index: {}]   ;;  %s6850_s1 = inlined_call_operand.vmem [shape: f32[8,384], index: 1, kind: input, shape index: {}]   ;;  %s6851_s2 = inlined_call_operand.hbm [shape: bf16[256,512], index: 2, kind: input, shape index: {}]   ;;  %s6852_s3 = inlined_call_operand.vmem [shape: bf16[128,512], index: 3, kind: input, shape index: {}]   ;;  %s6853_s4 = inlined_call_operand.vmem [shape: f32[1,512], index: 4, kind: input, shape index: {}]   ;;  %s6854_s5 = inlined_call_operand.hbm [shape: bf16[128,512], index: 5, kind: input, shape index: {}]   ;;  %s6855_s6 = inlined_call_operand.hbm [shape: bf16[384,512], index: 6, kind: input, shape index: {}]   ;;  %s6856_s7 = inlined_call_operand.vmem [shape: f32[1,512], index: 7, kind: input, shape index: {}]   ;;  %s6857_s8 = inlined_call_operand.vmem [shape: f32[1,512], index: 8, kind: input, shape index: {}]   ;;  %s6858_s9 = inlined_call_operand.vmem [shape: f32[1,512], index: 9, kind: input, shape index: {}]   ;;  %s6859_s10 = inlined_call_operand.hbm [shape: bf16[512,512], index: 10, kind: input, shape index: {}]   ;;  %s6860_s11 = inlined_call_operand.vmem [shape: f32[1,512], index: 11, kind: input, shape index: {}]   ;;  %s6861_s12 = inlined_call_operand.vmem [shape: f32[1,512], index: 12, kind: input, shape index: {}]   ;;  %s6862_s13 = inlined_call_operand.vmem [shape: f32[1,512], index: 13, kind: input, shape index: {}]   ;;  %s6863_s14 = inlined_call_operand.hbm [shape: bf16[512,512], index: 14, kind: input, shape index: {}]   ;;  %s6864_s15 = inlined_call_operand.hbm [shape: f32[1,512], index: 15, kind: input, shape index: {}]   ;;  %s6865_s16 = inlined_call_operand.hbm [shape: f32[1,512], index: 16, kind: input, shape index: {}]   ;;  %s6866_s17 = inlined_call_operand.hbm [shape: f32[1,512], index: 17, kind: input, shape index: {}]   ;;  %s6867_s18 = inlined_call_operand.hbm [shape: bf16[512,512], index: 18, kind: input, shape index: {}]   ;;  %s6868_s19 = inlined_call_operand.hbm [shape: f32[1,512], index: 19, kind: input, shape index: {}]   ;;  %s6869_s20 = inlined_call_operand.hbm [shape: f32[1,512], index: 20, kind: input, shape index: {}]   ;;  %s6870_s21 = inlined_call_operand.hbm [shape: f32[1,512], index: 21, kind: input, shape index: {}]   ;;  %s6871_s22 = inlined_call_operand.hbm [shape: bf16[512,128], index: 22, kind: input, shape index: {}]   ;;  %s6872_s23 = inlined_call_operand.vmem [shape: f32[1,128], index: 23, kind: input, shape index: {}]   ;;  %s6873_s24 = inlined_call_operand.vmem [shape: f32[8,128], index: 24, kind: output, shape index: {}]  }
   0x1   :  { %6892 = sst [smem:[#allocation65_spill]] %s6849_s0 }
   0x2   :  { %6893 = sst [smem:[#allocation66_spill]] %s6850_s1 }
   0x3   :  { %6894 = sst [smem:[#allocation67_spill]] %s6851_s2 }
   0x4   :  { %6895 = sst [smem:[#allocation68_spill]] %s6852_s3 }
   0x5   :  { %6896 = sst [smem:[#allocation69_spill]] %s6853_s4 }
   0x6   :  { %6897 = sst [smem:[#allocation70_spill]] %s6854_s5 }
   0x7   :  { %6898 = sst [smem:[#allocation71_spill]] %s6855_s6 }
   0x8   :  { %6899 = sst [smem:[#allocation72_spill]] %s6856_s7 }
   0x9   :  { %6900 = sst [smem:[#allocation73_spill]] %s6857_s8 }
   0xa   :  { %29 = vsyncpa [#allocation8], 0 }
   0xb   :  { %30 = vsyncpa [#allocation10], 0 }
   0xc   :  { %31 = vsyncpa [#allocation13], 0 }
   0xd   :  { %32 = vsyncpa [#allocation16], 0 }
   0xe   :  { %33 = vsyncpa [#allocation19], 0  ;;  %s5568_s5 = smov [#allocation9]   ;;  %s5569_s27 = smov [#allocation12]  }
   0xf   :  { %s59_s26 = sshll.u32 %s5568_s5, 4  ;;  %s96_s28 = sshll.u32 %s5569_s27, 4  ;;  %s60_s26 = int_to_ptr.vmem [resolvable:$true] %s59_s26  ;;  %s97_s28 = int_to_ptr.vmem [resolvable:$true] %s96_s28 }
  0x10   :  { %s6901_s29 = sld [smem:[#allocation70_spill]] }
  0x16   :  { %s5330_s0 = scalar_lea.hbm %s6901_s29, 4096 }
  0x17   :  { %p5331_p0 = scmp.ne.s32.totalorder %s6901_s29, %s5330_s0  ;;  %p5334_p1 = scmp.lt.u32.totalorder %s5330_s0, %s6901_s29 }
  0x19   :  { %p5336_p2 = pnand %p5334_p1, %p5331_p0 }
  0x1b   :  { %5339 = shalt.err (!%p5336_p2)
}
  0x1c   :  { %s5340_s8 = scalar_lea.vmem %s60_s26, 4096  ;;  %p5345_p4 = scmp.lt.s32.totalorder %s60_s26, %s60_s26 }
  0x1d   :  { %p5341_p3 = scmp.ne.s32.totalorder %s60_s26, %s5340_s8  ;;  %p5346_p5 = scmp.lt.s32.totalorder %s5340_s8, %s5340_s8 }
  0x1f   :  { %p5347_p6 = por %p5346_p5, %p5345_p4 }
  0x21   :  { %p5348_p7 = pnand %p5347_p6, %p5341_p3 }
  0x23   :  { %5351 = shalt.err (!%p5348_p7)
}
  0x24   :  { %s6880_s4 = smov 256   ;;  %s5571_s1 = smov 16  }
  0x25   :  { %65 = dma.hbm_to_vmem [thread:$0]  %s6901_s29, 4096, %s60_s26, [#allocation10], %s6880_s4, %s6880_s4, %s5571_s1  }
  0x26   :  { %s5352_s0 = scalar_lea.hbm %s6864_s15, 64 }
  0x27   :  { %p5353_p8 = scmp.ne.s32.totalorder %s6864_s15, %s5352_s0  ;;  %p5356_p9 = scmp.lt.u32.totalorder %s5352_s0, %s6864_s15 }
  0x29   :  { %p5358_p10 = pnand %p5356_p9, %p5353_p8 }
  0x2b   :  { %5361 = shalt.err (!%p5358_p10)
}
  0x2c   :  { %s5362_s8 = scalar_lea.vmem %s97_s28, 64  ;;  %p5367_p12 = scmp.lt.s32.totalorder %s97_s28, %s97_s28 }
  0x2d   :  { %p5363_p11 = scmp.ne.s32.totalorder %s97_s28, %s5362_s8  ;;  %p5368_p13 = scmp.lt.s32.totalorder %s5362_s8, %s5362_s8 }
  0x2f   :  { %p5369_p0 = por %p5368_p13, %p5367_p12 }
  0x31   :  { %p5370_p1 = pnand %p5369_p0, %p5363_p11 }
  0x33   :  { %5373 = shalt.err (!%p5370_p1)
}
  0x34   :  { %99 = dma.hbm_to_vmem [thread:$0]  %s6864_s15, 64, %s97_s28, [#allocation13]  }
  0x35   :  { %s5572_s5 = smov [#allocation15]   ;;  %s5573_s6 = smov [#allocation18]  }
  0x36   :  { %s116_s27 = sshll.u32 %s5572_s5, 4  ;;  %s136_s2 = sshll.u32 %s5573_s6, 4  ;;  %s117_s27 = int_to_ptr.vmem [resolvable:$true] %s116_s27  ;;  %s137_s2 = int_to_ptr.vmem [resolvable:$true] %s136_s2 }
  0x37   :  { %s5374_s30 = scalar_lea.hbm %s6866_s17, 64 }
  0x38   :  { %p5375_p2 = scmp.ne.s32.totalorder %s6866_s17, %s5374_s30  ;;  %p5378_p3 = scmp.lt.u32.totalorder %s5374_s30, %s6866_s17 }
  0x3a   :  { %p5380_p4 = pnand %p5378_p3, %p5375_p2 }
  0x3c   :  { %5383 = shalt.err (!%p5380_p4)
}
  0x3d   :  { %s5384_s15 = scalar_lea.vmem %s117_s27, 64  ;;  %p5389_p6 = scmp.lt.s32.totalorder %s117_s27, %s117_s27 }
  0x3e   :  { %p5385_p5 = scmp.ne.s32.totalorder %s117_s27, %s5384_s15  ;;  %p5390_p7 = scmp.lt.s32.totalorder %s5384_s15, %s5384_s15 }
  0x40   :  { %p5391_p8 = por %p5390_p7, %p5389_p6 }
  0x42   :  { %p5392_p9 = pnand %p5391_p8, %p5385_p5 }
  0x44   :  { %5395 = shalt.err (!%p5392_p9)
}
  0x45   :  { %119 = dma.hbm_to_vmem [thread:$0]  %s6866_s17, 64, %s117_s27, [#allocation16]  }
  0x46   :  { %s5396_s6 = scalar_lea.hbm %s6869_s20, 64 }
  0x47   :  { %p5397_p10 = scmp.ne.s32.totalorder %s6869_s20, %s5396_s6  ;;  %p5400_p11 = scmp.lt.u32.totalorder %s5396_s6, %s6869_s20 }
  0x49   :  { %p5402_p12 = pnand %p5400_p11, %p5397_p10 }
  0x4b   :  { %5405 = shalt.err (!%p5402_p12)
}
  0x4c   :  { %s5406_s3 = scalar_lea.vmem %s137_s2, 64  ;;  %p5411_p0 = scmp.lt.s32.totalorder %s137_s2, %s137_s2 }
  0x4d   :  { %p5407_p13 = scmp.ne.s32.totalorder %s137_s2, %s5406_s3  ;;  %p5412_p1 = scmp.lt.s32.totalorder %s5406_s3, %s5406_s3 }
  0x4f   :  { %p5413_p2 = por %p5412_p1, %p5411_p0 }
  0x51   :  { %p5414_p3 = pnand %p5413_p2, %p5407_p13 }
  0x53   :  { %5417 = shalt.err (!%p5414_p3)
}
  0x54   :  { %139 = dma.hbm_to_vmem [thread:$0]  %s6869_s20, 64, %s137_s2, [#allocation19]  }
  0x55   :  { %s5574_s25 = smov [#allocation7]   ;;  %s5575_s15 = smov [#allocation11]  }
  0x56   :  { %s43_s8 = sshll.u32 %s5574_s25, 4  ;;  %s71_s28 = sshll.u32 %s5575_s15, 4  ;;  %s44_s8 = int_to_ptr.vmem [resolvable:$true] %s43_s8  ;;  %s5771_s28 = int_to_ptr.vmem [resolvable:$true] %s71_s28 }
  0x57   :  { %s6902_s5 = sld [smem:[#allocation67_spill]] }
  0x5d   :  { %s5418_s6 = scalar_lea.hbm %s6902_s5, 8192 }
  0x5e   :  { %p5419_p4 = scmp.ne.s32.totalorder %s6902_s5, %s5418_s6  ;;  %p5422_p5 = scmp.lt.u32.totalorder %s5418_s6, %s6902_s5 }
  0x60   :  { %p5424_p6 = pnand %p5422_p5, %p5419_p4 }
  0x62   :  { %5427 = shalt.err (!%p5424_p6)
}
  0x63   :  { %s5428_s20 = scalar_lea.vmem %s44_s8, 8192  ;;  %p5433_p8 = scmp.lt.s32.totalorder %s44_s8, %s44_s8 }
  0x64   :  { %p5429_p7 = scmp.ne.s32.totalorder %s44_s8, %s5428_s20  ;;  %p5434_p9 = scmp.lt.s32.totalorder %s5428_s20, %s5428_s20 }
  0x66   :  { %p5435_p10 = por %p5434_p9, %p5433_p8 }
  0x68   :  { %p5436_p11 = pnand %p5435_p10, %p5429_p7 }
  0x6a   :  { %5439 = shalt.err (!%p5436_p11)
}
  0x6b   :  { %s6903_s2 = smov 256   ;;  %s6904_s15 = sld [smem:[#allocation71_spill]] }
  0x6c   :  { %49 = dma.hbm_to_vmem [thread:$0]  %s6902_s5, 8192, %s44_s8, [#allocation8], %s6903_s2, %s6903_s2, %s5571_s1  }
  0x71   :  { %s5440_s26 = scalar_lea.hbm %s6904_s15, 12288 }
  0x72   :  { %p5441_p12 = scmp.ne.s32.totalorder %s6904_s15, %s5440_s26  ;;  %p5444_p13 = scmp.lt.u32.totalorder %s5440_s26, %s6904_s15 }
  0x74   :  { %p5446_p0 = pnand %p5444_p13, %p5441_p12 }
  0x76   :  { %5449 = shalt.err (!%p5446_p0)
}
  0x77   :  { %s5450_s7 = scalar_lea.vmem %s5771_s28, 12288  ;;  %p5455_p2 = scmp.lt.s32.totalorder %s5771_s28, %s5771_s28 }
  0x78   :  { %p5451_p1 = scmp.ne.s32.totalorder %s5771_s28, %s5450_s7  ;;  %p5456_p3 = scmp.lt.s32.totalorder %s5450_s7, %s5450_s7 }
  0x7a   :  { %p5457_p4 = por %p5456_p3, %p5455_p2 }
  0x7c   :  { %p5458_p5 = pnand %p5457_p4, %p5451_p1 }
  0x7e   :  { %5461 = shalt.err (!%p5458_p5)
}
  0x7f   :  { %77 = dma.hbm_to_vmem [thread:$0]  %s6904_s15, 12288, %s5771_s28, [#allocation10], %s6903_s2, %s6903_s2, %s5571_s1  }
  0x80   :  { %s5576_s30 = smov [#allocation14]   ;;  %s5577_s3 = smov [#allocation17]  }
  0x81   :  { %s106_s20 = sshll.u32 %s5576_s30, 4  ;;  %s126_s17 = sshll.u32 %s5577_s3, 4  ;;  %s107_s20 = int_to_ptr.vmem [resolvable:$true] %s106_s20  ;;  %s127_s17 = int_to_ptr.vmem [resolvable:$true] %s126_s17 }
  0x82   :  { %s5462_s26 = scalar_lea.hbm %s6865_s16, 64 }
  0x83   :  { %p5463_p6 = scmp.ne.s32.totalorder %s6865_s16, %s5462_s26  ;;  %p5466_p7 = scmp.lt.u32.totalorder %s5462_s26, %s6865_s16 }
  0x85   :  { %p5468_p8 = pnand %p5466_p7, %p5463_p6 }
  0x87   :  { %5471 = shalt.err (!%p5468_p8)
}
  0x88   :  { %s5472_s1 = scalar_lea.vmem %s107_s20, 64  ;;  %p5477_p10 = scmp.lt.s32.totalorder %s107_s20, %s107_s20 }
  0x89   :  { %p5473_p9 = scmp.ne.s32.totalorder %s107_s20, %s5472_s1  ;;  %p5478_p11 = scmp.lt.s32.totalorder %s5472_s1, %s5472_s1 }
  0x8b   :  { %p5479_p12 = por %p5478_p11, %p5477_p10 }
  0x8d   :  { %p5480_p13 = pnand %p5479_p12, %p5473_p9 }
  0x8f   :  { %5483 = shalt.err (!%p5480_p13)
}
  0x90   :  { %109 = dma.hbm_to_vmem [thread:$0]  %s6865_s16, 64, %s107_s20, [#allocation13]  }
  0x91   :  { %s5484_s5 = scalar_lea.hbm %s6868_s19, 64 }
  0x92   :  { %p5485_p0 = scmp.ne.s32.totalorder %s6868_s19, %s5484_s5  ;;  %p5488_p1 = scmp.lt.u32.totalorder %s5484_s5, %s6868_s19 }
  0x94   :  { %p5490_p2 = pnand %p5488_p1, %p5485_p0 }
  0x96   :  { %5493 = shalt.err (!%p5490_p2)
}
  0x97   :  { %s5494_s26 = scalar_lea.vmem %s127_s17, 64  ;;  %p5499_p4 = scmp.lt.s32.totalorder %s127_s17, %s127_s17 }
  0x98   :  { %p5495_p3 = scmp.ne.s32.totalorder %s127_s17, %s5494_s26  ;;  %p5500_p5 = scmp.lt.s32.totalorder %s5494_s26, %s5494_s26 }
  0x9a   :  { %p5501_p6 = por %p5500_p5, %p5499_p4 }
  0x9c   :  { %p5502_p7 = pnand %p5501_p6, %p5495_p3 }
  0x9e   :  { %5505 = shalt.err (!%p5502_p7)
}
  0x9f   :  { %129 = dma.hbm_to_vmem [thread:$0]  %s6868_s19, 64, %s127_s17, [#allocation16]  }
  0xa0   :  { %s5578_s29 = smov [#allocation20]   ;;  %s5506_s1 = scalar_lea.hbm %s6870_s21, 64 }
  0xa1   :  { %s146_s6 = sshll.u32 %s5578_s29, 4  ;;  %p5507_p8 = scmp.ne.s32.totalorder %s6870_s21, %s5506_s1  ;;  %s147_s6 = int_to_ptr.vmem [resolvable:$true] %s146_s6 }
  0xa2   :  { %p5510_p9 = scmp.lt.u32.totalorder %s5506_s1, %s6870_s21 }
  0xa4   :  { %p5512_p10 = pnand %p5510_p9, %p5507_p8 }
  0xa6   :  { %5515 = shalt.err (!%p5512_p10)
}
  0xa7   :  { %s5516_s5 = scalar_lea.vmem %s147_s6, 64  ;;  %p5521_p12 = scmp.lt.s32.totalorder %s147_s6, %s147_s6 }
  0xa8   :  { %p5517_p11 = scmp.ne.s32.totalorder %s147_s6, %s5516_s5  ;;  %p5522_p13 = scmp.lt.s32.totalorder %s5516_s5, %s5516_s5 }
  0xaa   :  { %p5523_p0 = por %p5522_p13, %p5521_p12 }
  0xac   :  { %p5524_p1 = pnand %p5523_p0, %p5517_p11 }
  0xae   :  { %5527 = shalt.err (!%p5524_p1)
}
  0xaf   :  { %149 = dma.hbm_to_vmem [thread:$0]  %s6870_s21, 64, %s147_s6, [#allocation19]  }
  0xb0   :  { %5550 = dma.done.wait [#allocation8], 8192  }
  0xb1   :  { %5551 = vsyncadd [#allocation8], 4294959104 }
  0xb2   :  { %5552 = dma.done.wait [#allocation10], 16384  }
  0xb3   :  { %5553 = vsyncadd [#allocation10], 4294950912 }
  0xb4   :  { %5554 = dma.done.wait [#allocation13], 128  }
  0xb5   :  { %5555 = vsyncadd [#allocation13], 4294967168 }
  0xb6   :  { %5556 = dma.done.wait [#allocation16], 128  }
  0xb7   :  { %5557 = vsyncadd [#allocation16], 4294967168 }
  0xb8   :  { %5558 = dma.done.wait [#allocation19], 128  }
  0xb9   :  { %5559 = vsyncadd [#allocation19], 4294967168  ;;  %s184_s30 = sld [smem:[#allocation0]]   ;;  %s5579_s3 = smov 512  }
  0xba   :  { %196 = sst [smem:[#allocation22]] %s5579_s3  ;;  %s5580_s27 = smov 4  }
  0xbb   :  { %198 = sst [smem:[#allocation22 + $0x1]] %s5579_s3  ;;  %s5581_s21 = smov 64  }
  0xbc   :  { %200 = sst [smem:[#allocation22 + $0x2]] %s5580_s27  ;;  %s5582_s25 = smov [#allocation2]  }
  0xbd   :  { %202 = sst [smem:[#allocation22 + $0x3]] %s5581_s21  ;;  %s192_s26 = sshll.u32 %s5582_s25, 4  ;;  %s193_s26 = int_to_ptr.vmem [resolvable:$true] %s192_s26 }
  0xbe   :  { %208 = sst [smem:[#allocation22 + $0x6]] %s6903_s2  ;;  %s5583_s29 = smov 128  }
  0xbf   :  { %210 = sst [smem:[#allocation22 + $0x7]] %s5581_s21  ;;  %s4460_s16 = sshll.u32 %s184_s30, 26 }
  0xc0   :  { %212 = sst [smem:[#allocation22 + $0x8]] %s5580_s27  ;;  %s5851_s20 = sadd.s32 134217728, %s4460_s16 }
  0xc1   :  { %204 = sst [smem:[#allocation22 + $0x4]] %s5583_s29  ;;  %s5584_s6 = smov 2  }
  0xc2   :  { %206 = sst [smem:[#allocation22 + $0x5]] %s5584_s6  ;;  %s5585_s0 = smov [#allocation6]  }
  0xc3   :  { %s5586_s4 = smov [#allocation21]   ;;  %s5587_s15 = smov [#allocation3]  }
  0xc4   :  { %214 = dma.general %s6859_s10, 16384, %s193_s26, %s5585_s0, %s5586_s4, [#allocation22], %s5851_s20, 0  }
  0xc5   :  { %231 = sst [smem:[#allocation24]] %s5579_s3  ;;  %s227_s7 = sshll.u32 %s5587_s15, 4  ;;  %s228_s7 = int_to_ptr.vmem [resolvable:$true] %s227_s7 }
  0xc6   :  { %233 = sst [smem:[#allocation24 + $0x1]] %s5579_s3  ;;  %s5588_s10 = smov [#allocation6 + $0x1]  }
  0xc7   :  { %235 = sst [smem:[#allocation24 + $0x2]] %s5580_s27  ;;  %s5589_s8 = smov [#allocation23]  }
  0xc8   :  { %237 = sst [smem:[#allocation24 + $0x3]] %s5581_s21  ;;  %s5590_s17 = smov [#allocation4]  }
  0xc9   :  { %239 = sst [smem:[#allocation24 + $0x4]] %s5583_s29  ;;  %s262_s30 = sshll.u32 %s5590_s17, 4  ;;  %s263_s30 = int_to_ptr.vmem [resolvable:$true] %s262_s30 }
  0xca   :  { %241 = sst [smem:[#allocation24 + $0x5]] %s5584_s6  ;;  %s5592_s25 = smov [#allocation25]  }
  0xcb   :  { %243 = sst [smem:[#allocation24 + $0x6]] %s6903_s2  ;;  %s5594_s5 = smov [#allocation5]  }
  0xcc   :  { %245 = sst [smem:[#allocation24 + $0x7]] %s5581_s21  ;;  %s293_s19 = sshll.u32 %s5594_s5, 4  ;;  %s294_s19 = int_to_ptr.vmem [resolvable:$true] %s293_s19 }
  0xcd   :  { %247 = sst [smem:[#allocation24 + $0x8]] %s5580_s27 }
  0xce   :  { %249 = dma.general %s6863_s14, 16384, %s228_s7, %s5588_s10, %s5589_s8, [#allocation24], %s5851_s20, 0  }
  0xcf   :  { %266 = sst [smem:[#allocation26]] %s5579_s3  ;;  %s5591_s14 = smov [#allocation6 + $0x2]  }
  0xd0   :  { %268 = sst [smem:[#allocation26 + $0x1]] %s5579_s3 }
  0xd1   :  { %270 = sst [smem:[#allocation26 + $0x2]] %s5580_s27 }
  0xd2   :  { %272 = sst [smem:[#allocation26 + $0x3]] %s5581_s21 }
  0xd3   :  { %274 = sst [smem:[#allocation26 + $0x4]] %s5583_s29 }
  0xd4   :  { %276 = sst [smem:[#allocation26 + $0x5]] %s5584_s6 }
  0xd5   :  { %278 = sst [smem:[#allocation26 + $0x6]] %s6903_s2 }
  0xd6   :  { %280 = sst [smem:[#allocation26 + $0x7]] %s5581_s21 }
  0xd7   :  { %282 = sst [smem:[#allocation26 + $0x8]] %s5580_s27 }
  0xd8   :  { %284 = dma.general %s6867_s18, 16384, %s263_s30, %s5591_s14, %s5592_s25, [#allocation26], %s5851_s20, 0  }
  0xd9   :  { %v4826_v0 = vld [vmem:[#allocation7 + $0x4] ss:$16 sps:$4 sm:$0xff]   ;;  %v4828_v1 = vld [vmem:[#allocation7 + $0xc] ss:$16 sps:$4 sm:$0xff]   ;;  %v4830_v2 = vld [vmem:[#allocation7] ss:$16 sps:$4 sm:$0xff]  }
  0xda   :  { %727 = vmatprep.subr.bf16.mxu0 %v4826_v0  ;;  %v4831_v3 = vld [vmem:[#allocation7 + $0x8] ss:$16 sps:$4 sm:$0xff]   ;;  %800 = vmatprep.subr.bf16.mxu1 %v4828_v1  ;;  %v4832_v4 = vld [vmem:[#allocation7 + $0x24] ss:$16 sps:$4 sm:$0xff]   ;;  %v4834_v5 = vld [vmem:[#allocation7 + $0x2c] ss:$16 sps:$4 sm:$0xff]  }
  0xdb   :  { %728 = vmatpush1.bf16.msra.mxu0 %v4830_v2  ;;  %801 = vmatpush1.bf16.msra.mxu1 %v4831_v3  ;;  %v4836_v6 = vld [vmem:[#allocation7 + $0x20] ss:$16 sps:$4 sm:$0xff]   ;;  %v4837_v7 = vld [vmem:[#allocation7 + $0x28] ss:$16 sps:$4 sm:$0xff]   ;;  %v4838_v8 = vld [vmem:[#allocation7 + $0x44] ss:$16 sps:$4 sm:$0xff]  }
  0xdc   :  { %729 = vmatprep.subr.bf16.mxu0 %v4832_v4  ;;  %802 = vmatprep.subr.bf16.mxu1 %v4834_v5  ;;  %v4840_v9 = vld [vmem:[#allocation7 + $0x4c] ss:$16 sps:$4 sm:$0xff]   ;;  %v4842_v10 = vld [vmem:[#allocation7 + $0x40] ss:$16 sps:$4 sm:$0xff]   ;;  %v4843_v11 = vld [vmem:[#allocation7 + $0x48] ss:$16 sps:$4 sm:$0xff]  }
  0xdd   :  { %v4844_v12 = vld [vmem:[#allocation7 + $0x64] ss:$16 sps:$4 sm:$0xff]   ;;  %v4846_v13 = vld [vmem:[#allocation7 + $0x6c] ss:$16 sps:$4 sm:$0xff]   ;;  %v4848_v14 = vld [vmem:[#allocation7 + $0x60] ss:$16 sps:$4 sm:$0xff]  }
  0xde   :  { %v4849_v15 = vld [vmem:[#allocation7 + $0x68] ss:$16 sps:$4 sm:$0xff]   ;;  %v4850_v16 = vld [vmem:[#allocation7 + $0x84] ss:$16 sps:$4 sm:$0xff]   ;;  %v4852_v17 = vld [vmem:[#allocation7 + $0x8c] ss:$16 sps:$4 sm:$0xff]  }
  0xdf   :  { %730 = vmatpush1.bf16.msra.mxu0 %v4836_v6  ;;  %803 = vmatpush1.bf16.msra.mxu1 %v4837_v7  ;;  %v4854_v18 = vld [vmem:[#allocation7 + $0x80] ss:$16 sps:$4 sm:$0xff]   ;;  %v4855_v19 = vld [vmem:[#allocation7 + $0x88] ss:$16 sps:$4 sm:$0xff]   ;;  %v4856_v20 = vld [vmem:[#allocation7 + $0xa4] ss:$16 sps:$4 sm:$0xff]  }
  0xe0   :  { %731 = vmatprep.subr.bf16.mxu0 %v4838_v8  ;;  %804 = vmatprep.subr.bf16.mxu1 %v4840_v9  ;;  %v4858_v21 = vld [vmem:[#allocation7 + $0xac] ss:$16 sps:$4 sm:$0xff]   ;;  %v4860_v22 = vld [vmem:[#allocation7 + $0xa0] ss:$16 sps:$4 sm:$0xff]   ;;  %v4861_v23 = vld [vmem:[#allocation7 + $0xa8] ss:$16 sps:$4 sm:$0xff]  }
  0xe1   :  { %v4862_v24 = vld [vmem:[#allocation7 + $0xc4] ss:$16 sps:$4 sm:$0xff]   ;;  %v4864_v25 = vld [vmem:[#allocation7 + $0xcc] ss:$16 sps:$4 sm:$0xff]   ;;  %v4866_v26 = vld [vmem:[#allocation7 + $0xc0] ss:$16 sps:$4 sm:$0xff]  }
  0xe2   :  { %v4867_v27 = vld [vmem:[#allocation7 + $0xc8] ss:$16 sps:$4 sm:$0xff]   ;;  %v4868_v28 = vld [vmem:[#allocation7 + $0xe4] ss:$16 sps:$4 sm:$0xff]   ;;  %v4870_v29 = vld [vmem:[#allocation7 + $0xec] ss:$16 sps:$4 sm:$0xff]  }
  0xe3   :  { %732 = vmatpush1.bf16.msra.mxu0 %v4842_v10  ;;  %805 = vmatpush1.bf16.msra.mxu1 %v4843_v11  ;;  %v4872_v30 = vld [vmem:[#allocation7 + $0xe0] ss:$16 sps:$4 sm:$0xff]   ;;  %v4873_v31 = vld [vmem:[#allocation7 + $0xe8] ss:$16 sps:$4 sm:$0xff]   ;;  %v4874_v32 = vld [vmem:[#allocation7 + $0x104] ss:$16 sps:$4 sm:$0xff]  }
  0xe4   :  { %733 = vmatprep.subr.bf16.mxu0 %v4844_v12  ;;  %806 = vmatprep.subr.bf16.mxu1 %v4846_v13  ;;  %v4876_v33 = vld [vmem:[#allocation7 + $0x10c] ss:$16 sps:$4 sm:$0xff]   ;;  %v4878_v34 = vld [vmem:[#allocation7 + $0x100] ss:$16 sps:$4 sm:$0xff]   ;;  %v4879_v35 = vld [vmem:[#allocation7 + $0x108] ss:$16 sps:$4 sm:$0xff]  }
  0xe5   :  { %v4880_v36 = vld [vmem:[#allocation7 + $0x124] ss:$16 sps:$4 sm:$0xff]   ;;  %v4882_v37 = vld [vmem:[#allocation7 + $0x12c] ss:$16 sps:$4 sm:$0xff]   ;;  %v4884_v38 = vld [vmem:[#allocation7 + $0x120] ss:$16 sps:$4 sm:$0xff]  }
  0xe6   :  { %v4885_v39 = vld [vmem:[#allocation7 + $0x128] ss:$16 sps:$4 sm:$0xff]   ;;  %v4886_v40 = vld [vmem:[#allocation7 + $0x144] ss:$16 sps:$4 sm:$0xff]   ;;  %v4888_v41 = vld [vmem:[#allocation7 + $0x14c] ss:$16 sps:$4 sm:$0xff]  }
  0xe7   :  { %734 = vmatpush1.bf16.msra.mxu0 %v4848_v14  ;;  %807 = vmatpush1.bf16.msra.mxu1 %v4849_v15  ;;  %v4890_v42 = vld [vmem:[#allocation7 + $0x140] ss:$16 sps:$4 sm:$0xff]   ;;  %v4891_v43 = vld [vmem:[#allocation7 + $0x148] ss:$16 sps:$4 sm:$0xff]   ;;  %v4892_v44 = vld [vmem:[#allocation7 + $0x164] ss:$16 sps:$4 sm:$0xff]  }
  0xe8   :  { %735 = vmatprep.subr.bf16.mxu0 %v4850_v16  ;;  %808 = vmatprep.subr.bf16.mxu1 %v4852_v17  ;;  %v4894_v45 = vld [vmem:[#allocation7 + $0x16c] ss:$16 sps:$4 sm:$0xff]   ;;  %s6905_s3 = sld [smem:[#allocation65_spill]]  ;;  %v4896_v47 = vld [vmem:[#allocation7 + $0x160] ss:$16 sps:$4 sm:$0xff]   ;;  %s6906_s28 = sld [smem:[#allocation68_spill]] }
  0xe9   :  { %v4897_v48 = vld [vmem:[#allocation7 + $0x168] ss:$16 sps:$4 sm:$0xff]   ;;  %v4898_v50 = vld [vmem:[#allocation7 + $0x184] ss:$16 sps:$4 sm:$0xff]   ;;  %v4900_v52 = vld [vmem:[#allocation7 + $0x18c] ss:$16 sps:$4 sm:$0xff]  }
  0xea   :  { %v4902_v53 = vld [vmem:[#allocation7 + $0x180] ss:$16 sps:$4 sm:$0xff]   ;;  %v4903_v54 = vld [vmem:[#allocation7 + $0x188] ss:$16 sps:$4 sm:$0xff]   ;;  %v4904_v55 = vld [vmem:[#allocation7 + $0x1a4] ss:$16 sps:$4 sm:$0xff]  }
  0xeb   :  { %736 = vmatpush1.bf16.msra.mxu0 %v4854_v18  ;;  %809 = vmatpush1.bf16.msra.mxu1 %v4855_v19  ;;  %v4906_v56 = vld [vmem:[#allocation7 + $0x1ac] ss:$16 sps:$4 sm:$0xff]   ;;  %v4908_v57 = vld [vmem:[#allocation7 + $0x1a0] ss:$16 sps:$4 sm:$0xff]   ;;  %v4909_v58 = vld [vmem:[#allocation7 + $0x1a8] ss:$16 sps:$4 sm:$0xff]  }
  0xec   :  { %737 = vmatprep.subr.bf16.mxu0 %v4856_v20  ;;  %810 = vmatprep.subr.bf16.mxu1 %v4858_v21  ;;  %v4910_v59 = vld [vmem:[#allocation7 + $0x1c4] ss:$16 sps:$4 sm:$0xff]   ;;  %v4912_v60 = vld [vmem:[#allocation7 + $0x1cc] ss:$16 sps:$4 sm:$0xff]   ;;  %v4914_v61 = vld [vmem:[#allocation7 + $0x1c0] ss:$16 sps:$4 sm:$0xff]  }
  0xed   :  { %v4915_v62 = vld [vmem:[#allocation7 + $0x1c8] ss:$16 sps:$4 sm:$0xff]   ;;  %v4916_v63 = vld [vmem:[#allocation7 + $0x1e4] ss:$16 sps:$4 sm:$0xff]   ;;  %v4918_v0 = vld [vmem:[#allocation7 + $0x1ec] ss:$16 sps:$4 sm:$0xff]  }
  0xee   :  { %v298_v46 = vld [vmem:[%s6905_s3 + $0x8] sm:$0xff]  ;;  %v300_v49 = vld [vmem:[%s6905_s3 + $0x18] sm:$0xff]  ;;  %v4920_v1 = vld [vmem:[#allocation7 + $0x1e0] ss:$16 sps:$4 sm:$0xff]   ;;  %s6910_s1 = sld [smem:[#allocation69_spill]]  ;;  %s6951_s6 = sld [smem:[#allocation66_spill]] }
  0xef   :  { %738 = vmatpush1.bf16.msra.mxu0 %v4860_v22  ;;  %811 = vmatpush1.bf16.msra.mxu1 %v4861_v23  ;;  %v314_v51 = vpack.c.bf16 %v300_v49, %v298_v46  ;;  %v4921_v2 = vld [vmem:[#allocation7 + $0x1e8] ss:$16 sps:$4 sm:$0xff]   ;;  %v297_v3 = vld [vmem:[%s6905_s3] sm:$0xff]  ;;  %v299_v4 = vld [vmem:[%s6905_s3 + $0x10] sm:$0xff]  ;;  %s6956_s8 = sld [smem:[#allocation72_spill]] }
  0xf0   :  { %739 = vmatprep.subr.bf16.mxu0 %v4862_v24  ;;  %812 = vmatprep.subr.bf16.mxu1 %v4864_v25  ;;  %v5894_v5 = vld [vmem:[%s6906_s28 + $0x4] ss:$16 sps:$4 sm:$0xff]   ;;  %v5899_v6 = vld [vmem:[%s6906_s28 + $0xc] ss:$16 sps:$4 sm:$0xff]   ;;  %v5904_v7 = vld [vmem:[%s6906_s28] ss:$16 sps:$4 sm:$0xff]   ;;  %v313_v8 = vpack.c.bf16 %v299_v4, %v297_v3 }
  0xf1   :  { %759 = vmatprep.mubr.bf16.mxu0 %v314_v51  ;;  %832 = vmatprep.mubr.bf16.mxu1 %v314_v51  ;;  %v5909_v9 = vld [vmem:[%s6906_s28 + $0x8] ss:$16 sps:$4 sm:$0xff]   ;;  %v5920_v12 = vld [vmem:[%s6906_s28 + $0x24] ss:$16 sps:$4 sm:$0xff]   ;;  %v5927_v13 = vld [vmem:[%s6906_s28 + $0x2c] ss:$16 sps:$4 sm:$0xff]  }
  0xf2   :  { %v302_v10 = vld [vmem:[%s6905_s3 + $0x28] sm:$0xff]  ;;  %v304_v11 = vld [vmem:[%s6905_s3 + $0x38] sm:$0xff]  ;;  %v5932_v14 = vld [vmem:[%s6906_s28 + $0x20] ss:$16 sps:$4 sm:$0xff]  }
  0xf3   :  { %740 = vmatpush1.bf16.msra.mxu0 %v4866_v26  ;;  %813 = vmatpush1.bf16.msra.mxu1 %v4867_v27  ;;  %v5937_v15 = vld [vmem:[%s6906_s28 + $0x28] ss:$16 sps:$4 sm:$0xff]   ;;  %v316_v16 = vpack.c.bf16 %v304_v11, %v302_v10  ;;  %v301_v17 = vld [vmem:[%s6905_s3 + $0x20] sm:$0xff]  ;;  %v303_v18 = vld [vmem:[%s6905_s3 + $0x30] sm:$0xff] }
  0xf4   :  { %741 = vmatprep.subr.bf16.mxu0 %v4868_v28  ;;  %814 = vmatprep.subr.bf16.mxu1 %v4870_v29  ;;  %v5950_v19 = vld [vmem:[%s6906_s28 + $0x44] ss:$16 sps:$4 sm:$0xff]   ;;  %v5955_v20 = vld [vmem:[%s6906_s28 + $0x4c] ss:$16 sps:$4 sm:$0xff]   ;;  %v5968_v23 = vld [vmem:[%s6906_s28 + $0x40] ss:$16 sps:$4 sm:$0xff]   ;;  %v315_v25 = vpack.c.bf16 %v303_v18, %v301_v17 }
  0xf5   :  { %v306_v21 = vld [vmem:[%s6905_s3 + $0x48] sm:$0xff]  ;;  %v308_v22 = vld [vmem:[%s6905_s3 + $0x58] sm:$0xff]  ;;  %v5978_v26 = vld [vmem:[%s6906_s28 + $0x64] ss:$16 sps:$4 sm:$0xff]  }
  0xf6   :  { %v5973_v24 = vld [vmem:[%s6906_s28 + $0x48] ss:$16 sps:$4 sm:$0xff]   ;;  %v5983_v27 = vld [vmem:[%s6906_s28 + $0x6c] ss:$16 sps:$4 sm:$0xff]   ;;  %v5992_v28 = vld [vmem:[%s6906_s28 + $0x60] ss:$16 sps:$4 sm:$0xff]  }
  0xf7   :  { %742 = vmatpush1.bf16.msra.mxu0 %v4872_v30  ;;  %815 = vmatpush1.bf16.msra.mxu1 %v4873_v31  ;;  %v5997_v29 = vld [vmem:[%s6906_s28 + $0x68] ss:$16 sps:$4 sm:$0xff]   ;;  %v318_v30 = vpack.c.bf16 %v308_v22, %v306_v21  ;;  %v305_v31 = vld [vmem:[%s6905_s3 + $0x40] sm:$0xff]  ;;  %v311_v46 = vld [vmem:[%s6905_s3 + $0x70] sm:$0xff] }
  0xf8   :  { %743 = vmatprep.subr.bf16.mxu0 %v4874_v32  ;;  %816 = vmatprep.subr.bf16.mxu1 %v4876_v33  ;;  %v307_v32 = vld [vmem:[%s6905_s3 + $0x50] sm:$0xff] }
  0xf9   :  { %v6008_v33 = vld [vmem:[%s6906_s28 + $0x84] ss:$16 sps:$4 sm:$0xff]   ;;  %v6082_v49 = vld [vmem:[%s6906_s28 + $0xc0] ss:$16 sps:$4 sm:$0xff]  }
  0xfb   :  { %744 = vmatpush1.bf16.msra.mxu0 %v4878_v34  ;;  %817 = vmatpush1.bf16.msra.mxu1 %v4879_v35  ;;  %v6013_v34 = vld [vmem:[%s6906_s28 + $0x8c] ss:$16 sps:$4 sm:$0xff]  }
  0xfc   :  { %745 = vmatprep.subr.bf16.mxu0 %v4880_v36  ;;  %818 = vmatprep.subr.bf16.mxu1 %v4882_v37  ;;  %v310_v35 = vld [vmem:[%s6905_s3 + $0x68] sm:$0xff]  ;;  %v312_v36 = vld [vmem:[%s6905_s3 + $0x78] sm:$0xff]  ;;  %v6028_v37 = vld [vmem:[%s6906_s28 + $0x80] ss:$16 sps:$4 sm:$0xff]  }
  0xff   :  { %746 = vmatpush1.bf16.msra.mxu0 %v4884_v38  ;;  %819 = vmatpush1.bf16.msra.mxu1 %v4885_v39  ;;  %v6033_v38 = vld [vmem:[%s6906_s28 + $0x88] ss:$16 sps:$4 sm:$0xff]   ;;  %v317_v39 = vpack.c.bf16 %v307_v32, %v305_v31 }
 0x100   :  { %747 = vmatprep.subr.bf16.mxu0 %v4886_v40  ;;  %820 = vmatprep.subr.bf16.mxu1 %v4888_v41  ;;  %v6038_v40 = vld [vmem:[%s6906_s28 + $0xa4] ss:$16 sps:$4 sm:$0xff]   ;;  %v6043_v41 = vld [vmem:[%s6906_s28 + $0xac] ss:$16 sps:$4 sm:$0xff]  }
 0x103   :  { %748 = vmatpush1.bf16.msra.mxu0 %v4890_v42  ;;  %821 = vmatpush1.bf16.msra.mxu1 %v4891_v43  ;;  %v6052_v42 = vld [vmem:[%s6906_s28 + $0xa0] ss:$16 sps:$4 sm:$0xff]   ;;  %v6057_v43 = vld [vmem:[%s6906_s28 + $0xa8] ss:$16 sps:$4 sm:$0xff]  }
 0x104   :  { %749 = vmatprep.subr.bf16.mxu0 %v4892_v44  ;;  %822 = vmatprep.subr.bf16.mxu1 %v4894_v45  ;;  %v320_v44 = vpack.c.bf16 %v312_v36, %v310_v35  ;;  %v309_v45 = vld [vmem:[%s6905_s3 + $0x60] sm:$0xff]  ;;  %s5528_s3 = scalar_lea.hbm %s6871_s22, 4096 }
 0x105   :  { %v319_v51 = vpack.c.bf16 %v311_v46, %v309_v45  ;;  %p5529_p2 = scmp.ne.s32.totalorder %s6871_s22, %s5528_s3  ;;  %p5532_p3 = scmp.lt.u32.totalorder %s5528_s3, %s6871_s22 }
 0x107   :  { %750 = vmatpush1.bf16.msra.mxu0 %v4896_v47  ;;  %823 = vmatpush1.bf16.msra.mxu1 %v4897_v48  ;;  %v6068_v47 = vld [vmem:[%s6906_s28 + $0xc4] ss:$16 sps:$4 sm:$0xff]   ;;  %v6073_v48 = vld [vmem:[%s6906_s28 + $0xcc] ss:$16 sps:$4 sm:$0xff]   ;;  %p5534_p4 = pnand %p5532_p3, %p5529_p2 }
 0x108   :  { %751 = vmatprep.subr.bf16.mxu0 %v4898_v50  ;;  %824 = vmatprep.subr.bf16.mxu1 %v4900_v52  ;;  %v6087_v50 = vld [vmem:[%s6906_s28 + $0xc8] ss:$16 sps:$4 sm:$0xff]   ;;  %v6092_v52 = vld [vmem:[%s6906_s28 + $0xe4] ss:$16 sps:$4 sm:$0xff]  }
 0x10b   :  { %752 = vmatpush1.bf16.msra.mxu0 %v4902_v53  ;;  %825 = vmatpush1.bf16.msra.mxu1 %v4903_v54  ;;  %v6097_v53 = vld [vmem:[%s6906_s28 + $0xec] ss:$16 sps:$4 sm:$0xff]   ;;  %v6106_v54 = vld [vmem:[%s6906_s28 + $0xe0] ss:$16 sps:$4 sm:$0xff]  }
 0x10c   :  { %753 = vmatprep.subr.bf16.mxu0 %v4904_v55  ;;  %826 = vmatprep.subr.bf16.mxu1 %v4906_v56  ;;  %v6111_v55 = vld [vmem:[%s6906_s28 + $0xe8] ss:$16 sps:$4 sm:$0xff]   ;;  %v6882_v56 = vmov 0  }
 0x10f   :  { %754 = vmatpush1.bf16.msra.mxu0 %v4908_v57  ;;  %827 = vmatpush1.bf16.msra.mxu1 %v4909_v58  ;;  %v387_v57 = vlaneseq }
 0x110   :  { %755 = vmatprep.subr.bf16.mxu0 %v4910_v59  ;;  %828 = vmatprep.subr.bf16.mxu1 %v4912_v60 }
 0x111   :  { %v388_v58 = vshrl.u32 %v387_v57, 7 }
 0x113   :  { %756 = vmatpush1.bf16.msra.mxu0 %v4914_v61  ;;  %829 = vmatpush1.bf16.msra.mxu1 %v4915_v62  ;;  %v6159_v59 = vsub.s32 2, %v388_v58  ;;  %v6161_v60 = vsub.s32 3, %v388_v58  ;;  %v6163_v61 = vsub.s32 0, %v388_v58  ;;  %v385_v62 = vld [vmem:[%s6910_s1] sm:$0xf] }
 0x114   :  { %757 = vmatprep.subr.bf16.mxu0 %v4916_v63  ;;  %830 = vmatprep.subr.bf16.mxu1 %v4918_v0  ;;  %v6168_v63 = vsub.s32 1, %v388_v58 }
 0x115   :  { %6907 = vst [vmem:[#allocation40_spill] sm:$0xff] %v6159_v59  ;;  %6908 = vst [vmem:[#allocation41_spill] sm:$0xff] %v6161_v60  ;;  %v6171_v0 = vrot.slane %v385_v62, %v6159_v59  ;;  %v6178_v3 = vrot.slane %v385_v62, %v6161_v60  ;;  %v390_v4 = vrot.slane %v385_v62, %v6163_v61 }
 0x116   :  { %6909 = vst [vmem:[#allocation42_spill] sm:$0xff] %v6163_v61  ;;  %6911 = vst [vmem:[#allocation43_spill] sm:$0xff] %v6168_v63  ;;  %v394_v11 = vrot.slane %v385_v62, %v6168_v63 }
 0x117   :  { %758 = vmatpush1.bf16.msra.mxu0 %v4920_v1  ;;  %831 = vmatpush1.bf16.msra.mxu1 %v4921_v2 }
 0x118   :  { %1065 = vmatprep.subr.bf16.mxu0 %v5894_v5  ;;  %1106 = vmatprep.subr.bf16.mxu1 %v5899_v6 }
 0x11a   :  { %760 = vmatmul.mubr.bf16.vlgmr.msra.gmra.mrb[0].mxu0 %v313_v8  ;;  %833 = vmatmul.mubr.bf16.vlgmr.msra.gmra.mrb[0].mxu1 %v313_v8 }
 0x11b   :  { %1066 = vmatpush1.bf16.msra.mxu0 %v5904_v7  ;;  %1107 = vmatpush1.bf16.msra.mxu1 %v5909_v9 }
 0x11c   :  { %1067 = vmatprep.subr.bf16.mxu0 %v5920_v12  ;;  %1108 = vmatprep.subr.bf16.mxu1 %v5927_v13 }
 0x11d   :  { %769 = vmatprep.mubr.bf16.mxu0 %v316_v16  ;;  %842 = vmatprep.mubr.bf16.mxu1 %v316_v16 }
 0x11f   :  { %1068 = vmatpush1.bf16.msra.mxu0 %v5932_v14  ;;  %1109 = vmatpush1.bf16.msra.mxu1 %v5937_v15 }
 0x120   :  { %1069 = vmatprep.subr.bf16.mxu0 %v5950_v19  ;;  %1110 = vmatprep.subr.bf16.mxu1 %v5955_v20 }
 0x122   :  { %770 = vmatmul.mubr.bf16.gmra.mrb[4].mxu0 %v315_v25  ;;  %843 = vmatmul.mubr.bf16.gmra.mrb[4].mxu1 %v315_v25 }
 0x123   :  { %1070 = vmatpush1.bf16.msra.mxu0 %v5968_v23  ;;  %1111 = vmatpush1.bf16.msra.mxu1 %v5973_v24 }
 0x124   :  { %1071 = vmatprep.subr.bf16.mxu0 %v5978_v26  ;;  %1112 = vmatprep.subr.bf16.mxu1 %v5983_v27 }
 0x125   :  { %779 = vmatprep.mubr.bf16.mxu0 %v318_v30  ;;  %852 = vmatprep.mubr.bf16.mxu1 %v318_v30 }
 0x127   :  { %1072 = vmatpush1.bf16.msra.mxu0 %v5992_v28  ;;  %1113 = vmatpush1.bf16.msra.mxu1 %v5997_v29 }
 0x128   :  { %1073 = vmatprep.subr.bf16.mxu0 %v6008_v33  ;;  %1114 = vmatprep.subr.bf16.mxu1 %v6013_v34 }
 0x12a   :  { %780 = vmatmul.mubr.bf16.gmra.mrb[8].mxu0 %v317_v39  ;;  %853 = vmatmul.mubr.bf16.gmra.mrb[8].mxu1 %v317_v39 }
 0x12b   :  { %1074 = vmatpush1.bf16.msra.mxu0 %v6028_v37  ;;  %1115 = vmatpush1.bf16.msra.mxu1 %v6033_v38 }
 0x12c   :  { %1075 = vmatprep.subr.bf16.mxu0 %v6038_v40  ;;  %1116 = vmatprep.subr.bf16.mxu1 %v6043_v41 }
 0x12d   :  { %789 = vmatprep.mubr.bf16.mxu0 %v320_v44  ;;  %862 = vmatprep.mubr.bf16.mxu1 %v320_v44 }
 0x12f   :  { %1076 = vmatpush1.bf16.msra.mxu0 %v6052_v42  ;;  %1117 = vmatpush1.bf16.msra.mxu1 %v6057_v43 }
 0x130   :  { %1077 = vmatprep.subr.bf16.mxu0 %v6068_v47  ;;  %1118 = vmatprep.subr.bf16.mxu1 %v6073_v48 }
 0x132   :  { %790 = vmatmul.mubr.bf16.gmra.mrb[12].mxu0 %v319_v51  ;;  %863 = vmatmul.mubr.bf16.gmra.mrb[12].mxu1 %v319_v51 }
 0x133   :  { %1078 = vmatpush1.bf16.msra.mxu0 %v6082_v49  ;;  %1119 = vmatpush1.bf16.msra.mxu1 %v6087_v50 }
 0x134   :  { %1079 = vmatprep.subr.bf16.mxu0 %v6092_v52  ;;  %1120 = vmatprep.subr.bf16.mxu1 %v6097_v53 }
 0x135   :  { %1097 = vmatprep.mubr.bf16.mxu0 %v6882_v56  ;;  %1138 = vmatprep.mubr.bf16.mxu1 %v6882_v56 }
 0x137   :  { %1080 = vmatpush1.bf16.msra.mxu0 %v6106_v54  ;;  %1121 = vmatpush1.bf16.msra.mxu1 %v6111_v55 }
 0x138   :  { %1176 = vmatprep.subr.bf16.mxu0 %v5894_v5  ;;  %1217 = vmatprep.subr.bf16.mxu1 %v5899_v6 }
 0x13a   :  { %1098 = vmatmul.mubr.bf16.vlgmr.msra.gmra.mrb[16].mxu0 %v6882_v56  ;;  %1139 = vmatmul.mubr.bf16.vlgmr.msra.gmra.mrb[16].mxu1 %v6882_v56 }
 0x13b   :  { %1177 = vmatpush1.bf16.msra.mxu0 %v5904_v7  ;;  %1218 = vmatpush1.bf16.msra.mxu1 %v5909_v9 }
 0x13c   :  { %1178 = vmatprep.subr.bf16.mxu0 %v5920_v12  ;;  %1219 = vmatprep.subr.bf16.mxu1 %v5927_v13 }
 0x13d   :  { %1208 = vmatprep.mubr.bf16.mxu0 %v6882_v56  ;;  %1249 = vmatprep.mubr.bf16.mxu1 %v6882_v56 }
 0x13f   :  { %1179 = vmatpush1.bf16.msra.mxu0 %v5932_v14  ;;  %1220 = vmatpush1.bf16.msra.mxu1 %v5937_v15 }
 0x140   :  { %1180 = vmatprep.subr.bf16.mxu0 %v5950_v19  ;;  %1221 = vmatprep.subr.bf16.mxu1 %v5955_v20 }
 0x143   :  { %1181 = vmatpush1.bf16.msra.mxu0 %v5968_v23  ;;  %1222 = vmatpush1.bf16.msra.mxu1 %v5973_v24 }
 0x144   :  { %1182 = vmatprep.subr.bf16.mxu0 %v5978_v26  ;;  %1223 = vmatprep.subr.bf16.mxu1 %v5983_v27 }
 0x147   :  { %1183 = vmatpush1.bf16.msra.mxu0 %v5992_v28  ;;  %1224 = vmatpush1.bf16.msra.mxu1 %v5997_v29 }
 0x148   :  { %1184 = vmatprep.subr.bf16.mxu0 %v6008_v33  ;;  %1225 = vmatprep.subr.bf16.mxu1 %v6013_v34 }
 0x14b   :  { %1185 = vmatpush1.bf16.msra.mxu0 %v6028_v37  ;;  %1226 = vmatpush1.bf16.msra.mxu1 %v6033_v38 }
 0x14c   :  { %1186 = vmatprep.subr.bf16.mxu0 %v6038_v40  ;;  %1227 = vmatprep.subr.bf16.mxu1 %v6043_v41 }
 0x14f   :  { %1187 = vmatpush1.bf16.msra.mxu0 %v6052_v42  ;;  %1228 = vmatpush1.bf16.msra.mxu1 %v6057_v43 }
 0x150   :  { %1188 = vmatprep.subr.bf16.mxu0 %v6068_v47  ;;  %1229 = vmatprep.subr.bf16.mxu1 %v6073_v48 }
 0x153   :  { %1189 = vmatpush1.bf16.msra.mxu0 %v6082_v49  ;;  %1230 = vmatpush1.bf16.msra.mxu1 %v6087_v50 }
 0x154   :  { %1190 = vmatprep.subr.bf16.mxu0 %v6092_v52  ;;  %1231 = vmatprep.subr.bf16.mxu1 %v6097_v53 }
 0x157   :  { %1191 = vmatpush1.bf16.msra.mxu0 %v6106_v54  ;;  %1232 = vmatpush1.bf16.msra.mxu1 %v6111_v55 }
 0x158   :  { %1287 = vmatprep.subr.bf16.mxu0 %v5894_v5  ;;  %1328 = vmatprep.subr.bf16.mxu1 %v5899_v6 }
 0x1ed   :  { %v6173_v1 = vpop.f32.mrb[0].mxu0  ;;  %v6175_v2 = vpop.f32.mrb[0].mxu1 }
 0x1ee   :  { %v763_v8 = vpop.f32.mrb[1].mxu0  ;;  %v836_v10 = vpop.f32.mrb[1].mxu1 }
 0x1ef   :  { %v765_v16 = vpop.f32.mrb[2].mxu0  ;;  %v838_v17 = vpop.f32.mrb[2].mxu1 }
 0x1f0   :  { %v6182_v18 = vadd.f32 %v765_v16, %v390_v4  ;;  %v767_v21 = vpop.f32.mrb[3].mxu0  ;;  %v6185_v22 = vadd.f32 %v838_v17, %v6171_v0  ;;  %v840_v25 = vpop.f32.mrb[3].mxu1 }
 0x1f1   :  { %v6187_v30 = vadd.f32 %v767_v21, %v394_v11  ;;  %v6190_v31 = vadd.f32 %v840_v25, %v6178_v3 }
 0x1f5   :  { %v771_v32 = vpop.f32.mrb[4].mxu0  ;;  %v844_v35 = vpop.f32.mrb[4].mxu1 }
 0x1f6   :  { %v6192_v36 = vadd.f32 %v771_v32, %v390_v4  ;;  %v773_v39 = vpop.f32.mrb[5].mxu0  ;;  %v6195_v44 = vadd.f32 %v844_v35, %v6171_v0  ;;  %v846_v45 = vpop.f32.mrb[5].mxu1 }
 0x1f7   :  { %v6197_v46 = vadd.f32 %v773_v39, %v394_v11  ;;  %v775_v51 = vpop.f32.mrb[6].mxu0  ;;  %v6200_v57 = vadd.f32 %v846_v45, %v6178_v3  ;;  %v848_v58 = vpop.f32.mrb[6].mxu1 }
 0x1f8   :  { %v6202_v62 = vadd.f32 %v775_v51, %v390_v4  ;;  %v777_v16 = vpop.f32.mrb[7].mxu0  ;;  %v6205_v17 = vadd.f32 %v848_v58, %v6171_v0  ;;  %v850_v21 = vpop.f32.mrb[7].mxu1 }
 0x1f9   :  { %6912 = vst [vmem:[#allocation44_spill] sm:$0xff] %v6200_v57  ;;  %v6207_v25 = vadd.f32 %v777_v16, %v394_v11  ;;  %v6210_v32 = vadd.f32 %v850_v21, %v6178_v3 }
 0x1fa   :  { %6913 = vst [vmem:[#allocation45_spill] sm:$0xff] %v6202_v62  ;;  %6914 = vst [vmem:[#allocation46_spill] sm:$0xff] %v6205_v17 }
 0x1fb   :  { %6915 = vst [vmem:[#allocation47_spill] sm:$0xff] %v6207_v25  ;;  %6916 = vst [vmem:[#allocation48_spill] sm:$0xff] %v6210_v32 }
 0x1fd   :  { %v781_v35 = vpop.f32.mrb[8].mxu0  ;;  %v854_v39 = vpop.f32.mrb[8].mxu1 }
 0x1fe   :  { %v6212_v56 = vadd.f32 %v781_v35, %v390_v4  ;;  %v783_v60 = vpop.f32.mrb[9].mxu0  ;;  %v6215_v45 = vadd.f32 %v854_v39, %v6171_v0  ;;  %v856_v51 = vpop.f32.mrb[9].mxu1 }
 0x1ff   :  { %v6217_v63 = vadd.f32 %v783_v60, %v394_v11  ;;  %v785_v59 = vpop.f32.mrb[10].mxu0  ;;  %v6220_v58 = vadd.f32 %v856_v51, %v6178_v3  ;;  %v858_v16 = vpop.f32.mrb[10].mxu1 }
 0x200   :  { %6917 = vst [vmem:[#allocation49_spill] sm:$0xff] %v6212_v56  ;;  %6918 = vst [vmem:[#allocation50_spill] sm:$0xff] %v6215_v45  ;;  %v6222_v61 = vadd.f32 %v785_v59, %v390_v4  ;;  %v787_v21 = vpop.f32.mrb[11].mxu0  ;;  %v6225_v32 = vadd.f32 %v858_v16, %v6171_v0  ;;  %v860_v35 = vpop.f32.mrb[11].mxu1 }
 0x201   :  { %6919 = vst [vmem:[#allocation51_spill] sm:$0xff] %v6217_v63  ;;  %6920 = vst [vmem:[#allocation52_spill] sm:$0xff] %v6220_v58  ;;  %v6227_v56 = vadd.f32 %v787_v21, %v394_v11  ;;  %v6230_v39 = vadd.f32 %v860_v35, %v6178_v3 }
 0x202   :  { %6921 = vst [vmem:[#allocation53_spill] sm:$0xff] %v6222_v61  ;;  %6922 = vst [vmem:[#allocation54_spill] sm:$0xff] %v6225_v32 }
 0x203   :  { %6923 = vst [vmem:[#allocation55_spill] sm:$0xff] %v6227_v56  ;;  %6924 = vst [vmem:[#allocation56_spill] sm:$0xff] %v6230_v39 }
 0x205   :  { %v791_v45 = vpop.f32.mrb[12].mxu0  ;;  %v864_v60 = vpop.f32.mrb[12].mxu1 }
 0x206   :  { %v6232_v63 = vadd.f32 %v791_v45, %v390_v4  ;;  %v793_v25 = vpop.f32.mrb[13].mxu0  ;;  %v6235_v51 = vadd.f32 %v864_v60, %v6171_v0  ;;  %v866_v59 = vpop.f32.mrb[13].mxu1 }
 0x207   :  { %v6237_v61 = vadd.f32 %v793_v25, %v394_v11  ;;  %v795_v58 = vpop.f32.mrb[14].mxu0  ;;  %v6240_v16 = vadd.f32 %v866_v59, %v6178_v3  ;;  %v868_v21 = vpop.f32.mrb[14].mxu1  ;;  %v762_v25 = vadd.f32 %v6173_v1, %v390_v4  ;;  %v764_v59 = vadd.f32 %v763_v8, %v394_v11 }
 0x208   :  { %6925 = vst [vmem:[#allocation57_spill] sm:$0xff] %v6232_v63  ;;  %6926 = vst [vmem:[#allocation58_spill] sm:$0xff] %v6235_v51  ;;  %v6242_v56 = vadd.f32 %v795_v58, %v390_v4  ;;  %v797_v35 = vpop.f32.mrb[15].mxu0  ;;  %v6245_v39 = vadd.f32 %v868_v21, %v6171_v0  ;;  %v870_v45 = vpop.f32.mrb[15].mxu1 }
 0x209   :  { %6927 = vst [vmem:[#allocation59_spill] sm:$0xff] %v6237_v61  ;;  %6928 = vst [vmem:[#allocation60_spill] sm:$0xff] %v6240_v16  ;;  %v6247_v63 = vadd.f32 %v797_v35, %v394_v11  ;;  %v6250_v60 = vadd.f32 %v870_v45, %v6178_v3  ;;  %v835_v61 = vadd.f32 %v6175_v2, %v6171_v0 }
 0x20a   :  { %6929 = vst [vmem:[#allocation61_spill] sm:$0xff] %v6242_v56  ;;  %6930 = vst [vmem:[#allocation62_spill] sm:$0xff] %v6245_v39  ;;  %v837_v16 = vadd.f32 %v836_v10, %v6178_v3 }
 0x20b   :  { %6931 = vst [vmem:[#allocation63_spill] sm:$0xff] %v6247_v63  ;;  %6932 = vst [vmem:[#allocation64_spill] sm:$0xff] %v6250_v60 }
 0x20d   :  { %v1099_v58 = vpop.f32.mrb[16].mxu0  ;;  %v1140_v56 = vpop.f32.mrb[16].mxu1 }
 0x20e   :  { %v1147_v51 = vadd.f32 %v1099_v58, %v762_v25  ;;  %v1149_v32 = vadd.f32 %v1140_v56, %v835_v61  ;;  %v1101_v21 = vpop.f32.mrb[17].mxu0  ;;  %v1142_v39 = vpop.f32.mrb[17].mxu1 }
 0x20f   :  { %v1148_v17 = vadd.f32 %v1101_v21, %v764_v59  ;;  %v1150_v35 = vadd.f32 %v1142_v39, %v837_v16  ;;  %v1103_v63 = vpop.f32.mrb[18].mxu0  ;;  %v1144_v62 = vpop.f32.mrb[18].mxu1 }
 0x210   :  { %v4562_v45 = vmul.f32 -1.442695, %v1147_v51  ;;  %v1104_v60 = vpop.f32.mrb[19].mxu0  ;;  %v1145_v57 = vpop.f32.mrb[19].mxu1 }
 0x211   :  { %v4563_v1 = vmul.f32 -1.442695, %v1148_v17  ;;  %v4564_v0 = vmul.f32 -1.442695, %v1150_v35 }
 0x212   :  { %5162 = vpow2.f32 %v4562_v45 }
 0x213   :  { %5164 = vpow2.f32 %v4563_v1 }
 0x214   :  { %5166 = vpow2.f32 %v4564_v0 }
 0x215   :  { %5168 = vtanh.f32 %v1149_v32  ;;  %v6933_v32 = vmov 0  }
 0x21c   :  { %v5163_v2 = vpop.eup %5162 }
 0x21d   :  { %v5165_v4 = vpop.eup %5164  ;;  %v1154_v3 = vadd.f32 1.0, %v5163_v2 }
 0x21e   :  { %v1160_v8 = vadd.f32 1.0, %v5165_v4  ;;  %v5167_v56 = vpop.eup %5166 }
 0x21f   :  { %5170 = vrcp.f32 %v1154_v3  ;;  %v5169_v61 = vpop.eup %5168  ;;  %v1167_v62 = vadd.f32 1.0, %v5167_v56 }
 0x220   :  { %5172 = vrcp.f32 %v1160_v8 }
 0x221   :  { %5174 = vrcp.f32 %v1167_v62 }
 0x229   :  { %v5171_v10 = vpop.eup %5170 }
 0x22a   :  { %v5173_v63 = vpop.eup %5172  ;;  %v1171_v11 = vmul.f32 %v5171_v10, %v5169_v61 }
 0x22b   :  { %v1170_v39 = vmul.f32 0.0, %v5173_v63  ;;  %v5175_v17 = vpop.eup %5174 }
 0x22d   :  { %v6256_v57 = vadd.f32 %v1171_v11, %v1170_v39 }
 0x22f   :  { %5176 = vtanh.f32 %v6256_v57 }
 0x239   :  { %v5177_v51 = vpop.eup %5176 }
 0x23a   :  { %v1174_v16 = vmul.f32 %v5177_v51, %v5175_v17 }
 0x23c   :  { %v1175_v60 = vpack.c.bf16 %v1174_v16, %v1174_v16 }
 0x23e   :  { %1209 = vmatmul.mubr.bf16.vlgmr.msra.gmra.mrb[20].mxu0 %v1175_v60  ;;  %1250 = vmatmul.mubr.bf16.vlgmr.msra.gmra.mrb[20].mxu1 %v1175_v60 }
 0x23f   :  { %1288 = vmatpush1.bf16.msra.mxu0 %v5904_v7  ;;  %1329 = vmatpush1.bf16.msra.mxu1 %v5909_v9 }
 0x240   :  { %1289 = vmatprep.subr.bf16.mxu0 %v5920_v12  ;;  %1330 = vmatprep.subr.bf16.mxu1 %v5927_v13 }
 0x241   :  { %1319 = vmatprep.mubr.bf16.mxu0 %v6933_v32  ;;  %1360 = vmatprep.mubr.bf16.mxu1 %v6933_v32 }
 0x243   :  { %1290 = vmatpush1.bf16.msra.mxu0 %v5932_v14  ;;  %1331 = vmatpush1.bf16.msra.mxu1 %v5937_v15 }
 0x244   :  { %1291 = vmatprep.subr.bf16.mxu0 %v5950_v19  ;;  %1332 = vmatprep.subr.bf16.mxu1 %v5955_v20 }
 0x247   :  { %1292 = vmatpush1.bf16.msra.mxu0 %v5968_v23  ;;  %1333 = vmatpush1.bf16.msra.mxu1 %v5973_v24 }
 0x248   :  { %1293 = vmatprep.subr.bf16.mxu0 %v5978_v26  ;;  %1334 = vmatprep.subr.bf16.mxu1 %v5983_v27 }
 0x24b   :  { %1294 = vmatpush1.bf16.msra.mxu0 %v5992_v28  ;;  %1335 = vmatpush1.bf16.msra.mxu1 %v5997_v29 }
 0x24c   :  { %1295 = vmatprep.subr.bf16.mxu0 %v6008_v33  ;;  %1336 = vmatprep.subr.bf16.mxu1 %v6013_v34 }
 0x24f   :  { %1296 = vmatpush1.bf16.msra.mxu0 %v6028_v37  ;;  %1337 = vmatpush1.bf16.msra.mxu1 %v6033_v38 }
 0x250   :  { %1297 = vmatprep.subr.bf16.mxu0 %v6038_v40  ;;  %1338 = vmatprep.subr.bf16.mxu1 %v6043_v41 }
 0x253   :  { %1298 = vmatpush1.bf16.msra.mxu0 %v6052_v42  ;;  %1339 = vmatpush1.bf16.msra.mxu1 %v6057_v43 }
 0x254   :  { %1299 = vmatprep.subr.bf16.mxu0 %v6068_v47  ;;  %1340 = vmatprep.subr.bf16.mxu1 %v6073_v48 }
 0x257   :  { %1300 = vmatpush1.bf16.msra.mxu0 %v6082_v49  ;;  %1341 = vmatpush1.bf16.msra.mxu1 %v6087_v50 }
 0x258   :  { %1301 = vmatprep.subr.bf16.mxu0 %v6092_v52  ;;  %1342 = vmatprep.subr.bf16.mxu1 %v6097_v53 }
 0x25b   :  { %1302 = vmatpush1.bf16.msra.mxu0 %v6106_v54  ;;  %1343 = vmatpush1.bf16.msra.mxu1 %v6111_v55 }
 0x25c   :  { %1398 = vmatprep.subr.bf16.mxu0 %v5894_v5  ;;  %1439 = vmatprep.subr.bf16.mxu1 %v5899_v6 }
 0x311   :  { %v1210_v25 = vpop.f32.mrb[20].mxu0  ;;  %v1251_v59 = vpop.f32.mrb[20].mxu1 }
 0x312   :  { %v1258_v58 = vadd.f32 %v1210_v25, %v6182_v18  ;;  %v1260_v21 = vadd.f32 %v1251_v59, %v6185_v22  ;;  %v1212_v35 = vpop.f32.mrb[21].mxu0  ;;  %v1253_v45 = vpop.f32.mrb[21].mxu1 }
 0x313   :  { %v1259_v1 = vadd.f32 %v1212_v35, %v6187_v30  ;;  %v1261_v0 = vadd.f32 %v1253_v45, %v6190_v31  ;;  %v1214_v2 = vpop.f32.mrb[22].mxu0  ;;  %v1255_v4 = vpop.f32.mrb[22].mxu1 }
 0x314   :  { %v4565_v3 = vmul.f32 -1.442695, %v1258_v58  ;;  %v1215_v8 = vpop.f32.mrb[23].mxu0  ;;  %v1256_v56 = vpop.f32.mrb[23].mxu1 }
 0x315   :  { %v4566_v61 = vmul.f32 -1.442695, %v1259_v1  ;;  %v4567_v10 = vmul.f32 -1.442695, %v1261_v0 }
 0x316   :  { %5178 = vpow2.f32 %v4565_v3 }
 0x317   :  { %5180 = vpow2.f32 %v4566_v61 }
 0x318   :  { %5182 = vpow2.f32 %v4567_v10 }
 0x319   :  { %5184 = vtanh.f32 %v1260_v21 }
 0x320   :  { %v5179_v63 = vpop.eup %5178 }
 0x321   :  { %v5181_v11 = vpop.eup %5180  ;;  %v1265_v18 = vadd.f32 1.0, %v5179_v63 }
 0x322   :  { %v1271_v22 = vadd.f32 1.0, %v5181_v11  ;;  %v5183_v30 = vpop.eup %5182 }
 0x323   :  { %5186 = vrcp.f32 %v1265_v18  ;;  %v5185_v62 = vpop.eup %5184  ;;  %v1278_v51 = vadd.f32 1.0, %v5183_v30 }
 0x324   :  { %5188 = vrcp.f32 %v1271_v22 }
 0x325   :  { %5190 = vrcp.f32 %v1278_v51  ;;  %v6372_v51 = vld [vmem:[%s6906_s28 + $0x20] ss:$16 sps:$4 sm:$0xff]  }
 0x32d   :  { %v5187_v31 = vpop.eup %5186 }
 0x32e   :  { %v5189_v39 = vpop.eup %5188  ;;  %v1282_v17 = vmul.f32 %v5187_v31, %v5185_v62  ;;  %v6346_v62 = vld [vmem:[%s6906_s28] ss:$16 sps:$4 sm:$0xff]   ;;  %v6352_v31 = vld [vmem:[%s6906_s28 + $0x8] ss:$16 sps:$4 sm:$0xff]  }
 0x32f   :  { %v1281_v16 = vmul.f32 %v5189_v39, %v6256_v57  ;;  %v5191_v25 = vpop.eup %5190  ;;  %v6358_v39 = vld [vmem:[%s6906_s28 + $0x24] ss:$16 sps:$4 sm:$0xff]  }
 0x331   :  { %v6298_v60 = vadd.f32 %v1282_v17, %v1281_v16  ;;  %v6364_v17 = vld [vmem:[%s6906_s28 + $0x2c] ss:$16 sps:$4 sm:$0xff]   ;;  %v6378_v16 = vld [vmem:[%s6906_s28 + $0x28] ss:$16 sps:$4 sm:$0xff]  }
 0x333   :  { %5192 = vtanh.f32 %v6298_v60 }
 0x33d   :  { %v5193_v59 = vpop.eup %5192 }
 0x33e   :  { %v1285_v58 = vmul.f32 %v5193_v59, %v5191_v25  ;;  %v6390_v25 = vld [vmem:[%s6906_s28 + $0x4c] ss:$16 sps:$4 sm:$0xff]   ;;  %v6396_v59 = vld [vmem:[%s6906_s28 + $0x40] ss:$16 sps:$4 sm:$0xff]  }
 0x340   :  { %v1286_v21 = vpack.c.bf16 %v1285_v58, %v1285_v58  ;;  %v6402_v58 = vld [vmem:[%s6906_s28 + $0x48] ss:$16 sps:$4 sm:$0xff]  }
 0x342   :  { %1320 = vmatmul.mubr.bf16.vlgmr.msra.gmra.mrb[24].mxu0 %v1286_v21  ;;  %1361 = vmatmul.mubr.bf16.vlgmr.msra.gmra.mrb[24].mxu1 %v1286_v21 }
 0x343   :  { %1399 = vmatpush1.bf16.msra.mxu0 %v5904_v7  ;;  %1440 = vmatpush1.bf16.msra.mxu1 %v5909_v9 }
 0x344   :  { %1400 = vmatprep.subr.bf16.mxu0 %v5920_v12  ;;  %1441 = vmatprep.subr.bf16.mxu1 %v5927_v13 }
 0x345   :  { %1430 = vmatprep.mubr.bf16.mxu0 %v6933_v32  ;;  %1471 = vmatprep.mubr.bf16.mxu1 %v6933_v32 }
 0x347   :  { %1401 = vmatpush1.bf16.msra.mxu0 %v5932_v14  ;;  %1442 = vmatpush1.bf16.msra.mxu1 %v5937_v15 }
 0x348   :  { %1402 = vmatprep.subr.bf16.mxu0 %v5950_v19  ;;  %1443 = vmatprep.subr.bf16.mxu1 %v5955_v20  ;;  %v6934_v20 = vld [vmem:[#allocation44_spill] sm:$0xff] }
 0x34b   :  { %1403 = vmatpush1.bf16.msra.mxu0 %v5968_v23  ;;  %1444 = vmatpush1.bf16.msra.mxu1 %v5973_v24 }
 0x34c   :  { %1404 = vmatprep.subr.bf16.mxu0 %v5978_v26  ;;  %1445 = vmatprep.subr.bf16.mxu1 %v5983_v27 }
 0x34f   :  { %1405 = vmatpush1.bf16.msra.mxu0 %v5992_v28  ;;  %1446 = vmatpush1.bf16.msra.mxu1 %v5997_v29 }
 0x350   :  { %1406 = vmatprep.subr.bf16.mxu0 %v6008_v33  ;;  %1447 = vmatprep.subr.bf16.mxu1 %v6013_v34 }
 0x353   :  { %1407 = vmatpush1.bf16.msra.mxu0 %v6028_v37  ;;  %1448 = vmatpush1.bf16.msra.mxu1 %v6033_v38 }
 0x354   :  { %1408 = vmatprep.subr.bf16.mxu0 %v6038_v40  ;;  %1449 = vmatprep.subr.bf16.mxu1 %v6043_v41 }
 0x357   :  { %1409 = vmatpush1.bf16.msra.mxu0 %v6052_v42  ;;  %1450 = vmatpush1.bf16.msra.mxu1 %v6057_v43 }
 0x358   :  { %1410 = vmatprep.subr.bf16.mxu0 %v6068_v47  ;;  %1451 = vmatprep.subr.bf16.mxu1 %v6073_v48 }
 0x35b   :  { %1411 = vmatpush1.bf16.msra.mxu0 %v6082_v49  ;;  %1452 = vmatpush1.bf16.msra.mxu1 %v6087_v50 }
 0x35c   :  { %1412 = vmatprep.subr.bf16.mxu0 %v6092_v52  ;;  %1453 = vmatprep.subr.bf16.mxu1 %v6097_v53 }
 0x35f   :  { %1413 = vmatpush1.bf16.msra.mxu0 %v6106_v54  ;;  %1454 = vmatpush1.bf16.msra.mxu1 %v6111_v55 }
 0x360   :  { %1509 = vmatprep.subr.bf16.mxu0 %v5894_v5  ;;  %1550 = vmatprep.subr.bf16.mxu1 %v5899_v6 }
 0x415   :  { %v1321_v7 = vpop.f32.mrb[24].mxu0  ;;  %v1362_v9 = vpop.f32.mrb[24].mxu1 }
 0x416   :  { %v1369_v12 = vadd.f32 %v1321_v7, %v6192_v36  ;;  %v1371_v13 = vadd.f32 %v1362_v9, %v6195_v44  ;;  %v1323_v14 = vpop.f32.mrb[25].mxu0  ;;  %v1364_v15 = vpop.f32.mrb[25].mxu1 }
 0x417   :  { %v1370_v19 = vadd.f32 %v1323_v14, %v6197_v46  ;;  %v1372_v23 = vadd.f32 %v1364_v15, %v6934_v20  ;;  %v1325_v24 = vpop.f32.mrb[26].mxu0  ;;  %v1366_v57 = vpop.f32.mrb[26].mxu1 }
 0x418   :  { %v4568_v35 = vmul.f32 -1.442695, %v1369_v12  ;;  %v1326_v45 = vpop.f32.mrb[27].mxu0  ;;  %v1367_v1 = vpop.f32.mrb[27].mxu1 }
 0x419   :  { %v4569_v5 = vmul.f32 -1.442695, %v1370_v19  ;;  %v4570_v6 = vmul.f32 -1.442695, %v1372_v23 }
 0x41a   :  { %5194 = vpow2.f32 %v4568_v35 }
 0x41b   :  { %5196 = vpow2.f32 %v4569_v5 }
 0x41c   :  { %5198 = vpow2.f32 %v4570_v6 }
 0x41d   :  { %5200 = vtanh.f32 %v1371_v13 }
 0x424   :  { %v5195_v0 = vpop.eup %5194 }
 0x425   :  { %v5197_v2 = vpop.eup %5196  ;;  %v1376_v36 = vadd.f32 1.0, %v5195_v0 }
 0x426   :  { %v1382_v44 = vadd.f32 1.0, %v5197_v2  ;;  %v5199_v46 = vpop.eup %5198 }
 0x427   :  { %5202 = vrcp.f32 %v1376_v36  ;;  %v5201_v4 = vpop.eup %5200  ;;  %v1389_v61 = vadd.f32 1.0, %v5199_v46 }
 0x428   :  { %5204 = vrcp.f32 %v1382_v44 }
 0x429   :  { %5206 = vrcp.f32 %v1389_v61  ;;  %v6478_v61 = vld [vmem:[%s6906_s28 + $0x68] ss:$16 sps:$4 sm:$0xff]  }
 0x431   :  { %v5203_v3 = vpop.eup %5202 }
 0x432   :  { %v5205_v8 = vpop.eup %5204  ;;  %v1393_v56 = vmul.f32 %v5203_v3, %v5201_v4  ;;  %v6460_v3 = vld [vmem:[%s6906_s28 + $0x64] ss:$16 sps:$4 sm:$0xff]  }
 0x433   :  { %v1392_v10 = vmul.f32 %v5205_v8, %v6298_v60  ;;  %v5207_v11 = vpop.eup %5206  ;;  %v6384_v60 = vld [vmem:[%s6906_s28 + $0x44] ss:$16 sps:$4 sm:$0xff]   ;;  %v6466_v8 = vld [vmem:[%s6906_s28 + $0x6c] ss:$16 sps:$4 sm:$0xff]  }
 0x435   :  { %v6340_v63 = vadd.f32 %v1393_v56, %v1392_v10  ;;  %v6472_v56 = vld [vmem:[%s6906_s28 + $0x60] ss:$16 sps:$4 sm:$0xff]   ;;  %v6484_v10 = vld [vmem:[%s6906_s28 + $0x84] ss:$16 sps:$4 sm:$0xff]  }
 0x437   :  { %5208 = vtanh.f32 %v6340_v63 }
 0x441   :  { %v5209_v18 = vpop.eup %5208 }
 0x442   :  { %v1396_v22 = vmul.f32 %v5209_v18, %v5207_v11  ;;  %v6496_v11 = vld [vmem:[%s6906_s28 + $0x80] ss:$16 sps:$4 sm:$0xff]   ;;  %v6502_v18 = vld [vmem:[%s6906_s28 + $0x88] ss:$16 sps:$4 sm:$0xff]  }
 0x444   :  { %v1397_v30 = vpack.c.bf16 %v1396_v22, %v1396_v22  ;;  %v6508_v22 = vld [vmem:[%s6906_s28 + $0xa4] ss:$16 sps:$4 sm:$0xff]  }
 0x446   :  { %1431 = vmatmul.mubr.bf16.vlgmr.msra.gmra.mrb[28].mxu0 %v1397_v30  ;;  %1472 = vmatmul.mubr.bf16.vlgmr.msra.gmra.mrb[28].mxu1 %v1397_v30  ;;  %v6514_v30 = vld [vmem:[%s6906_s28 + $0xac] ss:$16 sps:$4 sm:$0xff]  }
 0x447   :  { %1510 = vmatpush1.bf16.msra.mxu0 %v6346_v62  ;;  %1551 = vmatpush1.bf16.msra.mxu1 %v6352_v31 }
 0x448   :  { %1511 = vmatprep.subr.bf16.mxu0 %v6358_v39  ;;  %1552 = vmatprep.subr.bf16.mxu1 %v6364_v17 }
 0x449   :  { %1541 = vmatprep.mubr.bf16.mxu0 %v6933_v32  ;;  %1582 = vmatprep.mubr.bf16.mxu1 %v6933_v32 }
 0x44b   :  { %1512 = vmatpush1.bf16.msra.mxu0 %v6372_v51  ;;  %1553 = vmatpush1.bf16.msra.mxu1 %v6378_v16 }
 0x44c   :  { %1513 = vmatprep.subr.bf16.mxu0 %v6384_v60  ;;  %1554 = vmatprep.subr.bf16.mxu1 %v6390_v25 }
 0x44f   :  { %1514 = vmatpush1.bf16.msra.mxu0 %v6396_v59  ;;  %1555 = vmatpush1.bf16.msra.mxu1 %v6402_v58 }
 0x450   :  { %1515 = vmatprep.subr.bf16.mxu0 %v5978_v26  ;;  %1556 = vmatprep.subr.bf16.mxu1 %v5983_v27  ;;  %v6428_v26 = vld [vmem:[%s6906_s28 + $0x4] ss:$16 sps:$4 sm:$0xff]   ;;  %v6434_v27 = vld [vmem:[%s6906_s28 + $0xc] ss:$16 sps:$4 sm:$0xff]  }
 0x453   :  { %1516 = vmatpush1.bf16.msra.mxu0 %v5992_v28  ;;  %1557 = vmatpush1.bf16.msra.mxu1 %v5997_v29 }
 0x454   :  { %1517 = vmatprep.subr.bf16.mxu0 %v6008_v33  ;;  %1558 = vmatprep.subr.bf16.mxu1 %v6013_v34  ;;  %v6935_v33 = vld [vmem:[#allocation45_spill] sm:$0xff] }
 0x457   :  { %1518 = vmatpush1.bf16.msra.mxu0 %v6028_v37  ;;  %1559 = vmatpush1.bf16.msra.mxu1 %v6033_v38  ;;  %v6936_v37 = vld [vmem:[#allocation46_spill] sm:$0xff] }
 0x458   :  { %1519 = vmatprep.subr.bf16.mxu0 %v6038_v40  ;;  %1560 = vmatprep.subr.bf16.mxu1 %v6043_v41 }
 0x45b   :  { %1520 = vmatpush1.bf16.msra.mxu0 %v6052_v42  ;;  %1561 = vmatpush1.bf16.msra.mxu1 %v6057_v43  ;;  %v6937_v42 = vld [vmem:[#allocation47_spill] sm:$0xff] }
 0x45c   :  { %1521 = vmatprep.subr.bf16.mxu0 %v6068_v47  ;;  %1562 = vmatprep.subr.bf16.mxu1 %v6073_v48  ;;  %v6938_v47 = vld [vmem:[#allocation48_spill] sm:$0xff] }
 0x45f   :  { %1522 = vmatpush1.bf16.msra.mxu0 %v6082_v49  ;;  %1563 = vmatpush1.bf16.msra.mxu1 %v6087_v50 }
 0x460   :  { %1523 = vmatprep.subr.bf16.mxu0 %v6092_v52  ;;  %1564 = vmatprep.subr.bf16.mxu1 %v6097_v53 }
 0x463   :  { %1524 = vmatpush1.bf16.msra.mxu0 %v6106_v54  ;;  %1565 = vmatpush1.bf16.msra.mxu1 %v6111_v55 }
 0x464   :  { %1620 = vmatprep.subr.bf16.mxu0 %v6428_v26  ;;  %1661 = vmatprep.subr.bf16.mxu1 %v6434_v27 }
 0x519   :  { %v1432_v28 = vpop.f32.mrb[28].mxu0  ;;  %v1473_v29 = vpop.f32.mrb[28].mxu1 }
 0x51a   :  { %v1480_v34 = vadd.f32 %v1432_v28, %v6935_v33  ;;  %v1482_v38 = vadd.f32 %v1473_v29, %v6936_v37  ;;  %v1434_v40 = vpop.f32.mrb[29].mxu0  ;;  %v1475_v41 = vpop.f32.mrb[29].mxu1  ;;  %v6520_v28 = vld [vmem:[%s6906_s28 + $0xa0] ss:$16 sps:$4 sm:$0xff]   ;;  %v6526_v29 = vld [vmem:[%s6906_s28 + $0xa8] ss:$16 sps:$4 sm:$0xff]  }
 0x51b   :  { %v1481_v43 = vadd.f32 %v1434_v40, %v6937_v42  ;;  %v1483_v48 = vadd.f32 %v1475_v41, %v6938_v47  ;;  %v1436_v21 = vpop.f32.mrb[30].mxu0  ;;  %v1477_v7 = vpop.f32.mrb[30].mxu1  ;;  %v6532_v33 = vld [vmem:[%s6906_s28 + $0xc4] ss:$16 sps:$4 sm:$0xff]   ;;  %v6940_v42 = vld [vmem:[#allocation50_spill] sm:$0xff] }
 0x51c   :  { %v4571_v9 = vmul.f32 -1.442695, %v1480_v34  ;;  %v1437_v12 = vpop.f32.mrb[31].mxu0  ;;  %v1478_v13 = vpop.f32.mrb[31].mxu1  ;;  %v6538_v34 = vld [vmem:[%s6906_s28 + $0xcc] ss:$16 sps:$4 sm:$0xff]  }
 0x51d   :  { %v4572_v14 = vmul.f32 -1.442695, %v1481_v43  ;;  %v4573_v15 = vmul.f32 -1.442695, %v1483_v48  ;;  %v6939_v40 = vld [vmem:[#allocation49_spill] sm:$0xff]  ;;  %v6941_v47 = vld [vmem:[#allocation51_spill] sm:$0xff] }
 0x51e   :  { %5210 = vpow2.f32 %v4571_v9  ;;  %v6942_v48 = vld [vmem:[#allocation52_spill] sm:$0xff] }
 0x51f   :  { %5212 = vpow2.f32 %v4572_v14 }
 0x520   :  { %5214 = vpow2.f32 %v4573_v15 }
 0x521   :  { %5216 = vtanh.f32 %v1482_v38 }
 0x528   :  { %v5211_v19 = vpop.eup %5210 }
 0x529   :  { %v5213_v20 = vpop.eup %5212  ;;  %v1487_v23 = vadd.f32 1.0, %v5211_v19 }
 0x52a   :  { %v1493_v24 = vadd.f32 1.0, %v5213_v20  ;;  %v5215_v57 = vpop.eup %5214 }
 0x52b   :  { %5218 = vrcp.f32 %v1487_v23  ;;  %v5217_v35 = vpop.eup %5216  ;;  %v1500_v6 = vadd.f32 1.0, %v5215_v57 }
 0x52c   :  { %5220 = vrcp.f32 %v1493_v24 }
 0x52d   :  { %5222 = vrcp.f32 %v1500_v6 }
 0x535   :  { %v5219_v45 = vpop.eup %5218 }
 0x536   :  { %v5221_v1 = vpop.eup %5220  ;;  %v1504_v5 = vmul.f32 %v5219_v45, %v5217_v35 }
 0x537   :  { %v1503_v0 = vmul.f32 %v5221_v1, %v6340_v63  ;;  %v5223_v36 = vpop.eup %5222  ;;  %v6490_v63 = vld [vmem:[%s6906_s28 + $0x8c] ss:$16 sps:$4 sm:$0xff]  }
 0x539   :  { %v6442_v2 = vadd.f32 %v1504_v5, %v1503_v0 }
 0x53b   :  { %5224 = vtanh.f32 %v6442_v2 }
 0x545   :  { %v5225_v44 = vpop.eup %5224 }
 0x546   :  { %v1507_v46 = vmul.f32 %v5225_v44, %v5223_v36 }
 0x548   :  { %v1508_v4 = vpack.c.bf16 %v1507_v46, %v1507_v46 }
 0x54a   :  { %1542 = vmatmul.mubr.bf16.vlgmr.msra.gmra.mrb[32].mxu0 %v1508_v4  ;;  %1583 = vmatmul.mubr.bf16.vlgmr.msra.gmra.mrb[32].mxu1 %v1508_v4  ;;  %v6592_v4 = vld [vmem:[%s6906_s28 + $0xc8] ss:$16 sps:$4 sm:$0xff]  }
 0x54b   :  { %1621 = vmatpush1.bf16.msra.mxu0 %v6346_v62  ;;  %1662 = vmatpush1.bf16.msra.mxu1 %v6352_v31 }
 0x54c   :  { %1622 = vmatprep.subr.bf16.mxu0 %v6358_v39  ;;  %1663 = vmatprep.subr.bf16.mxu1 %v6364_v17 }
 0x54d   :  { %1652 = vmatprep.mubr.bf16.mxu0 %v6933_v32  ;;  %1693 = vmatprep.mubr.bf16.mxu1 %v6933_v32 }
 0x54f   :  { %1623 = vmatpush1.bf16.msra.mxu0 %v6372_v51  ;;  %1664 = vmatpush1.bf16.msra.mxu1 %v6378_v16 }
 0x550   :  { %1624 = vmatprep.subr.bf16.mxu0 %v6384_v60  ;;  %1665 = vmatprep.subr.bf16.mxu1 %v6390_v25 }
 0x553   :  { %1625 = vmatpush1.bf16.msra.mxu0 %v6396_v59  ;;  %1666 = vmatpush1.bf16.msra.mxu1 %v6402_v58 }
 0x554   :  { %1626 = vmatprep.subr.bf16.mxu0 %v6460_v3  ;;  %1667 = vmatprep.subr.bf16.mxu1 %v6466_v8 }
 0x557   :  { %1627 = vmatpush1.bf16.msra.mxu0 %v6472_v56  ;;  %1668 = vmatpush1.bf16.msra.mxu1 %v6478_v61 }
 0x558   :  { %1628 = vmatprep.subr.bf16.mxu0 %v6484_v10  ;;  %1669 = vmatprep.subr.bf16.mxu1 %v6490_v63 }
 0x55b   :  { %1629 = vmatpush1.bf16.msra.mxu0 %v6496_v11  ;;  %1670 = vmatpush1.bf16.msra.mxu1 %v6502_v18 }
 0x55c   :  { %1630 = vmatprep.subr.bf16.mxu0 %v6508_v22  ;;  %1671 = vmatprep.subr.bf16.mxu1 %v6514_v30 }
 0x55f   :  { %1631 = vmatpush1.bf16.msra.mxu0 %v6520_v28  ;;  %1672 = vmatpush1.bf16.msra.mxu1 %v6526_v29 }
 0x560   :  { %1632 = vmatprep.subr.bf16.mxu0 %v6532_v33  ;;  %1673 = vmatprep.subr.bf16.mxu1 %v6538_v34 }
 0x563   :  { %1633 = vmatpush1.bf16.msra.mxu0 %v6082_v49  ;;  %1674 = vmatpush1.bf16.msra.mxu1 %v6087_v50 }
 0x564   :  { %1634 = vmatprep.subr.bf16.mxu0 %v6092_v52  ;;  %1675 = vmatprep.subr.bf16.mxu1 %v6097_v53 }
 0x567   :  { %1635 = vmatpush1.bf16.msra.mxu0 %v6106_v54  ;;  %1676 = vmatpush1.bf16.msra.mxu1 %v6111_v55 }
 0x568   :  { %1731 = vmatprep.subr.bf16.mxu0 %v6428_v26  ;;  %1772 = vmatprep.subr.bf16.mxu1 %v6434_v27 }
 0x61d   :  { %v1543_v37 = vpop.f32.mrb[32].mxu0  ;;  %v1584_v38 = vpop.f32.mrb[32].mxu1 }
 0x61e   :  { %v1591_v41 = vadd.f32 %v1543_v37, %v6939_v40  ;;  %v1593_v49 = vadd.f32 %v1584_v38, %v6940_v42  ;;  %v1545_v43 = vpop.f32.mrb[33].mxu0  ;;  %v1586_v50 = vpop.f32.mrb[33].mxu1  ;;  %v6598_v37 = vld [vmem:[%s6906_s28 + $0xe4] ss:$16 sps:$4 sm:$0xff]   ;;  %v6604_v38 = vld [vmem:[%s6906_s28 + $0xec] ss:$16 sps:$4 sm:$0xff]  }
 0x61f   :  { %v1592_v52 = vadd.f32 %v1545_v43, %v6941_v47  ;;  %v1594_v53 = vadd.f32 %v1586_v50, %v6942_v48  ;;  %v1547_v21 = vpop.f32.mrb[34].mxu0  ;;  %v1588_v54 = vpop.f32.mrb[34].mxu1  ;;  %v6610_v40 = vld [vmem:[%s6906_s28 + $0xe0] ss:$16 sps:$4 sm:$0xff]   ;;  %v6944_v47 = vld [vmem:[#allocation54_spill] sm:$0xff] }
 0x620   :  { %v4574_v7 = vmul.f32 -1.442695, %v1591_v41  ;;  %v1548_v55 = vpop.f32.mrb[35].mxu0  ;;  %v1589_v9 = vpop.f32.mrb[35].mxu1  ;;  %v6616_v41 = vld [vmem:[%s6906_s28 + $0xe8] ss:$16 sps:$4 sm:$0xff]  }
 0x621   :  { %v4575_v12 = vmul.f32 -1.442695, %v1592_v52  ;;  %v4576_v13 = vmul.f32 -1.442695, %v1594_v53  ;;  %v6943_v43 = vld [vmem:[#allocation53_spill] sm:$0xff]  ;;  %v6945_v21 = vld [vmem:[#allocation55_spill] sm:$0xff] }
 0x622   :  { %5226 = vpow2.f32 %v4574_v7  ;;  %v6946_v7 = vld [vmem:[#allocation56_spill] sm:$0xff] }
 0x623   :  { %5228 = vpow2.f32 %v4575_v12 }
 0x624   :  { %5230 = vpow2.f32 %v4576_v13 }
 0x625   :  { %5232 = vtanh.f32 %v1593_v49 }
 0x62c   :  { %v5227_v14 = vpop.eup %5226 }
 0x62d   :  { %v5229_v15 = vpop.eup %5228  ;;  %v1598_v19 = vadd.f32 1.0, %v5227_v14 }
 0x62e   :  { %v1604_v20 = vadd.f32 1.0, %v5229_v15  ;;  %v5231_v23 = vpop.eup %5230 }
 0x62f   :  { %5234 = vrcp.f32 %v1598_v19  ;;  %v5233_v24 = vpop.eup %5232  ;;  %v1611_v1 = vadd.f32 1.0, %v5231_v23 }
 0x630   :  { %5236 = vrcp.f32 %v1604_v20 }
 0x631   :  { %5238 = vrcp.f32 %v1611_v1 }
 0x639   :  { %v5235_v57 = vpop.eup %5234 }
 0x63a   :  { %v5237_v35 = vpop.eup %5236  ;;  %v1615_v45 = vmul.f32 %v5235_v57, %v5233_v24 }
 0x63b   :  { %v1614_v5 = vmul.f32 %v5237_v35, %v6442_v2  ;;  %v5239_v0 = vpop.eup %5238  ;;  %v6586_v2 = vld [vmem:[%s6906_s28 + $0xc0] ss:$16 sps:$4 sm:$0xff]  }
 0x63d   :  { %v6554_v6 = vadd.f32 %v1615_v45, %v1614_v5 }
 0x63f   :  { %5240 = vtanh.f32 %v6554_v6 }
 0x649   :  { %v5241_v36 = vpop.eup %5240 }
 0x64a   :  { %v1618_v44 = vmul.f32 %v5241_v36, %v5239_v0 }
 0x64c   :  { %v1619_v46 = vpack.c.bf16 %v1618_v44, %v1618_v44 }
 0x64e   :  { %1653 = vmatmul.mubr.bf16.vlgmr.msra.gmra.mrb[36].mxu0 %v1619_v46  ;;  %1694 = vmatmul.mubr.bf16.vlgmr.msra.gmra.mrb[36].mxu1 %v1619_v46 }
 0x64f   :  { %1732 = vmatpush1.bf16.msra.mxu0 %v6346_v62  ;;  %1773 = vmatpush1.bf16.msra.mxu1 %v6352_v31 }
 0x650   :  { %1733 = vmatprep.subr.bf16.mxu0 %v6358_v39  ;;  %1774 = vmatprep.subr.bf16.mxu1 %v6364_v17 }
 0x651   :  { %1763 = vmatprep.mubr.bf16.mxu0 %v6933_v32  ;;  %1804 = vmatprep.mubr.bf16.mxu1 %v6933_v32 }
 0x653   :  { %1734 = vmatpush1.bf16.msra.mxu0 %v6372_v51  ;;  %1775 = vmatpush1.bf16.msra.mxu1 %v6378_v16 }
 0x654   :  { %1735 = vmatprep.subr.bf16.mxu0 %v6384_v60  ;;  %1776 = vmatprep.subr.bf16.mxu1 %v6390_v25 }
 0x657   :  { %1736 = vmatpush1.bf16.msra.mxu0 %v6396_v59  ;;  %1777 = vmatpush1.bf16.msra.mxu1 %v6402_v58 }
 0x658   :  { %1737 = vmatprep.subr.bf16.mxu0 %v6460_v3  ;;  %1778 = vmatprep.subr.bf16.mxu1 %v6466_v8 }
 0x65b   :  { %1738 = vmatpush1.bf16.msra.mxu0 %v6472_v56  ;;  %1779 = vmatpush1.bf16.msra.mxu1 %v6478_v61 }
 0x65c   :  { %1739 = vmatprep.subr.bf16.mxu0 %v6484_v10  ;;  %1780 = vmatprep.subr.bf16.mxu1 %v6490_v63 }
 0x65f   :  { %1740 = vmatpush1.bf16.msra.mxu0 %v6496_v11  ;;  %1781 = vmatpush1.bf16.msra.mxu1 %v6502_v18 }
 0x660   :  { %1741 = vmatprep.subr.bf16.mxu0 %v6508_v22  ;;  %1782 = vmatprep.subr.bf16.mxu1 %v6514_v30 }
 0x663   :  { %1742 = vmatpush1.bf16.msra.mxu0 %v6520_v28  ;;  %1783 = vmatpush1.bf16.msra.mxu1 %v6526_v29 }
 0x664   :  { %1743 = vmatprep.subr.bf16.mxu0 %v6532_v33  ;;  %1784 = vmatprep.subr.bf16.mxu1 %v6538_v34 }
 0x667   :  { %1744 = vmatpush1.bf16.msra.mxu0 %v6586_v2  ;;  %1785 = vmatpush1.bf16.msra.mxu1 %v6592_v4 }
 0x668   :  { %1745 = vmatprep.subr.bf16.mxu0 %v6598_v37  ;;  %1786 = vmatprep.subr.bf16.mxu1 %v6604_v38 }
 0x66b   :  { %1746 = vmatpush1.bf16.msra.mxu0 %v6610_v40  ;;  %1787 = vmatpush1.bf16.msra.mxu1 %v6616_v41 }
 0x66c   :  { %1842 = vmatprep.subr.bf16.mxu0 %v6428_v26  ;;  %1883 = vmatprep.subr.bf16.mxu1 %v6434_v27 }
 0x721   :  { %v1654_v42 = vpop.f32.mrb[36].mxu0  ;;  %v1695_v49 = vpop.f32.mrb[36].mxu1 }
 0x722   :  { %v1702_v50 = vadd.f32 %v1654_v42, %v6943_v43  ;;  %v1704_v52 = vadd.f32 %v1695_v49, %v6944_v47  ;;  %v1656_v48 = vpop.f32.mrb[37].mxu0  ;;  %v1697_v53 = vpop.f32.mrb[37].mxu1 }
 0x723   :  { %v1703_v54 = vadd.f32 %v1656_v48, %v6945_v21  ;;  %v1705_v55 = vadd.f32 %v1697_v53, %v6946_v7  ;;  %v1658_v9 = vpop.f32.mrb[38].mxu0  ;;  %v1699_v12 = vpop.f32.mrb[38].mxu1  ;;  %v1986_v21 = vld [vmem:[%s6951_s6 + $0x8] sm:$0xff]  ;;  %v4994_v7 = vld [vmem:[#allocation11 + $0x200] ss:$16 sps:$4 sm:$0xff]  }
 0x724   :  { %v4577_v13 = vmul.f32 -1.442695, %v1702_v50  ;;  %v1659_v14 = vpop.f32.mrb[39].mxu0  ;;  %v1700_v15 = vpop.f32.mrb[39].mxu1  ;;  %v4975_v9 = vld [vmem:[#allocation11 + $0x24] ss:$16 sps:$4 sm:$0xff]  }
 0x725   :  { %v4578_v26 = vmul.f32 -1.442695, %v1703_v54  ;;  %v4579_v27 = vmul.f32 -1.442695, %v1705_v55  ;;  %v4970_v54 = vld [vmem:[#allocation11] ss:$16 sps:$4 sm:$0xff]  }
 0x726   :  { %5242 = vpow2.f32 %v4577_v13  ;;  %v5002_v12 = vld [vmem:[#allocation11 + $0x224] ss:$16 sps:$4 sm:$0xff]   ;;  %v6672_v13 = vpack.c.bf16 %v1986_v21, %v1986_v21  ;;  %v4973_v14 = vld [vmem:[#allocation11 + $0x20] ss:$16 sps:$4 sm:$0xff]   ;;  %v5060_v21 = vld [vmem:[#allocation11 + $0xc8] ss:$16 sps:$4 sm:$0xff]  }
 0x727   :  { %5244 = vpow2.f32 %v4578_v26  ;;  %v5000_v15 = vld [vmem:[#allocation11 + $0x220] ss:$16 sps:$4 sm:$0xff]   ;;  %v4978_v26 = vld [vmem:[#allocation11 + $0x44] ss:$16 sps:$4 sm:$0xff]  }
 0x728   :  { %5246 = vpow2.f32 %v4579_v27  ;;  %v5008_v27 = vld [vmem:[#allocation11 + $0x244] ss:$16 sps:$4 sm:$0xff]  }
 0x729   :  { %5248 = vtanh.f32 %v1704_v52 }
 0x730   :  { %v5243_v19 = vpop.eup %5242 }
 0x731   :  { %v5245_v20 = vpop.eup %5244  ;;  %v1709_v23 = vadd.f32 1.0, %v5243_v19  ;;  %v4976_v19 = vld [vmem:[#allocation11 + $0x40] ss:$16 sps:$4 sm:$0xff]  }
 0x732   :  { %v1715_v24 = vadd.f32 1.0, %v5245_v20  ;;  %v5247_v57 = vpop.eup %5246  ;;  %v5006_v20 = vld [vmem:[#allocation11 + $0x240] ss:$16 sps:$4 sm:$0xff]  }
 0x733   :  { %5250 = vrcp.f32 %v1709_v23  ;;  %v5249_v35 = vpop.eup %5248  ;;  %v1722_v0 = vadd.f32 1.0, %v5247_v57  ;;  %v4981_v23 = vld [vmem:[#allocation11 + $0x64] ss:$16 sps:$4 sm:$0xff]   ;;  %v4979_v57 = vld [vmem:[#allocation11 + $0x60] ss:$16 sps:$4 sm:$0xff]  }
 0x734   :  { %5252 = vrcp.f32 %v1715_v24  ;;  %v5014_v24 = vld [vmem:[#allocation11 + $0x264] ss:$16 sps:$4 sm:$0xff]  }
 0x735   :  { %5254 = vrcp.f32 %v1722_v0  ;;  %v5018_v0 = vld [vmem:[#allocation11 + $0x280] ss:$16 sps:$4 sm:$0xff]  }
 0x73d   :  { %v5251_v45 = vpop.eup %5250 }
 0x73e   :  { %v5253_v1 = vpop.eup %5252  ;;  %v1726_v5 = vmul.f32 %v5251_v45, %v5249_v35  ;;  %v5012_v35 = vld [vmem:[#allocation11 + $0x260] ss:$16 sps:$4 sm:$0xff]   ;;  %v4984_v45 = vld [vmem:[#allocation11 + $0x84] ss:$16 sps:$4 sm:$0xff]  }
 0x73f   :  { %v1725_v36 = vmul.f32 %v5253_v1, %v6554_v6  ;;  %v5255_v46 = vpop.eup %5254  ;;  %v5020_v1 = vld [vmem:[#allocation11 + $0x284] ss:$16 sps:$4 sm:$0xff]  }
 0x741   :  { %v6626_v44 = vadd.f32 %v1726_v5, %v1725_v36  ;;  %v4982_v5 = vld [vmem:[#allocation11 + $0x80] ss:$16 sps:$4 sm:$0xff]   ;;  %v4987_v36 = vld [vmem:[#allocation11 + $0xa4] ss:$16 sps:$4 sm:$0xff]  }
 0x743   :  { %5256 = vtanh.f32 %v6626_v44 }
 0x74d   :  { %v5257_v42 = vpop.eup %5256 }
 0x74e   :  { %v1729_v49 = vmul.f32 %v5257_v42, %v5255_v46  ;;  %v4985_v46 = vld [vmem:[#allocation11 + $0xa0] ss:$16 sps:$4 sm:$0xff]  }
 0x74f   :  { %v5024_v42 = vld [vmem:[#allocation11 + $0x2a0] ss:$16 sps:$4 sm:$0xff]  }
 0x750   :  { %v1730_v43 = vpack.c.bf16 %v1729_v49, %v1729_v49  ;;  %v4990_v49 = vld [vmem:[#allocation11 + $0xc4] ss:$16 sps:$4 sm:$0xff]  }
 0x752   :  { %1764 = vmatmul.mubr.bf16.vlgmr.msra.gmra.mrb[40].mxu0 %v1730_v43  ;;  %1805 = vmatmul.mubr.bf16.vlgmr.msra.gmra.mrb[40].mxu1 %v1730_v43  ;;  %v5032_v43 = vld [vmem:[#allocation11 + $0x2c4] ss:$16 sps:$4 sm:$0xff]  }
 0x753   :  { %1843 = vmatpush1.bf16.msra.mxu0 %v6346_v62  ;;  %1884 = vmatpush1.bf16.msra.mxu1 %v6352_v31  ;;  %v4972_v62 = vld [vmem:[#allocation11 + $0x4] ss:$16 sps:$4 sm:$0xff]  }
 0x754   :  { %1844 = vmatprep.subr.bf16.mxu0 %v6358_v39  ;;  %1885 = vmatprep.subr.bf16.mxu1 %v6364_v17  ;;  %v4996_v31 = vld [vmem:[#allocation11 + $0x204] ss:$16 sps:$4 sm:$0xff]  }
 0x755   :  { %1874 = vmatprep.mubr.bf16.mxu0 %v6933_v32  ;;  %1915 = vmatprep.mubr.bf16.mxu1 %v6933_v32 }
 0x757   :  { %1845 = vmatpush1.bf16.msra.mxu0 %v6372_v51  ;;  %1886 = vmatpush1.bf16.msra.mxu1 %v6378_v16  ;;  %v6947_v51 = vld [vmem:[#allocation57_spill] sm:$0xff] }
 0x758   :  { %1846 = vmatprep.subr.bf16.mxu0 %v6384_v60  ;;  %1887 = vmatprep.subr.bf16.mxu1 %v6390_v25  ;;  %v6948_v60 = vld [vmem:[#allocation58_spill] sm:$0xff] }
 0x75b   :  { %1847 = vmatpush1.bf16.msra.mxu0 %v6396_v59  ;;  %1888 = vmatpush1.bf16.msra.mxu1 %v6402_v58 }
 0x75c   :  { %1848 = vmatprep.subr.bf16.mxu0 %v6460_v3  ;;  %1889 = vmatprep.subr.bf16.mxu1 %v6466_v8  ;;  %v6949_v3 = vld [vmem:[#allocation59_spill] sm:$0xff] }
 0x75f   :  { %1849 = vmatpush1.bf16.msra.mxu0 %v6472_v56  ;;  %1890 = vmatpush1.bf16.msra.mxu1 %v6478_v61  ;;  %v6950_v56 = vld [vmem:[#allocation60_spill] sm:$0xff] }
 0x760   :  { %1850 = vmatprep.subr.bf16.mxu0 %v6484_v10  ;;  %1891 = vmatprep.subr.bf16.mxu1 %v6490_v63 }
 0x763   :  { %1851 = vmatpush1.bf16.msra.mxu0 %v6496_v11  ;;  %1892 = vmatpush1.bf16.msra.mxu1 %v6502_v18 }
 0x764   :  { %1852 = vmatprep.subr.bf16.mxu0 %v6508_v22  ;;  %1893 = vmatprep.subr.bf16.mxu1 %v6514_v30 }
 0x767   :  { %1853 = vmatpush1.bf16.msra.mxu0 %v6520_v28  ;;  %1894 = vmatpush1.bf16.msra.mxu1 %v6526_v29 }
 0x768   :  { %1854 = vmatprep.subr.bf16.mxu0 %v6532_v33  ;;  %1895 = vmatprep.subr.bf16.mxu1 %v6538_v34 }
 0x76b   :  { %1855 = vmatpush1.bf16.msra.mxu0 %v6586_v2  ;;  %1896 = vmatpush1.bf16.msra.mxu1 %v6592_v4 }
 0x76c   :  { %1856 = vmatprep.subr.bf16.mxu0 %v6598_v37  ;;  %1897 = vmatprep.subr.bf16.mxu1 %v6604_v38 }
 0x76f   :  { %1857 = vmatpush1.bf16.msra.mxu0 %v6610_v40  ;;  %1898 = vmatpush1.bf16.msra.mxu1 %v6616_v41 }
 0x770   :  { %2567 = vmatprep.subr.bf16.mxu0 %v4972_v62  ;;  %2608 = vmatprep.subr.bf16.mxu1 %v4996_v31  ;;  %v4988_v62 = vld [vmem:[#allocation11 + $0xc0] ss:$16 sps:$4 sm:$0xff]  }
 0x771   :  { %v5030_v31 = vld [vmem:[#allocation11 + $0x2c0] ss:$16 sps:$4 sm:$0xff]  }
 0x825   :  { %v1765_v39 = vpop.f32.mrb[40].mxu0  ;;  %v1806_v17 = vpop.f32.mrb[40].mxu1 }
 0x826   :  { %v1813_v16 = vadd.f32 %v1765_v39, %v6947_v51  ;;  %v1815_v25 = vadd.f32 %v1806_v17, %v6948_v60  ;;  %v1767_v59 = vpop.f32.mrb[41].mxu0  ;;  %v1808_v58 = vpop.f32.mrb[41].mxu1  ;;  %v4993_v39 = vld [vmem:[#allocation11 + $0xe4] ss:$16 sps:$4 sm:$0xff]   ;;  %v4991_v51 = vld [vmem:[#allocation11 + $0xe0] ss:$16 sps:$4 sm:$0xff]  }
 0x827   :  { %v1814_v8 = vadd.f32 %v1767_v59, %v6949_v3  ;;  %v1816_v61 = vadd.f32 %v1808_v58, %v6950_v56  ;;  %v1769_v10 = vpop.f32.mrb[42].mxu0  ;;  %v1810_v63 = vpop.f32.mrb[42].mxu1  ;;  %v5038_v17 = vld [vmem:[#allocation11 + $0x2e4] ss:$16 sps:$4 sm:$0xff]   ;;  %v5044_v59 = vld [vmem:[#allocation11 + $0xc] ss:$16 sps:$4 sm:$0xff]  }
 0x828   :  { %v4580_v11 = vmul.f32 -1.442695, %v1813_v16  ;;  %v1770_v18 = vpop.f32.mrb[43].mxu0  ;;  %v1811_v22 = vpop.f32.mrb[43].mxu1  ;;  %v5036_v16 = vld [vmem:[#allocation11 + $0x2e0] ss:$16 sps:$4 sm:$0xff]  }
 0x829   :  { %v4581_v30 = vmul.f32 -1.442695, %v1814_v8  ;;  %v4582_v28 = vmul.f32 -1.442695, %v1816_v61  ;;  %v1987_v60 = vld [vmem:[%s6951_s6 + $0x10] sm:$0xff] }
 0x82a   :  { %5258 = vpow2.f32 %v4580_v11  ;;  %v6679_v58 = vpack.c.bf16 %v1987_v60, %v1987_v60  ;;  %v4997_v3 = vld [vmem:[#allocation11 + $0x100] ss:$16 sps:$4 sm:$0xff]   ;;  %v5042_v8 = vld [vmem:[#allocation11 + $0x8] ss:$16 sps:$4 sm:$0xff]   ;;  %v5005_v56 = vld [vmem:[#allocation11 + $0x124] ss:$16 sps:$4 sm:$0xff]  }
 0x82b   :  { %5260 = vpow2.f32 %v4581_v30  ;;  %v5047_v61 = vld [vmem:[#allocation11 + $0x2c] ss:$16 sps:$4 sm:$0xff]   ;;  %v5003_v10 = vld [vmem:[#allocation11 + $0x120] ss:$16 sps:$4 sm:$0xff]   ;;  %v5045_v63 = vld [vmem:[#allocation11 + $0x28] ss:$16 sps:$4 sm:$0xff]  }
 0x82c   :  { %5262 = vpow2.f32 %v4582_v28  ;;  %v5011_v11 = vld [vmem:[#allocation11 + $0x144] ss:$16 sps:$4 sm:$0xff]   ;;  %v5050_v18 = vld [vmem:[#allocation11 + $0x4c] ss:$16 sps:$4 sm:$0xff]   ;;  %v5009_v22 = vld [vmem:[#allocation11 + $0x140] ss:$16 sps:$4 sm:$0xff]  }
 0x82d   :  { %5264 = vtanh.f32 %v1815_v25  ;;  %v4999_v25 = vld [vmem:[#allocation11 + $0x104] ss:$16 sps:$4 sm:$0xff]   ;;  %v5048_v30 = vld [vmem:[#allocation11 + $0x48] ss:$16 sps:$4 sm:$0xff]   ;;  %v5107_v60 = vld [vmem:[#allocation11 + $0x1cc] ss:$16 sps:$4 sm:$0xff]  }
 0x82e   :  { %v5017_v28 = vld [vmem:[#allocation11 + $0x164] ss:$16 sps:$4 sm:$0xff]  }
 0x834   :  { %v5259_v29 = vpop.eup %5258 }
 0x835   :  { %v5261_v33 = vpop.eup %5260  ;;  %v1820_v34 = vadd.f32 1.0, %v5259_v29  ;;  %v5053_v29 = vld [vmem:[#allocation11 + $0x6c] ss:$16 sps:$4 sm:$0xff]  }
 0x836   :  { %v1826_v6 = vadd.f32 1.0, %v5261_v33  ;;  %v5263_v2 = vpop.eup %5262  ;;  %v5015_v33 = vld [vmem:[#allocation11 + $0x160] ss:$16 sps:$4 sm:$0xff]  }
 0x837   :  { %5266 = vrcp.f32 %v1820_v34  ;;  %v5265_v4 = vpop.eup %5264  ;;  %v1833_v41 = vadd.f32 1.0, %v5263_v2  ;;  %v5051_v34 = vld [vmem:[#allocation11 + $0x68] ss:$16 sps:$4 sm:$0xff]   ;;  %v5056_v2 = vld [vmem:[#allocation11 + $0x8c] ss:$16 sps:$4 sm:$0xff]  }
 0x838   :  { %5268 = vrcp.f32 %v1826_v6  ;;  %v5023_v6 = vld [vmem:[#allocation11 + $0x184] ss:$16 sps:$4 sm:$0xff]  }
 0x839   :  { %5270 = vrcp.f32 %v1833_v41  ;;  %v5027_v41 = vld [vmem:[#allocation11 + $0x1a0] ss:$16 sps:$4 sm:$0xff]  }
 0x841   :  { %v5267_v37 = vpop.eup %5266 }
 0x842   :  { %v5269_v38 = vpop.eup %5268  ;;  %v1837_v40 = vmul.f32 %v5267_v37, %v5265_v4  ;;  %v5021_v4 = vld [vmem:[#allocation11 + $0x180] ss:$16 sps:$4 sm:$0xff]   ;;  %v5054_v37 = vld [vmem:[#allocation11 + $0x88] ss:$16 sps:$4 sm:$0xff]  }
 0x843   :  { %v1836_v50 = vmul.f32 %v5269_v38, %v6626_v44  ;;  %v5271_v52 = vpop.eup %5270  ;;  %v5026_v44 = vld [vmem:[#allocation11 + $0x2a4] ss:$16 sps:$4 sm:$0xff]  }
 0x844   :  { %v5029_v38 = vld [vmem:[#allocation11 + $0x1a4] ss:$16 sps:$4 sm:$0xff]  }
 0x845   :  { %v6666_v47 = vadd.f32 %v1837_v40, %v1836_v50  ;;  %v5059_v40 = vld [vmem:[#allocation11 + $0xac] ss:$16 sps:$4 sm:$0xff]   ;;  %v5057_v50 = vld [vmem:[#allocation11 + $0xa8] ss:$16 sps:$4 sm:$0xff]  }
 0x847   :  { %5272 = vtanh.f32 %v6666_v47 }
 0x851   :  { %v5273_v48 = vpop.eup %5272 }
 0x852   :  { %v1840_v53 = vmul.f32 %v5273_v48, %v5271_v52  ;;  %v5035_v52 = vld [vmem:[#allocation11 + $0x1c4] ss:$16 sps:$4 sm:$0xff]   ;;  %v5062_v48 = vld [vmem:[#allocation11 + $0xcc] ss:$16 sps:$4 sm:$0xff]  }
 0x854   :  { %v1841_v55 = vpack.c.bf16 %v1840_v53, %v1840_v53  ;;  %v5033_v53 = vld [vmem:[#allocation11 + $0x1c0] ss:$16 sps:$4 sm:$0xff]  }
 0x856   :  { %1875 = vmatmul.mubr.bf16.vlgmr.msra.gmra.mrb[44].mxu0 %v1841_v55  ;;  %1916 = vmatmul.mubr.bf16.vlgmr.msra.gmra.mrb[44].mxu1 %v1841_v55  ;;  %v5039_v55 = vld [vmem:[#allocation11 + $0x1e0] ss:$16 sps:$4 sm:$0xff]  }
 0x857   :  { %2568 = vmatpush1.bf16.msra.mxu0 %v4970_v54  ;;  %2609 = vmatpush1.bf16.msra.mxu1 %v4994_v7  ;;  %v5041_v54 = vld [vmem:[#allocation11 + $0x1e4] ss:$16 sps:$4 sm:$0xff]   ;;  %v5065_v7 = vld [vmem:[#allocation11 + $0xec] ss:$16 sps:$4 sm:$0xff]  }
 0x858   :  { %2569 = vmatprep.subr.bf16.mxu0 %v4975_v9  ;;  %2610 = vmatprep.subr.bf16.mxu1 %v5002_v12  ;;  %v1985_v9 = vld [vmem:[%s6951_s6] sm:$0xff]  ;;  %v5063_v12 = vld [vmem:[#allocation11 + $0xe8] ss:$16 sps:$4 sm:$0xff]  }
 0x859   :  { %2640 = vmatprep.mubr.bf16.mxu1 %v6933_v32  ;;  %2599 = vmatprep.mubr.bf16.mxu0 %v6672_v13 }
 0x85b   :  { %2570 = vmatpush1.bf16.msra.mxu0 %v4973_v14  ;;  %2611 = vmatpush1.bf16.msra.mxu1 %v5000_v15  ;;  %v5071_v14 = vld [vmem:[#allocation11 + $0x10c] ss:$16 sps:$4 sm:$0xff]   ;;  %v6686_v15 = vpack.c.bf16 %v1985_v9, %v1985_v9  ;;  %v5158_v9 = vld [vmem:[#allocation9 + $0xe4] ss:$16 sps:$4 sm:$0xff]  }
 0x85c   :  { %2571 = vmatprep.subr.bf16.mxu0 %v4978_v26  ;;  %2612 = vmatprep.subr.bf16.mxu1 %v5008_v27  ;;  %v5066_v26 = vld [vmem:[#allocation11 + $0x208] ss:$16 sps:$4 sm:$0xff]  }
 0x85d   :  { %v5069_v27 = vld [vmem:[#allocation11 + $0x108] ss:$16 sps:$4 sm:$0xff]  }
 0x85f   :  { %2572 = vmatpush1.bf16.msra.mxu0 %v4976_v19  ;;  %2613 = vmatpush1.bf16.msra.mxu1 %v5006_v20  ;;  %v5074_v19 = vld [vmem:[#allocation11 + $0x22c] ss:$16 sps:$4 sm:$0xff]  }
 0x860   :  { %2573 = vmatprep.subr.bf16.mxu0 %v4981_v23  ;;  %2614 = vmatprep.subr.bf16.mxu1 %v5014_v24  ;;  %v5077_v20 = vld [vmem:[#allocation11 + $0x12c] ss:$16 sps:$4 sm:$0xff]   ;;  %v5072_v23 = vld [vmem:[#allocation11 + $0x228] ss:$16 sps:$4 sm:$0xff]  }
 0x861   :  { %v5075_v24 = vld [vmem:[#allocation11 + $0x128] ss:$16 sps:$4 sm:$0xff]  }
 0x863   :  { %2574 = vmatpush1.bf16.msra.mxu0 %v4979_v57  ;;  %2615 = vmatpush1.bf16.msra.mxu1 %v5012_v35  ;;  %v5080_v57 = vld [vmem:[#allocation11 + $0x24c] ss:$16 sps:$4 sm:$0xff]  }
 0x864   :  { %2575 = vmatprep.subr.bf16.mxu0 %v4984_v45  ;;  %2616 = vmatprep.subr.bf16.mxu1 %v5020_v1  ;;  %v5083_v35 = vld [vmem:[#allocation11 + $0x14c] ss:$16 sps:$4 sm:$0xff]   ;;  %v5078_v45 = vld [vmem:[#allocation11 + $0x248] ss:$16 sps:$4 sm:$0xff]  }
 0x865   :  { %v5081_v1 = vld [vmem:[#allocation11 + $0x148] ss:$16 sps:$4 sm:$0xff]  }
 0x867   :  { %2576 = vmatpush1.bf16.msra.mxu0 %v4982_v5  ;;  %2617 = vmatpush1.bf16.msra.mxu1 %v5018_v0  ;;  %v5086_v5 = vld [vmem:[#allocation11 + $0x26c] ss:$16 sps:$4 sm:$0xff]  }
 0x868   :  { %2577 = vmatprep.subr.bf16.mxu0 %v4987_v36  ;;  %2618 = vmatprep.subr.bf16.mxu1 %v5026_v44  ;;  %v5089_v0 = vld [vmem:[#allocation11 + $0x16c] ss:$16 sps:$4 sm:$0xff]   ;;  %v5084_v36 = vld [vmem:[#allocation11 + $0x268] ss:$16 sps:$4 sm:$0xff]  }
 0x869   :  { %v5087_v44 = vld [vmem:[#allocation11 + $0x168] ss:$16 sps:$4 sm:$0xff]  }
 0x86b   :  { %2578 = vmatpush1.bf16.msra.mxu0 %v4985_v46  ;;  %2619 = vmatpush1.bf16.msra.mxu1 %v5024_v42  ;;  %v5092_v46 = vld [vmem:[#allocation11 + $0x28c] ss:$16 sps:$4 sm:$0xff]   ;;  %v5090_v42 = vld [vmem:[#allocation11 + $0x288] ss:$16 sps:$4 sm:$0xff]  }
 0x86c   :  { %2579 = vmatprep.subr.bf16.mxu0 %v4990_v49  ;;  %2620 = vmatprep.subr.bf16.mxu1 %v5032_v43  ;;  %v5095_v49 = vld [vmem:[#allocation11 + $0x18c] ss:$16 sps:$4 sm:$0xff]   ;;  %v5093_v43 = vld [vmem:[#allocation11 + $0x188] ss:$16 sps:$4 sm:$0xff]  }
 0x86f   :  { %2580 = vmatpush1.bf16.msra.mxu0 %v4988_v62  ;;  %2621 = vmatpush1.bf16.msra.mxu1 %v5030_v31  ;;  %v5098_v62 = vld [vmem:[#allocation11 + $0x2ac] ss:$16 sps:$4 sm:$0xff]   ;;  %v5096_v31 = vld [vmem:[#allocation11 + $0x2a8] ss:$16 sps:$4 sm:$0xff]  }
 0x870   :  { %2581 = vmatprep.subr.bf16.mxu0 %v4993_v39  ;;  %2622 = vmatprep.subr.bf16.mxu1 %v5038_v17  ;;  %v5101_v39 = vld [vmem:[#allocation11 + $0x1ac] ss:$16 sps:$4 sm:$0xff]   ;;  %v5099_v17 = vld [vmem:[#allocation11 + $0x1a8] ss:$16 sps:$4 sm:$0xff]  }
 0x873   :  { %2582 = vmatpush1.bf16.msra.mxu0 %v4991_v51  ;;  %2623 = vmatpush1.bf16.msra.mxu1 %v5036_v16  ;;  %v5104_v51 = vld [vmem:[#allocation11 + $0x2cc] ss:$16 sps:$4 sm:$0xff]   ;;  %v5102_v16 = vld [vmem:[#allocation11 + $0x2c8] ss:$16 sps:$4 sm:$0xff]  }
 0x874   :  { %2583 = vmatprep.subr.bf16.mxu0 %v4999_v25  ;;  %2649 = vmatprep.subr.bf16.mxu1 %v5044_v59  ;;  %v5105_v25 = vld [vmem:[#allocation11 + $0x1c8] ss:$16 sps:$4 sm:$0xff]   ;;  %v5110_v59 = vld [vmem:[#allocation11 + $0x2ec] ss:$16 sps:$4 sm:$0xff]  }
 0x876   :  { %2641 = vmatmul.mubr.bf16.vlgmr.msra.gmra.mrb[48].mxu1 %v6679_v58 }
 0x877   :  { %2584 = vmatpush1.bf16.msra.mxu0 %v4997_v3  ;;  %2650 = vmatpush1.bf16.msra.mxu1 %v5042_v8  ;;  %v5108_v3 = vld [vmem:[#allocation11 + $0x2e8] ss:$16 sps:$4 sm:$0xff]   ;;  %v5113_v8 = vld [vmem:[#allocation11 + $0x1ec] ss:$16 sps:$4 sm:$0xff]  }
 0x878   :  { %2585 = vmatprep.subr.bf16.mxu0 %v5005_v56  ;;  %2651 = vmatprep.subr.bf16.mxu1 %v5047_v61  ;;  %v5111_v56 = vld [vmem:[#allocation11 + $0x1e8] ss:$16 sps:$4 sm:$0xff]   ;;  %v5116_v61 = vld [vmem:[#allocation9 + $0x4] ss:$16 sps:$4 sm:$0xff]  }
 0x879   :  { %2681 = vmatprep.mubr.bf16.mxu1 %v6672_v13  ;;  %v5068_v13 = vld [vmem:[#allocation11 + $0x20c] ss:$16 sps:$4 sm:$0xff]  }
 0x87b   :  { %2586 = vmatpush1.bf16.msra.mxu0 %v5003_v10  ;;  %2652 = vmatpush1.bf16.msra.mxu1 %v5045_v63  ;;  %v5119_v10 = vld [vmem:[#allocation9 + $0xc] ss:$16 sps:$4 sm:$0xff]   ;;  %v5114_v63 = vld [vmem:[#allocation9] ss:$16 sps:$4 sm:$0xff]  }
 0x87c   :  { %2587 = vmatprep.subr.bf16.mxu0 %v5011_v11  ;;  %2653 = vmatprep.subr.bf16.mxu1 %v5050_v18  ;;  %v5117_v11 = vld [vmem:[#allocation9 + $0x8] ss:$16 sps:$4 sm:$0xff]   ;;  %v5122_v18 = vld [vmem:[#allocation9 + $0x24] ss:$16 sps:$4 sm:$0xff]  }
 0x87f   :  { %2588 = vmatpush1.bf16.msra.mxu0 %v5009_v22  ;;  %2654 = vmatpush1.bf16.msra.mxu1 %v5048_v30  ;;  %v5125_v22 = vld [vmem:[#allocation9 + $0x2c] ss:$16 sps:$4 sm:$0xff]   ;;  %v5120_v30 = vld [vmem:[#allocation9 + $0x20] ss:$16 sps:$4 sm:$0xff]  }
 0x880   :  { %2589 = vmatprep.subr.bf16.mxu0 %v5017_v28  ;;  %2655 = vmatprep.subr.bf16.mxu1 %v5053_v29  ;;  %v5123_v28 = vld [vmem:[#allocation9 + $0x28] ss:$16 sps:$4 sm:$0xff]   ;;  %v5131_v29 = vld [vmem:[#allocation9 + $0x4c] ss:$16 sps:$4 sm:$0xff]  }
 0x883   :  { %2590 = vmatpush1.bf16.msra.mxu0 %v5015_v33  ;;  %2656 = vmatpush1.bf16.msra.mxu1 %v5051_v34  ;;  %v5126_v33 = vld [vmem:[#allocation9 + $0x40] ss:$16 sps:$4 sm:$0xff]   ;;  %v5129_v34 = vld [vmem:[#allocation9 + $0x48] ss:$16 sps:$4 sm:$0xff]  }
 0x884   :  { %2591 = vmatprep.subr.bf16.mxu0 %v5023_v6  ;;  %2657 = vmatprep.subr.bf16.mxu1 %v5056_v2  ;;  %v5134_v6 = vld [vmem:[#allocation9 + $0x64] ss:$16 sps:$4 sm:$0xff]   ;;  %v5137_v2 = vld [vmem:[#allocation9 + $0x6c] ss:$16 sps:$4 sm:$0xff]  }
 0x887   :  { %2592 = vmatpush1.bf16.msra.mxu0 %v5021_v4  ;;  %2658 = vmatpush1.bf16.msra.mxu1 %v5054_v37  ;;  %v5132_v4 = vld [vmem:[#allocation9 + $0x60] ss:$16 sps:$4 sm:$0xff]   ;;  %v5135_v37 = vld [vmem:[#allocation9 + $0x68] ss:$16 sps:$4 sm:$0xff]  }
 0x888   :  { %2593 = vmatprep.subr.bf16.mxu0 %v5029_v38  ;;  %2659 = vmatprep.subr.bf16.mxu1 %v5059_v40  ;;  %v5143_v38 = vld [vmem:[#allocation9 + $0x8c] ss:$16 sps:$4 sm:$0xff]   ;;  %v5138_v40 = vld [vmem:[#allocation9 + $0x80] ss:$16 sps:$4 sm:$0xff]  }
 0x88b   :  { %2594 = vmatpush1.bf16.msra.mxu0 %v5027_v41  ;;  %2660 = vmatpush1.bf16.msra.mxu1 %v5057_v50  ;;  %v5141_v41 = vld [vmem:[#allocation9 + $0x88] ss:$16 sps:$4 sm:$0xff]   ;;  %v5146_v50 = vld [vmem:[#allocation9 + $0xa4] ss:$16 sps:$4 sm:$0xff]  }
 0x88c   :  { %2595 = vmatprep.subr.bf16.mxu0 %v5035_v52  ;;  %2661 = vmatprep.subr.bf16.mxu1 %v5062_v48  ;;  %v5144_v52 = vld [vmem:[#allocation9 + $0xa0] ss:$16 sps:$4 sm:$0xff]   ;;  %v5149_v48 = vld [vmem:[#allocation9 + $0xac] ss:$16 sps:$4 sm:$0xff]  }
 0x88f   :  { %2596 = vmatpush1.bf16.msra.mxu0 %v5033_v53  ;;  %2662 = vmatpush1.bf16.msra.mxu1 %v5060_v21  ;;  %v5147_v53 = vld [vmem:[#allocation9 + $0xa8] ss:$16 sps:$4 sm:$0xff]   ;;  %v5152_v21 = vld [vmem:[#allocation9 + $0xc4] ss:$16 sps:$4 sm:$0xff]  }
 0x890   :  { %2597 = vmatprep.subr.bf16.mxu0 %v5041_v54  ;;  %2663 = vmatprep.subr.bf16.mxu1 %v5065_v7  ;;  %v5155_v54 = vld [vmem:[#allocation9 + $0xcc] ss:$16 sps:$4 sm:$0xff]   ;;  %v5150_v7 = vld [vmem:[#allocation9 + $0xc0] ss:$16 sps:$4 sm:$0xff]  }
 0x893   :  { %2598 = vmatpush1.bf16.msra.mxu0 %v5039_v55  ;;  %2664 = vmatpush1.bf16.msra.mxu1 %v5063_v12  ;;  %v5153_v55 = vld [vmem:[#allocation9 + $0xc8] ss:$16 sps:$4 sm:$0xff]   ;;  %v5161_v12 = vld [vmem:[#allocation9 + $0xec] ss:$16 sps:$4 sm:$0xff]  }
 0x894   :  { %2690 = vmatprep.subr.bf16.mxu0 %v5068_v13  ;;  %2665 = vmatprep.subr.bf16.mxu1 %v5071_v14  ;;  %v5156_v13 = vld [vmem:[#allocation9 + $0xe0] ss:$16 sps:$4 sm:$0xff]   ;;  %v5159_v14 = vld [vmem:[#allocation9 + $0xe8] ss:$16 sps:$4 sm:$0xff]  }
 0x896   :  { %2600 = vmatmul.mubr.bf16.vlgmr.msra.gmra.mrb[48].mxu0 %v6686_v15 }
 0x897   :  { %2691 = vmatpush1.bf16.msra.mxu0 %v5066_v26  ;;  %2666 = vmatpush1.bf16.msra.mxu1 %v5069_v27  ;;  %v6952_v27 = vld [vmem:[#allocation61_spill] sm:$0xff] }
 0x898   :  { %2692 = vmatprep.subr.bf16.mxu0 %v5074_v19  ;;  %2667 = vmatprep.subr.bf16.mxu1 %v5077_v20  ;;  %v6953_v20 = vld [vmem:[#allocation62_spill] sm:$0xff] }
 0x899   :  { %2722 = vmatprep.mubr.bf16.mxu0 %v6933_v32 }
 0x89b   :  { %2693 = vmatpush1.bf16.msra.mxu0 %v5072_v23  ;;  %2668 = vmatpush1.bf16.msra.mxu1 %v5075_v24 }
 0x89c   :  { %2694 = vmatprep.subr.bf16.mxu0 %v5080_v57  ;;  %2669 = vmatprep.subr.bf16.mxu1 %v5083_v35  ;;  %v6954_v35 = vld [vmem:[#allocation63_spill] sm:$0xff] }
 0x89f   :  { %2695 = vmatpush1.bf16.msra.mxu0 %v5078_v45  ;;  %2670 = vmatpush1.bf16.msra.mxu1 %v5081_v1  ;;  %v6955_v1 = vld [vmem:[#allocation64_spill] sm:$0xff] }
 0x8a0   :  { %2696 = vmatprep.subr.bf16.mxu0 %v5086_v5  ;;  %2671 = vmatprep.subr.bf16.mxu1 %v5089_v0 }
 0x8a3   :  { %2697 = vmatpush1.bf16.msra.mxu0 %v5084_v36  ;;  %2672 = vmatpush1.bf16.msra.mxu1 %v5087_v44 }
 0x8a4   :  { %2698 = vmatprep.subr.bf16.mxu0 %v5092_v46  ;;  %2673 = vmatprep.subr.bf16.mxu1 %v5095_v49 }
 0x8a7   :  { %2699 = vmatpush1.bf16.msra.mxu0 %v5090_v42  ;;  %2674 = vmatpush1.bf16.msra.mxu1 %v5093_v43 }
 0x8a8   :  { %2700 = vmatprep.subr.bf16.mxu0 %v5098_v62  ;;  %2675 = vmatprep.subr.bf16.mxu1 %v5101_v39 }
 0x8ab   :  { %2701 = vmatpush1.bf16.msra.mxu0 %v5096_v31  ;;  %2676 = vmatpush1.bf16.msra.mxu1 %v5099_v17 }
 0x8ac   :  { %2702 = vmatprep.subr.bf16.mxu0 %v5104_v51  ;;  %2677 = vmatprep.subr.bf16.mxu1 %v5107_v60 }
 0x8af   :  { %2703 = vmatpush1.bf16.msra.mxu0 %v5102_v16  ;;  %2678 = vmatpush1.bf16.msra.mxu1 %v5105_v25 }
 0x8b0   :  { %2704 = vmatprep.subr.bf16.mxu0 %v5110_v59  ;;  %2679 = vmatprep.subr.bf16.mxu1 %v5113_v8 }
 0x8b3   :  { %2705 = vmatpush1.bf16.msra.mxu0 %v5108_v3  ;;  %2680 = vmatpush1.bf16.msra.mxu1 %v5111_v56 }
 0x8b4   :  { %2891 = vmatprep.subr.bf16.mxu0 %v5116_v61  ;;  %2932 = vmatprep.subr.bf16.mxu1 %v5119_v10 }
 0x8b6   :  { %2723 = vmatmul.mubr.bf16.vlgmr.msra.gmra.mrb[52].mxu0 %v6679_v58  ;;  %2682 = vmatmul.mubr.bf16.vlgmr.msra.gmra.mrb[52].mxu1 %v6686_v15  ;;  %v5128_v58 = vld [vmem:[#allocation9 + $0x44] ss:$16 sps:$4 sm:$0xff]  }
 0x8b7   :  { %2923 = vmatprep.mubr.bf16.mxu0 %v6933_v32  ;;  %2892 = vmatpush1.bf16.msra.mxu0 %v5114_v63 }
 0x8b8   :  { %2933 = vmatpush1.bf16.msra.mxu1 %v5117_v11  ;;  %2964 = vmatprep.mubr.bf16.mxu1 %v6933_v32  ;;  %v5140_v32 = vld [vmem:[#allocation9 + $0x84] ss:$16 sps:$4 sm:$0xff]  }
 0x8b9   :  { %2893 = vmatprep.subr.bf16.mxu0 %v5122_v18  ;;  %2934 = vmatprep.subr.bf16.mxu1 %v5125_v22 }
 0x8bb   :  { %2894 = vmatpush1.bf16.msra.mxu0 %v5120_v30 }
 0x8bc   :  { %2935 = vmatpush1.bf16.msra.mxu1 %v5123_v28  ;;  %2895 = vmatprep.subr.bf16.mxu0 %v5128_v58 }
 0x8bd   :  { %2936 = vmatprep.subr.bf16.mxu1 %v5131_v29 }
 0x8bf   :  { %2896 = vmatpush1.bf16.msra.mxu0 %v5126_v33 }
 0x8c0   :  { %2937 = vmatpush1.bf16.msra.mxu1 %v5129_v34  ;;  %2897 = vmatprep.subr.bf16.mxu0 %v5134_v6 }
 0x8c1   :  { %2938 = vmatprep.subr.bf16.mxu1 %v5137_v2 }
 0x8c3   :  { %2898 = vmatpush1.bf16.msra.mxu0 %v5132_v4 }
 0x8c4   :  { %2939 = vmatpush1.bf16.msra.mxu1 %v5135_v37  ;;  %2899 = vmatprep.subr.bf16.mxu0 %v5140_v32 }
 0x8c5   :  { %2940 = vmatprep.subr.bf16.mxu1 %v5143_v38 }
 0x8c7   :  { %2900 = vmatpush1.bf16.msra.mxu0 %v5138_v40 }
 0x8c8   :  { %2941 = vmatpush1.bf16.msra.mxu1 %v5141_v41  ;;  %2901 = vmatprep.subr.bf16.mxu0 %v5146_v50 }
 0x8c9   :  { %2942 = vmatprep.subr.bf16.mxu1 %v5149_v48 }
 0x8cb   :  { %2902 = vmatpush1.bf16.msra.mxu0 %v5144_v52 }
 0x8cc   :  { %2943 = vmatpush1.bf16.msra.mxu1 %v5147_v53  ;;  %2903 = vmatprep.subr.bf16.mxu0 %v5152_v21  ;;  %v2973_v53 = vld [vmem:[%s6956_s8] sm:$0xf]  ;;  %v6957_v21 = vld [vmem:[#allocation42_spill] sm:$0xff] }
 0x8cd   :  { %2944 = vmatprep.subr.bf16.mxu1 %v5155_v54  ;;  %v2978_v54 = vrot.slane %v2973_v53, %v6957_v21 }
 0x8cf   :  { %2904 = vmatpush1.bf16.msra.mxu0 %v5150_v7 }
 0x8d0   :  { %2945 = vmatpush1.bf16.msra.mxu1 %v5153_v55  ;;  %2905 = vmatprep.subr.bf16.mxu0 %v5158_v9  ;;  %v6958_v9 = vld [vmem:[#allocation40_spill] sm:$0xff] }
 0x8d1   :  { %2946 = vmatprep.subr.bf16.mxu1 %v5161_v12  ;;  %v2986_v12 = vrot.slane %v2973_v53, %v6958_v9 }
 0x8d3   :  { %2906 = vmatpush1.bf16.msra.mxu0 %v5156_v13  ;;  %v6959_v13 = vld [vmem:[#allocation43_spill] sm:$0xff] }
 0x8d4   :  { %2947 = vmatpush1.bf16.msra.mxu1 %v5159_v14  ;;  %v2982_v14 = vrot.slane %v2973_v53, %v6959_v13 }
 0x929   :  { %v1876_v15 = vpop.f32.mrb[44].mxu0  ;;  %v1917_v26 = vpop.f32.mrb[44].mxu1 }
 0x92a   :  { %v1924_v19 = vadd.f32 %v1876_v15, %v6952_v27  ;;  %v1926_v23 = vadd.f32 %v1917_v26, %v6953_v20  ;;  %v1878_v24 = vpop.f32.mrb[45].mxu0  ;;  %v1919_v57 = vpop.f32.mrb[45].mxu1 }
 0x92b   :  { %v1925_v45 = vadd.f32 %v1878_v24, %v6954_v35  ;;  %v1927_v5 = vadd.f32 %v1919_v57, %v6955_v1  ;;  %v1880_v0 = vpop.f32.mrb[46].mxu0  ;;  %v1921_v36 = vpop.f32.mrb[46].mxu1 }
 0x92c   :  { %v4583_v44 = vmul.f32 -1.442695, %v1924_v19  ;;  %v1881_v46 = vpop.f32.mrb[47].mxu0  ;;  %v1922_v42 = vpop.f32.mrb[47].mxu1  ;;  %v6960_v36 = vld [vmem:[#allocation41_spill] sm:$0xff] }
 0x92d   :  { %v4584_v49 = vmul.f32 -1.442695, %v1925_v45  ;;  %v4585_v43 = vmul.f32 -1.442695, %v1927_v5 }
 0x92e   :  { %5274 = vpow2.f32 %v4583_v44  ;;  %v2990_v44 = vrot.slane %v2973_v53, %v6960_v36 }
 0x92f   :  { %5276 = vpow2.f32 %v4584_v49 }
 0x930   :  { %5278 = vpow2.f32 %v4585_v43 }
 0x931   :  { %5280 = vtanh.f32 %v1926_v23 }
 0x938   :  { %v5275_v62 = vpop.eup %5274 }
 0x939   :  { %v5277_v31 = vpop.eup %5276  ;;  %v1931_v39 = vadd.f32 1.0, %v5275_v62 }
 0x93a   :  { %v1937_v17 = vadd.f32 1.0, %v5277_v31  ;;  %v5279_v51 = vpop.eup %5278 }
 0x93b   :  { %5282 = vrcp.f32 %v1931_v39  ;;  %v5281_v16 = vpop.eup %5280  ;;  %v1944_v3 = vadd.f32 1.0, %v5279_v51 }
 0x93c   :  { %5284 = vrcp.f32 %v1937_v17 }
 0x93d   :  { %5286 = vrcp.f32 %v1944_v3 }
 0x945   :  { %v5283_v60 = vpop.eup %5282 }
 0x946   :  { %v5285_v25 = vpop.eup %5284  ;;  %v1948_v59 = vmul.f32 %v5283_v60, %v5281_v16 }
 0x947   :  { %v1947_v8 = vmul.f32 %v5285_v25, %v6666_v47  ;;  %v5287_v18 = vpop.eup %5286 }
 0x949   :  { %v1949_v56 = vadd.f32 %v1948_v59, %v1947_v8  ;;  %v2642_v61 = vpop.f32.mrb[48].mxu1 }
 0x94a   :  { %v2644_v10 = vpop.f32.mrb[49].mxu1 }
 0x94b   :  { %5288 = vtanh.f32 %v1949_v56  ;;  %v2646_v63 = vpop.f32.mrb[50].mxu1 }
 0x94c   :  { %v2647_v11 = vpop.f32.mrb[51].mxu1 }
 0x955   :  { %v5289_v22 = vpop.eup %5288 }
 0x956   :  { %v1951_v30 = vmul.f32 %v5289_v22, %v5287_v18 }
 0x958   :  { %v1952_v28 = vpack.c.bf16 %v1951_v30, %v1951_v30 }
 0x95a   :  { %2924 = vmatmul.mubr.bf16.vlgmr.msra.gmra.mrb[56].mxu0 %v1952_v28  ;;  %2965 = vmatmul.mubr.bf16.vlgmr.msra.gmra.mrb[56].mxu1 %v1952_v28 }
 0x969   :  { %v2601_v58 = vpop.f32.mrb[48].mxu0 }
 0x96a   :  { %v2643_v29 = vadd.f32 %v2642_v61, %v2601_v58  ;;  %v2603_v33 = vpop.f32.mrb[49].mxu0 }
 0x96b   :  { %v2645_v34 = vadd.f32 %v2644_v10, %v2603_v33  ;;  %v2605_v6 = vpop.f32.mrb[50].mxu0 }
 0x96c   :  { %v2606_v2 = vpop.f32.mrb[51].mxu0 }
 0x989   :  { %v2724_v47 = vpop.f32.mrb[52].mxu0  ;;  %v2683_v32 = vpop.f32.mrb[52].mxu1 }
 0x98a   :  { %v2726_v4 = vpop.f32.mrb[53].mxu0  ;;  %v2725_v40 = vadd.f32 %v2724_v47, %v2683_v32  ;;  %v2685_v41 = vpop.f32.mrb[53].mxu1 }
 0x98b   :  { %v2728_v37 = vpop.f32.mrb[54].mxu0  ;;  %v2727_v50 = vadd.f32 %v2726_v4, %v2685_v41  ;;  %v2687_v52 = vpop.f32.mrb[54].mxu1 }
 0x98c   :  { %v2729_v38 = vpop.f32.mrb[55].mxu0  ;;  %v2688_v48 = vpop.f32.mrb[55].mxu1 }
 0xa2d   :  { %v2925_v7 = vpop.f32.mrb[56].mxu0  ;;  %v2966_v55 = vpop.f32.mrb[56].mxu1 }
 0xa2e   :  { %v2926_v15 = vadd.f32 %v2925_v7, %v2643_v29  ;;  %v2967_v26 = vadd.f32 %v2966_v55, %v2725_v40  ;;  %v2927_v27 = vpop.f32.mrb[57].mxu0  ;;  %v2968_v19 = vpop.f32.mrb[57].mxu1 }
 0xa2f   :  { %v2928_v20 = vadd.f32 %v2927_v27, %v2645_v34  ;;  %v2969_v23 = vadd.f32 %v2968_v19, %v2727_v50  ;;  %v2929_v24 = vpop.f32.mrb[58].mxu0  ;;  %v2970_v57 = vpop.f32.mrb[58].mxu1 }
 0xa30   :  { %v2995_v35 = vadd.f32 %v2978_v54, %v2926_v15  ;;  %v2930_v45 = vpop.f32.mrb[59].mxu0  ;;  %v2971_v1 = vpop.f32.mrb[59].mxu1  ;;  %v2997_v5 = vadd.f32 %v2986_v12, %v2967_v26 }
 0xa31   :  { %v2996_v0 = vadd.f32 %v2982_v14, %v2928_v20  ;;  %v2998_v43 = vadd.f32 %v2990_v44, %v2969_v23 }
 0xa32   :  { %v3007_v46 = vmul.f32 %v2995_v35, %v2995_v35  ;;  %v3009_v31 = vmul.f32 %v2997_v5, %v2997_v5 }
 0xa33   :  { %v3008_v42 = vmul.f32 %v2996_v0, %v2996_v0  ;;  %v3001_v49 = vadd.f32 %v2996_v0, %v2995_v35  ;;  %v3010_v16 = vmul.f32 %v2998_v43, %v2998_v43 }
 0xa35   :  { %v3002_v62 = vadd.f32 %v3001_v49, %v2997_v5  ;;  %v3011_v39 = vadd.f32 %v3008_v42, %v3007_v46 }
 0xa37   :  { %v3003_v17 = vadd.f32 %v3002_v62, %v2998_v43  ;;  %v3012_v51 = vadd.f32 %v3011_v39, %v3009_v31 }
 0xa39   :  { %3004 = vadd.xlane.f32.xlu0 %v3003_v17  ;;  %v3013_v60 = vadd.f32 %v3012_v51, %v3010_v16 }
 0xa3d   :  { %3014 = vadd.xlane.f32.xlu0 %v3013_v60 }
 0xa3e   :  { %5537 = shalt.err (!%p5534_p4)  }
 0xa3f   :  { %s5538_s18 = scalar_lea.vmem %s294_s19, 4096  ;;  %p5543_p6 = scmp.lt.s32.totalorder %s294_s19, %s294_s19 }
 0xa40   :  { %p5539_p5 = scmp.ne.s32.totalorder %s294_s19, %s5538_s18  ;;  %p5544_p7 = scmp.lt.s32.totalorder %s5538_s18, %s5538_s18 }
 0xa42   :  { %p5545_p8 = por %p5544_p7, %p5543_p6 }
 0xa44   :  { %p5546_p9 = pnand %p5545_p8, %p5539_p5 }
 0xa46   :  { %5549 = shalt.err (!%p5546_p9)  }
 0xa47   :  { %296 = dma.hbm_to_vmem [thread:$0]  %s6871_s22, 4096, %s294_s19, [#allocation6 + $0x3]  ;;  %v3000_v11 = vld [vmem:[%s6858_s9] sm:$0xf] }
 0xa48   :  { %s6961_s28 = sld [smem:[#allocation73_spill]]  ;;  %v3058_v2 = vrot.slane %v3000_v11, %v6957_v21  ;;  %v3062_v47 = vrot.slane %v3000_v11, %v6959_v13  ;;  %v3066_v4 = vrot.slane %v3000_v11, %v6958_v9  ;;  %v3070_v37 = vrot.slane %v3000_v11, %v6960_v36 }
 0xa4e   :  { %v2999_v63 = vld [vmem:[%s6961_s28] sm:$0xf] }
 0xa4f   :  { %v3033_v18 = vrot.slane %v2999_v63, %v6957_v21  ;;  %v3037_v22 = vrot.slane %v2999_v63, %v6959_v13  ;;  %v3041_v30 = vrot.slane %v2999_v63, %v6958_v9  ;;  %v3045_v28 = vrot.slane %v2999_v63, %v6960_v36 }
 0xac6   :  { %v3005_v25 = vpop.xlane.xlu0 %3004 }
 0xac7   :  { %v3006_v59 = vmul.f32 0.001953125, %v3005_v25 }
 0xac9   :  { %v3017_v8 = vmul.f32 %v3006_v59, %v3006_v59  ;;  %v3019_v58 = vsub.f32 %v2995_v35, %v3006_v59  ;;  %v3020_v29 = vsub.f32 %v2996_v0, %v3006_v59  ;;  %v3021_v33 = vsub.f32 %v2997_v5, %v3006_v59 }
 0xaca   :  { %v3015_v3 = vpop.xlane.xlu0 %3014  ;;  %v3022_v34 = vsub.f32 %v2998_v43, %v3006_v59 }
 0xacb   :  { %v3016_v56 = vmul.f32 0.001953125, %v3015_v3 }
 0xacd   :  { %v3018_v61 = vsub.f32 %v3016_v56, %v3017_v8 }
 0xacf   :  { %v3023_v10 = vadd.f32 1e-05, %v3018_v61 }
 0xad1   :  { %5290 = vrsqrt.f32 %v3023_v10 }
 0xadb   :  { %v5291_v6 = vpop.eup %5290 }
 0xadc   :  { %v3025_v32 = vmul.f32 %v5291_v6, %v3019_v58  ;;  %v3026_v38 = vmul.f32 %v5291_v6, %v3020_v29  ;;  %v3027_v40 = vmul.f32 %v5291_v6, %v3021_v33  ;;  %v3028_v41 = vmul.f32 %v5291_v6, %v3022_v34 }
 0xade   :  { %v3050_v50 = vmul.f32 %v3033_v18, %v3025_v32  ;;  %v3051_v52 = vmul.f32 %v3037_v22, %v3026_v38  ;;  %v3052_v48 = vmul.f32 %v3041_v30, %v3027_v40  ;;  %v3053_v53 = vmul.f32 %v3045_v28, %v3028_v41 }
 0xae0   :  { %v6732_v54 = vadd.f32 %v3058_v2, %v3050_v50  ;;  %v3076_v7 = vadd.f32 %v3062_v47, %v3051_v52  ;;  %v6734_v55 = vadd.f32 %v3066_v4, %v3052_v48  ;;  %v6736_v12 = vadd.f32 %v3070_v37, %v3053_v53 }
 0xae2   :  { %v3079_v14 = vmax.f32 %v6732_v54, 0.0  ;;  %v3080_v15 = vmax.f32 %v3076_v7, 0.0  ;;  %v3081_v26 = vmax.f32 %v6734_v55, 0.0  ;;  %v3082_v27 = vmax.f32 %v6736_v12, 0.0 }
 0xae3   :  { %5560 = dma.done.wait [#allocation6], 16384 }
 0xae4   :  { %5561 = vsyncadd [#allocation6], 4294950912  ;;  %v3088_v19 = vpack.c.bf16 %v3080_v15, %v3080_v15  ;;  %v3092_v20 = vld [vmem:[#allocation2 + $0x8] sm:$0xff]  ;;  %v3094_v23 = vld [vmem:[#allocation2 + $0x18] sm:$0xff] }
 0xae5   :  { %v3091_v24 = vld [vmem:[#allocation2] sm:$0xff]  ;;  %3241 = vmatprep.subr.bf16.mxu0 %v3092_v20  ;;  %3323 = vmatprep.subr.bf16.mxu1 %v3094_v23  ;;  %v3093_v57 = vld [vmem:[#allocation2 + $0x10] sm:$0xff]  ;;  %v3096_v35 = vld [vmem:[#allocation2 + $0x28] sm:$0xff] }
 0xae6   :  { %3273 = vmatprep.mubr.bf16.mxu0 %v3088_v19  ;;  %3355 = vmatprep.mubr.bf16.mxu1 %v3088_v19  ;;  %v3098_v45 = vld [vmem:[#allocation2 + $0x38] sm:$0xff]  ;;  %v3095_v1 = vld [vmem:[#allocation2 + $0x20] sm:$0xff]  ;;  %v3097_v5 = vld [vmem:[#allocation2 + $0x30] sm:$0xff] }
 0xae7   :  { %3242 = vmatpush1.bf16.msra.mxu0 %v3091_v24  ;;  %3324 = vmatpush1.bf16.msra.mxu1 %v3093_v57  ;;  %v3100_v0 = vld [vmem:[#allocation2 + $0x48] sm:$0xff]  ;;  %v3102_v44 = vld [vmem:[#allocation2 + $0x58] sm:$0xff]  ;;  %v3099_v46 = vld [vmem:[#allocation2 + $0x40] sm:$0xff] }
 0xae8   :  { %3243 = vmatprep.subr.bf16.mxu0 %v3096_v35  ;;  %3325 = vmatprep.subr.bf16.mxu1 %v3098_v45  ;;  %v3101_v42 = vld [vmem:[#allocation2 + $0x50] sm:$0xff]  ;;  %v3104_v49 = vld [vmem:[#allocation2 + $0x68] sm:$0xff]  ;;  %v3106_v43 = vld [vmem:[#allocation2 + $0x78] sm:$0xff] }
 0xae9   :  { %v3103_v62 = vld [vmem:[#allocation2 + $0x60] sm:$0xff]  ;;  %v3105_v31 = vld [vmem:[#allocation2 + $0x70] sm:$0xff]  ;;  %v3108_v39 = vld [vmem:[#allocation2 + $0x88] sm:$0xff] }
 0xaea   :  { %v3110_v17 = vld [vmem:[#allocation2 + $0x98] sm:$0xff]  ;;  %v3107_v51 = vld [vmem:[#allocation2 + $0x80] sm:$0xff]  ;;  %v3109_v16 = vld [vmem:[#allocation2 + $0x90] sm:$0xff] }
 0xaeb   :  { %3244 = vmatpush1.bf16.msra.mxu0 %v3095_v1  ;;  %3326 = vmatpush1.bf16.msra.mxu1 %v3097_v5  ;;  %v3112_v60 = vld [vmem:[#allocation2 + $0xa8] sm:$0xff]  ;;  %v3114_v25 = vld [vmem:[#allocation2 + $0xb8] sm:$0xff]  ;;  %v3111_v59 = vld [vmem:[#allocation2 + $0xa0] sm:$0xff] }
 0xaec   :  { %3245 = vmatprep.subr.bf16.mxu0 %v3100_v0  ;;  %3327 = vmatprep.subr.bf16.mxu1 %v3102_v44  ;;  %v3113_v3 = vld [vmem:[#allocation2 + $0xb0] sm:$0xff]  ;;  %v3116_v8 = vld [vmem:[#allocation2 + $0xc8] sm:$0xff]  ;;  %v3118_v56 = vld [vmem:[#allocation2 + $0xd8] sm:$0xff] }
 0xaed   :  { %v3115_v61 = vld [vmem:[#allocation2 + $0xc0] sm:$0xff]  ;;  %v3117_v10 = vld [vmem:[#allocation2 + $0xd0] sm:$0xff]  ;;  %v3120_v63 = vld [vmem:[#allocation2 + $0xe8] sm:$0xff] }
 0xaee   :  { %v3122_v11 = vld [vmem:[#allocation2 + $0xf8] sm:$0xff]  ;;  %v3119_v18 = vld [vmem:[#allocation2 + $0xe0] sm:$0xff]  ;;  %v3121_v22 = vld [vmem:[#allocation2 + $0xf0] sm:$0xff] }
 0xaef   :  { %3246 = vmatpush1.bf16.msra.mxu0 %v3099_v46  ;;  %3328 = vmatpush1.bf16.msra.mxu1 %v3101_v42  ;;  %v3124_v30 = vld [vmem:[#allocation2 + $0x108] sm:$0xff]  ;;  %v3126_v28 = vld [vmem:[#allocation2 + $0x118] sm:$0xff]  ;;  %v3123_v58 = vld [vmem:[#allocation2 + $0x100] sm:$0xff] }
 0xaf0   :  { %3247 = vmatprep.subr.bf16.mxu0 %v3104_v49  ;;  %3329 = vmatprep.subr.bf16.mxu1 %v3106_v43  ;;  %v3125_v29 = vld [vmem:[#allocation2 + $0x110] sm:$0xff]  ;;  %v3128_v33 = vld [vmem:[#allocation2 + $0x128] sm:$0xff]  ;;  %v3130_v34 = vld [vmem:[#allocation2 + $0x138] sm:$0xff]  ;;  %v3087_v49 = vpack.c.bf16 %v3079_v14, %v3079_v14 }
 0xaf1   :  { %v3127_v6 = vld [vmem:[#allocation2 + $0x120] sm:$0xff]  ;;  %v3129_v2 = vld [vmem:[#allocation2 + $0x130] sm:$0xff]  ;;  %v3132_v47 = vld [vmem:[#allocation2 + $0x148] sm:$0xff] }
 0xaf2   :  { %v3134_v4 = vld [vmem:[#allocation2 + $0x158] sm:$0xff]  ;;  %v3131_v37 = vld [vmem:[#allocation2 + $0x140] sm:$0xff]  ;;  %v3133_v32 = vld [vmem:[#allocation2 + $0x150] sm:$0xff] }
 0xaf3   :  { %3248 = vmatpush1.bf16.msra.mxu0 %v3103_v62  ;;  %3330 = vmatpush1.bf16.msra.mxu1 %v3105_v31  ;;  %v3136_v38 = vld [vmem:[#allocation2 + $0x168] sm:$0xff]  ;;  %v3138_v40 = vld [vmem:[#allocation2 + $0x178] sm:$0xff]  ;;  %v3135_v41 = vld [vmem:[#allocation2 + $0x160] sm:$0xff] }
 0xaf4   :  { %3249 = vmatprep.subr.bf16.mxu0 %v3108_v39  ;;  %3331 = vmatprep.subr.bf16.mxu1 %v3110_v17  ;;  %v3137_v50 = vld [vmem:[#allocation2 + $0x170] sm:$0xff]  ;;  %v3140_v52 = vld [vmem:[#allocation2 + $0x188] sm:$0xff]  ;;  %v3142_v48 = vld [vmem:[#allocation2 + $0x198] sm:$0xff]  ;;  %v3090_v17 = vpack.c.bf16 %v3082_v27, %v3082_v27 }
 0xaf5   :  { %v3139_v53 = vld [vmem:[#allocation2 + $0x180] sm:$0xff]  ;;  %v3141_v7 = vld [vmem:[#allocation2 + $0x190] sm:$0xff]  ;;  %v3144_v15 = vld [vmem:[#allocation2 + $0x1a8] sm:$0xff] }
 0xaf6   :  { %v3146_v19 = vld [vmem:[#allocation2 + $0x1b8] sm:$0xff]  ;;  %v3143_v20 = vld [vmem:[#allocation2 + $0x1a0] sm:$0xff]  ;;  %v3145_v23 = vld [vmem:[#allocation2 + $0x1b0] sm:$0xff] }
 0xaf7   :  { %3250 = vmatpush1.bf16.msra.mxu0 %v3107_v51  ;;  %3332 = vmatpush1.bf16.msra.mxu1 %v3109_v16  ;;  %v3148_v24 = vld [vmem:[#allocation2 + $0x1c8] sm:$0xff]  ;;  %v3150_v57 = vld [vmem:[#allocation2 + $0x1d8] sm:$0xff]  ;;  %v3147_v35 = vld [vmem:[#allocation2 + $0x1c0] sm:$0xff] }
 0xaf8   :  { %3251 = vmatprep.subr.bf16.mxu0 %v3112_v60  ;;  %3333 = vmatprep.subr.bf16.mxu1 %v3114_v25  ;;  %v3149_v45 = vld [vmem:[#allocation2 + $0x1d0] sm:$0xff]  ;;  %v3152_v1 = vld [vmem:[#allocation2 + $0x1e8] sm:$0xff]  ;;  %v3154_v5 = vld [vmem:[#allocation2 + $0x1f8] sm:$0xff] }
 0xaf9   :  { %v3151_v0 = vld [vmem:[#allocation2 + $0x1e0] sm:$0xff]  ;;  %v3153_v44 = vld [vmem:[#allocation2 + $0x1f0] sm:$0xff]  ;;  %v3156_v46 = vld [vmem:[#allocation2 + $0x208] sm:$0xff] }
 0xafa   :  { %v3158_v42 = vld [vmem:[#allocation2 + $0x218] sm:$0xff]  ;;  %v3155_v43 = vld [vmem:[#allocation2 + $0x200] sm:$0xff]  ;;  %v3157_v62 = vld [vmem:[#allocation2 + $0x210] sm:$0xff] }
 0xafb   :  { %3252 = vmatpush1.bf16.msra.mxu0 %v3111_v59  ;;  %3334 = vmatpush1.bf16.msra.mxu1 %v3113_v3  ;;  %v3160_v31 = vld [vmem:[#allocation2 + $0x228] sm:$0xff]  ;;  %v3162_v39 = vld [vmem:[#allocation2 + $0x238] sm:$0xff]  ;;  %v3159_v54 = vld [vmem:[#allocation2 + $0x220] sm:$0xff] }
 0xafc   :  { %3253 = vmatprep.subr.bf16.mxu0 %v3116_v8  ;;  %3335 = vmatprep.subr.bf16.mxu1 %v3118_v56  ;;  %v3161_v14 = vld [vmem:[#allocation2 + $0x230] sm:$0xff]  ;;  %v3164_v51 = vld [vmem:[#allocation2 + $0x248] sm:$0xff]  ;;  %v3166_v16 = vld [vmem:[#allocation2 + $0x258] sm:$0xff] }
 0xafd   :  { %v3163_v60 = vld [vmem:[#allocation2 + $0x240] sm:$0xff]  ;;  %v3165_v12 = vld [vmem:[#allocation2 + $0x250] sm:$0xff]  ;;  %v3168_v25 = vld [vmem:[#allocation2 + $0x268] sm:$0xff] }
 0xafe   :  { %v3170_v27 = vld [vmem:[#allocation2 + $0x278] sm:$0xff]  ;;  %v3167_v59 = vld [vmem:[#allocation2 + $0x260] sm:$0xff]  ;;  %v3169_v3 = vld [vmem:[#allocation2 + $0x270] sm:$0xff] }
 0xaff   :  { %3254 = vmatpush1.bf16.msra.mxu0 %v3115_v61  ;;  %3336 = vmatpush1.bf16.msra.mxu1 %v3117_v10  ;;  %v3172_v8 = vld [vmem:[#allocation2 + $0x288] sm:$0xff]  ;;  %v3174_v56 = vld [vmem:[#allocation2 + $0x298] sm:$0xff]  ;;  %v3171_v61 = vld [vmem:[#allocation2 + $0x280] sm:$0xff] }
 0xb00   :  { %3255 = vmatprep.subr.bf16.mxu0 %v3120_v63  ;;  %3337 = vmatprep.subr.bf16.mxu1 %v3122_v11  ;;  %v3173_v10 = vld [vmem:[#allocation2 + $0x290] sm:$0xff]  ;;  %v3176_v63 = vld [vmem:[#allocation2 + $0x2a8] sm:$0xff]  ;;  %v3178_v11 = vld [vmem:[#allocation2 + $0x2b8] sm:$0xff] }
 0xb03   :  { %3256 = vmatpush1.bf16.msra.mxu0 %v3119_v18  ;;  %3338 = vmatpush1.bf16.msra.mxu1 %v3121_v22  ;;  %v3175_v18 = vld [vmem:[#allocation2 + $0x2a0] sm:$0xff]  ;;  %v3177_v22 = vld [vmem:[#allocation2 + $0x2b0] sm:$0xff] }
 0xb04   :  { %3257 = vmatprep.subr.bf16.mxu0 %v3124_v30  ;;  %3339 = vmatprep.subr.bf16.mxu1 %v3126_v28  ;;  %v3180_v30 = vld [vmem:[#allocation2 + $0x2c8] sm:$0xff]  ;;  %v3182_v28 = vld [vmem:[#allocation2 + $0x2d8] sm:$0xff] }
 0xb07   :  { %3258 = vmatpush1.bf16.msra.mxu0 %v3123_v58  ;;  %3340 = vmatpush1.bf16.msra.mxu1 %v3125_v29  ;;  %v3179_v58 = vld [vmem:[#allocation2 + $0x2c0] sm:$0xff]  ;;  %v3181_v29 = vld [vmem:[#allocation2 + $0x2d0] sm:$0xff] }
 0xb08   :  { %3259 = vmatprep.subr.bf16.mxu0 %v3128_v33  ;;  %3341 = vmatprep.subr.bf16.mxu1 %v3130_v34  ;;  %v3184_v33 = vld [vmem:[#allocation2 + $0x2e8] sm:$0xff]  ;;  %v3186_v34 = vld [vmem:[#allocation2 + $0x2f8] sm:$0xff] }
 0xb0b   :  { %3260 = vmatpush1.bf16.msra.mxu0 %v3127_v6  ;;  %3342 = vmatpush1.bf16.msra.mxu1 %v3129_v2  ;;  %v3183_v6 = vld [vmem:[#allocation2 + $0x2e0] sm:$0xff]  ;;  %v3185_v2 = vld [vmem:[#allocation2 + $0x2f0] sm:$0xff] }
 0xb0c   :  { %3261 = vmatprep.subr.bf16.mxu0 %v3132_v47  ;;  %3343 = vmatprep.subr.bf16.mxu1 %v3134_v4  ;;  %v3188_v47 = vld [vmem:[#allocation2 + $0x308] sm:$0xff]  ;;  %v3190_v4 = vld [vmem:[#allocation2 + $0x318] sm:$0xff] }
 0xb0f   :  { %3262 = vmatpush1.bf16.msra.mxu0 %v3131_v37  ;;  %3344 = vmatpush1.bf16.msra.mxu1 %v3133_v32  ;;  %v3187_v37 = vld [vmem:[#allocation2 + $0x300] sm:$0xff]  ;;  %v3189_v32 = vld [vmem:[#allocation2 + $0x310] sm:$0xff] }
 0xb10   :  { %3263 = vmatprep.subr.bf16.mxu0 %v3136_v38  ;;  %3345 = vmatprep.subr.bf16.mxu1 %v3138_v40  ;;  %v3192_v38 = vld [vmem:[#allocation2 + $0x328] sm:$0xff]  ;;  %v3194_v40 = vld [vmem:[#allocation2 + $0x338] sm:$0xff] }
 0xb13   :  { %3264 = vmatpush1.bf16.msra.mxu0 %v3135_v41  ;;  %3346 = vmatpush1.bf16.msra.mxu1 %v3137_v50  ;;  %v3191_v41 = vld [vmem:[#allocation2 + $0x320] sm:$0xff]  ;;  %v3193_v50 = vld [vmem:[#allocation2 + $0x330] sm:$0xff] }
 0xb14   :  { %3265 = vmatprep.subr.bf16.mxu0 %v3140_v52  ;;  %3347 = vmatprep.subr.bf16.mxu1 %v3142_v48  ;;  %v3196_v52 = vld [vmem:[#allocation2 + $0x348] sm:$0xff]  ;;  %v3198_v48 = vld [vmem:[#allocation2 + $0x358] sm:$0xff] }
 0xb17   :  { %3266 = vmatpush1.bf16.msra.mxu0 %v3139_v53  ;;  %3348 = vmatpush1.bf16.msra.mxu1 %v3141_v7  ;;  %v3195_v53 = vld [vmem:[#allocation2 + $0x340] sm:$0xff]  ;;  %v3197_v7 = vld [vmem:[#allocation2 + $0x350] sm:$0xff] }
 0xb18   :  { %3267 = vmatprep.subr.bf16.mxu0 %v3144_v15  ;;  %3349 = vmatprep.subr.bf16.mxu1 %v3146_v19  ;;  %v3200_v15 = vld [vmem:[#allocation2 + $0x368] sm:$0xff]  ;;  %v3202_v19 = vld [vmem:[#allocation2 + $0x378] sm:$0xff] }
 0xb1b   :  { %3268 = vmatpush1.bf16.msra.mxu0 %v3143_v20  ;;  %3350 = vmatpush1.bf16.msra.mxu1 %v3145_v23  ;;  %v3199_v20 = vld [vmem:[#allocation2 + $0x360] sm:$0xff]  ;;  %v3201_v23 = vld [vmem:[#allocation2 + $0x370] sm:$0xff] }
 0xb1c   :  { %3269 = vmatprep.subr.bf16.mxu0 %v3148_v24  ;;  %3351 = vmatprep.subr.bf16.mxu1 %v3150_v57  ;;  %v3204_v24 = vld [vmem:[#allocation2 + $0x388] sm:$0xff]  ;;  %v3206_v57 = vld [vmem:[#allocation2 + $0x398] sm:$0xff] }
 0xb1f   :  { %3270 = vmatpush1.bf16.msra.mxu0 %v3147_v35  ;;  %3352 = vmatpush1.bf16.msra.mxu1 %v3149_v45  ;;  %v3203_v35 = vld [vmem:[#allocation2 + $0x380] sm:$0xff]  ;;  %v3205_v45 = vld [vmem:[#allocation2 + $0x390] sm:$0xff] }
 0xb20   :  { %3271 = vmatprep.subr.bf16.mxu0 %v3152_v1  ;;  %3353 = vmatprep.subr.bf16.mxu1 %v3154_v5  ;;  %v3208_v1 = vld [vmem:[#allocation2 + $0x3a8] sm:$0xff]  ;;  %v3210_v5 = vld [vmem:[#allocation2 + $0x3b8] sm:$0xff] }
 0xb23   :  { %3272 = vmatpush1.bf16.msra.mxu0 %v3151_v0  ;;  %3354 = vmatpush1.bf16.msra.mxu1 %v3153_v44  ;;  %v3207_v0 = vld [vmem:[#allocation2 + $0x3a0] sm:$0xff]  ;;  %v3209_v44 = vld [vmem:[#allocation2 + $0x3b0] sm:$0xff] }
 0xb24   :  { %3282 = vmatprep.subr.bf16.mxu0 %v3156_v46  ;;  %3364 = vmatprep.subr.bf16.mxu1 %v3158_v42  ;;  %v3212_v46 = vld [vmem:[#allocation2 + $0x3c8] sm:$0xff]  ;;  %v3214_v42 = vld [vmem:[#allocation2 + $0x3d8] sm:$0xff] }
 0xb26   :  { %3274 = vmatmul.mubr.bf16.vlgmr.msra.gmra.mrb[60].mxu0 %v3087_v49  ;;  %3356 = vmatmul.mubr.bf16.vlgmr.msra.gmra.mrb[60].mxu1 %v3087_v49  ;;  %v3211_v49 = vld [vmem:[#allocation2 + $0x3c0] sm:$0xff] }
 0xb27   :  { %3283 = vmatpush1.bf16.msra.mxu0 %v3155_v43  ;;  %3365 = vmatpush1.bf16.msra.mxu1 %v3157_v62  ;;  %v3213_v43 = vld [vmem:[#allocation2 + $0x3d0] sm:$0xff]  ;;  %v3216_v62 = vld [vmem:[#allocation2 + $0x3e8] sm:$0xff] }
 0xb28   :  { %3284 = vmatprep.subr.bf16.mxu0 %v3160_v31  ;;  %3366 = vmatprep.subr.bf16.mxu1 %v3162_v39  ;;  %v3218_v31 = vld [vmem:[#allocation2 + $0x3f8] sm:$0xff]  ;;  %v3215_v39 = vld [vmem:[#allocation2 + $0x3e0] sm:$0xff] }
 0xb29   :  { %3314 = vmatprep.mubr.bf16.mxu0 %v3090_v17  ;;  %3396 = vmatprep.mubr.bf16.mxu1 %v3090_v17  ;;  %v3217_v17 = vld [vmem:[#allocation2 + $0x3f0] sm:$0xff] }
 0xb2b   :  { %3285 = vmatpush1.bf16.msra.mxu0 %v3159_v54  ;;  %3367 = vmatpush1.bf16.msra.mxu1 %v3161_v14  ;;  %v3089_v54 = vpack.c.bf16 %v3081_v26, %v3081_v26  ;;  %v3219_v14 = vld [vmem:[%s6860_s11] sm:$0xf] }
 0xb2c   :  { %3286 = vmatprep.subr.bf16.mxu0 %v3164_v51  ;;  %3368 = vmatprep.subr.bf16.mxu1 %v3166_v16  ;;  %v3224_v51 = vrot.slane %v3219_v14, %v6957_v21  ;;  %v3232_v16 = vrot.slane %v3219_v14, %v6958_v9 }
 0xb2f   :  { %3287 = vmatpush1.bf16.msra.mxu0 %v3163_v60  ;;  %3369 = vmatpush1.bf16.msra.mxu1 %v3165_v12  ;;  %v3228_v60 = vrot.slane %v3219_v14, %v6959_v13 }
 0xb30   :  { %3288 = vmatprep.subr.bf16.mxu0 %v3168_v25  ;;  %3370 = vmatprep.subr.bf16.mxu1 %v3170_v27 }
 0xb33   :  { %3289 = vmatpush1.bf16.msra.mxu0 %v3167_v59  ;;  %3371 = vmatpush1.bf16.msra.mxu1 %v3169_v3 }
 0xb34   :  { %3290 = vmatprep.subr.bf16.mxu0 %v3172_v8  ;;  %3372 = vmatprep.subr.bf16.mxu1 %v3174_v56  ;;  %v3236_v8 = vrot.slane %v3219_v14, %v6960_v36 }
 0xb37   :  { %3291 = vmatpush1.bf16.msra.mxu0 %v3171_v61  ;;  %3373 = vmatpush1.bf16.msra.mxu1 %v3173_v10 }
 0xb38   :  { %3292 = vmatprep.subr.bf16.mxu0 %v3176_v63  ;;  %3374 = vmatprep.subr.bf16.mxu1 %v3178_v11 }
 0xb3b   :  { %3293 = vmatpush1.bf16.msra.mxu0 %v3175_v18  ;;  %3375 = vmatpush1.bf16.msra.mxu1 %v3177_v22 }
 0xb3c   :  { %3294 = vmatprep.subr.bf16.mxu0 %v3180_v30  ;;  %3376 = vmatprep.subr.bf16.mxu1 %v3182_v28 }
 0xb3f   :  { %3295 = vmatpush1.bf16.msra.mxu0 %v3179_v58  ;;  %3377 = vmatpush1.bf16.msra.mxu1 %v3181_v29 }
 0xb40   :  { %3296 = vmatprep.subr.bf16.mxu0 %v3184_v33  ;;  %3378 = vmatprep.subr.bf16.mxu1 %v3186_v34 }
 0xb43   :  { %3297 = vmatpush1.bf16.msra.mxu0 %v3183_v6  ;;  %3379 = vmatpush1.bf16.msra.mxu1 %v3185_v2 }
 0xb44   :  { %3298 = vmatprep.subr.bf16.mxu0 %v3188_v47  ;;  %3380 = vmatprep.subr.bf16.mxu1 %v3190_v4 }
 0xb47   :  { %3299 = vmatpush1.bf16.msra.mxu0 %v3187_v37  ;;  %3381 = vmatpush1.bf16.msra.mxu1 %v3189_v32 }
 0xb48   :  { %3300 = vmatprep.subr.bf16.mxu0 %v3192_v38  ;;  %3382 = vmatprep.subr.bf16.mxu1 %v3194_v40 }
 0xb4b   :  { %3301 = vmatpush1.bf16.msra.mxu0 %v3191_v41  ;;  %3383 = vmatpush1.bf16.msra.mxu1 %v3193_v50  ;;  %v3405_v50 = vld [vmem:[%s6861_s12] sm:$0xf] }
 0xb4c   :  { %3302 = vmatprep.subr.bf16.mxu0 %v3196_v52  ;;  %3384 = vmatprep.subr.bf16.mxu1 %v3198_v48  ;;  %v3406_v52 = vld [vmem:[%s6862_s13] sm:$0xf]  ;;  %v3439_v48 = vrot.slane %v3405_v50, %v6957_v21 }
 0xb4f   :  { %3303 = vmatpush1.bf16.msra.mxu0 %v3195_v53  ;;  %3385 = vmatpush1.bf16.msra.mxu1 %v3197_v7  ;;  %v3443_v53 = vrot.slane %v3405_v50, %v6959_v13  ;;  %v3447_v7 = vrot.slane %v3405_v50, %v6958_v9 }
 0xb50   :  { %3304 = vmatprep.subr.bf16.mxu0 %v3200_v15  ;;  %3386 = vmatprep.subr.bf16.mxu1 %v3202_v19  ;;  %v3451_v15 = vrot.slane %v3405_v50, %v6960_v36 }
 0xb53   :  { %3305 = vmatpush1.bf16.msra.mxu0 %v3199_v20  ;;  %3387 = vmatpush1.bf16.msra.mxu1 %v3201_v23 }
 0xb54   :  { %3306 = vmatprep.subr.bf16.mxu0 %v3204_v24  ;;  %3388 = vmatprep.subr.bf16.mxu1 %v3206_v57 }
 0xb57   :  { %3307 = vmatpush1.bf16.msra.mxu0 %v3203_v35  ;;  %3389 = vmatpush1.bf16.msra.mxu1 %v3205_v45  ;;  %v3464_v35 = vrot.slane %v3406_v52, %v6957_v21  ;;  %v3468_v45 = vrot.slane %v3406_v52, %v6959_v13 }
 0xb58   :  { %3308 = vmatprep.subr.bf16.mxu0 %v3208_v1  ;;  %3390 = vmatprep.subr.bf16.mxu1 %v3210_v5  ;;  %v3472_v1 = vrot.slane %v3406_v52, %v6958_v9  ;;  %v3476_v5 = vrot.slane %v3406_v52, %v6960_v36 }
 0xb5b   :  { %3309 = vmatpush1.bf16.msra.mxu0 %v3207_v0  ;;  %3391 = vmatpush1.bf16.msra.mxu1 %v3209_v44 }
 0xb5c   :  { %3310 = vmatprep.subr.bf16.mxu0 %v3212_v46  ;;  %3392 = vmatprep.subr.bf16.mxu1 %v3214_v42 }
 0xb5f   :  { %3311 = vmatpush1.bf16.msra.mxu0 %v3211_v49  ;;  %3393 = vmatpush1.bf16.msra.mxu1 %v3213_v43 }
 0xb60   :  { %3312 = vmatprep.subr.bf16.mxu0 %v3216_v62  ;;  %3394 = vmatprep.subr.bf16.mxu1 %v3218_v31 }
 0xb63   :  { %3313 = vmatpush1.bf16.msra.mxu0 %v3215_v39  ;;  %3395 = vmatpush1.bf16.msra.mxu1 %v3217_v17 }
 0xb66   :  { %3315 = vmatmul.mubr.bf16.vlgmr.msra.gmra.mrb[60].mxu0 %v3089_v54  ;;  %3397 = vmatmul.mubr.bf16.vlgmr.msra.gmra.mrb[60].mxu1 %v3089_v54 }
 0xc39   :  { %v3316_v12 = vpop.f32.mrb[60].mxu0  ;;  %v3398_v25 = vpop.f32.mrb[60].mxu1 }
 0xc3a   :  { %v4763_v27 = vadd.f32 %v3316_v12, %v3224_v51  ;;  %v3318_v55 = vpop.f32.mrb[61].mxu0  ;;  %v3400_v59 = vpop.f32.mrb[61].mxu1  ;;  %v4765_v26 = vadd.f32 %v3398_v25, %v3232_v16 }
 0xc3b   :  { %v4764_v3 = vadd.f32 %v3318_v55, %v3228_v60  ;;  %v3320_v56 = vpop.f32.mrb[62].mxu0  ;;  %v3402_v61 = vpop.f32.mrb[62].mxu1  ;;  %v4766_v28 = vadd.f32 %v3400_v59, %v3236_v8 }
 0xc3c   :  { %v3413_v10 = vmul.f32 %v4763_v27, %v4763_v27  ;;  %v3321_v63 = vpop.f32.mrb[63].mxu0  ;;  %v3403_v11 = vpop.f32.mrb[63].mxu1  ;;  %v3415_v30 = vmul.f32 %v4765_v26, %v4765_v26 }
 0xc3d   :  { %v3414_v18 = vmul.f32 %v4764_v3, %v4764_v3  ;;  %v3407_v22 = vadd.f32 %v4764_v3, %v4763_v27  ;;  %v3416_v6 = vmul.f32 %v4766_v28, %v4766_v28 }
 0xc3f   :  { %v3408_v58 = vadd.f32 %v4765_v26, %v3407_v22  ;;  %v3417_v29 = vadd.f32 %v3414_v18, %v3413_v10 }
 0xc41   :  { %v3409_v33 = vadd.f32 %v4766_v28, %v3408_v58  ;;  %v3418_v34 = vadd.f32 %v3417_v29, %v3415_v30 }
 0xc43   :  { %3410 = vadd.xlane.f32.xlu0 %v3409_v33  ;;  %v3419_v2 = vadd.f32 %v3418_v34, %v3416_v6 }
 0xc47   :  { %3420 = vadd.xlane.f32.xlu0 %v3419_v2 }
 0xcd0   :  { %v3411_v47 = vpop.xlane.xlu0 %3410 }
 0xcd1   :  { %v3412_v4 = vmul.f32 0.001953125, %v3411_v47 }
 0xcd3   :  { %v3423_v32 = vmul.f32 %v3412_v4, %v3412_v4  ;;  %v3425_v19 = vsub.f32 %v4763_v27, %v3412_v4  ;;  %v3426_v20 = vsub.f32 %v4764_v3, %v3412_v4  ;;  %v3427_v23 = vsub.f32 %v4765_v26, %v3412_v4 }
 0xcd4   :  { %v3421_v37 = vpop.xlane.xlu0 %3420  ;;  %v3428_v24 = vsub.f32 %v4766_v28, %v3412_v4 }
 0xcd5   :  { %v3422_v38 = vmul.f32 0.001953125, %v3421_v37 }
 0xcd7   :  { %v3424_v40 = vsub.f32 %v3422_v38, %v3423_v32 }
 0xcd9   :  { %v3429_v41 = vadd.f32 1e-05, %v3424_v40 }
 0xcdb   :  { %5324 = vrsqrt.f32 %v3429_v41 }
 0xce5   :  { %v5325_v57 = vpop.eup %5324 }
 0xce6   :  { %v3431_v0 = vmul.f32 %v5325_v57, %v3425_v19  ;;  %v3432_v44 = vmul.f32 %v5325_v57, %v3426_v20  ;;  %v3433_v46 = vmul.f32 %v5325_v57, %v3427_v23  ;;  %v3434_v42 = vmul.f32 %v5325_v57, %v3428_v24 }
 0xce8   :  { %v3456_v49 = vmul.f32 %v3439_v48, %v3431_v0  ;;  %v3457_v43 = vmul.f32 %v3443_v53, %v3432_v44  ;;  %v3458_v62 = vmul.f32 %v3447_v7, %v3433_v46  ;;  %v3459_v31 = vmul.f32 %v3451_v15, %v3434_v42 }
 0xcea   :  { %v6771_v39 = vadd.f32 %v3464_v35, %v3456_v49  ;;  %v3482_v17 = vadd.f32 %v3468_v45, %v3457_v43  ;;  %v6773_v54 = vadd.f32 %v3472_v1, %v3458_v62  ;;  %v6775_v14 = vadd.f32 %v3476_v5, %v3459_v31 }
 0xcec   :  { %v3485_v51 = vmax.f32 %v6771_v39, 0.0  ;;  %v3486_v16 = vmax.f32 %v3482_v17, 0.0  ;;  %v3487_v60 = vmax.f32 %v6773_v54, 0.0  ;;  %v3488_v12 = vmax.f32 %v6775_v14, 0.0 }
 0xced   :  { %5562 = dma.done.wait [#allocation6 + $0x1], 16384 }
 0xcee   :  { %5563 = vsyncadd [#allocation6 + $0x1], 4294950912  ;;  %v3492_v25 = vpack.c.bf16 %v3486_v16, %v3486_v16  ;;  %v3496_v27 = vld [vmem:[#allocation3 + $0x8] sm:$0xff]  ;;  %v3498_v55 = vld [vmem:[#allocation3 + $0x18] sm:$0xff] }
 0xcef   :  { %v3495_v59 = vld [vmem:[#allocation3] sm:$0xff]  ;;  %3645 = vmatprep.subr.bf16.mxu0 %v3496_v27  ;;  %3727 = vmatprep.subr.bf16.mxu1 %v3498_v55  ;;  %v3497_v26 = vld [vmem:[#allocation3 + $0x10] sm:$0xff]  ;;  %v3500_v3 = vld [vmem:[#allocation3 + $0x28] sm:$0xff] }
 0xcf0   :  { %3677 = vmatprep.mubr.bf16.mxu0 %v3492_v25  ;;  %3759 = vmatprep.mubr.bf16.mxu1 %v3492_v25  ;;  %v3502_v8 = vld [vmem:[#allocation3 + $0x38] sm:$0xff]  ;;  %v3499_v56 = vld [vmem:[#allocation3 + $0x20] sm:$0xff]  ;;  %v3501_v61 = vld [vmem:[#allocation3 + $0x30] sm:$0xff] }
 0xcf1   :  { %3646 = vmatpush1.bf16.msra.mxu0 %v3495_v59  ;;  %3728 = vmatpush1.bf16.msra.mxu1 %v3497_v26  ;;  %v3504_v10 = vld [vmem:[#allocation3 + $0x48] sm:$0xff]  ;;  %v3506_v63 = vld [vmem:[#allocation3 + $0x58] sm:$0xff]  ;;  %v3503_v11 = vld [vmem:[#allocation3 + $0x40] sm:$0xff] }
 0xcf2   :  { %3647 = vmatprep.subr.bf16.mxu0 %v3500_v3  ;;  %3729 = vmatprep.subr.bf16.mxu1 %v3502_v8  ;;  %v3505_v18 = vld [vmem:[#allocation3 + $0x50] sm:$0xff]  ;;  %v3508_v22 = vld [vmem:[#allocation3 + $0x68] sm:$0xff]  ;;  %v3510_v30 = vld [vmem:[#allocation3 + $0x78] sm:$0xff] }
 0xcf3   :  { %v3507_v28 = vld [vmem:[#allocation3 + $0x60] sm:$0xff]  ;;  %v3509_v58 = vld [vmem:[#allocation3 + $0x70] sm:$0xff]  ;;  %v3512_v29 = vld [vmem:[#allocation3 + $0x88] sm:$0xff] }
 0xcf4   :  { %v3514_v33 = vld [vmem:[#allocation3 + $0x98] sm:$0xff]  ;;  %v3511_v34 = vld [vmem:[#allocation3 + $0x80] sm:$0xff]  ;;  %v3513_v6 = vld [vmem:[#allocation3 + $0x90] sm:$0xff] }
 0xcf5   :  { %3648 = vmatpush1.bf16.msra.mxu0 %v3499_v56  ;;  %3730 = vmatpush1.bf16.msra.mxu1 %v3501_v61  ;;  %v3516_v2 = vld [vmem:[#allocation3 + $0xa8] sm:$0xff]  ;;  %v3518_v47 = vld [vmem:[#allocation3 + $0xb8] sm:$0xff]  ;;  %v3515_v4 = vld [vmem:[#allocation3 + $0xa0] sm:$0xff] }
 0xcf6   :  { %3649 = vmatprep.subr.bf16.mxu0 %v3504_v10  ;;  %3731 = vmatprep.subr.bf16.mxu1 %v3506_v63  ;;  %v3517_v37 = vld [vmem:[#allocation3 + $0xb0] sm:$0xff]  ;;  %v3520_v32 = vld [vmem:[#allocation3 + $0xc8] sm:$0xff]  ;;  %v3522_v38 = vld [vmem:[#allocation3 + $0xd8] sm:$0xff] }
 0xcf7   :  { %v3519_v40 = vld [vmem:[#allocation3 + $0xc0] sm:$0xff]  ;;  %v3521_v41 = vld [vmem:[#allocation3 + $0xd0] sm:$0xff]  ;;  %v3524_v50 = vld [vmem:[#allocation3 + $0xe8] sm:$0xff] }
 0xcf8   :  { %v3526_v52 = vld [vmem:[#allocation3 + $0xf8] sm:$0xff]  ;;  %v3523_v48 = vld [vmem:[#allocation3 + $0xe0] sm:$0xff]  ;;  %v3525_v53 = vld [vmem:[#allocation3 + $0xf0] sm:$0xff] }
 0xcf9   :  { %3650 = vmatpush1.bf16.msra.mxu0 %v3503_v11  ;;  %3732 = vmatpush1.bf16.msra.mxu1 %v3505_v18  ;;  %v3528_v7 = vld [vmem:[#allocation3 + $0x108] sm:$0xff]  ;;  %v3530_v15 = vld [vmem:[#allocation3 + $0x118] sm:$0xff]  ;;  %v3527_v19 = vld [vmem:[#allocation3 + $0x100] sm:$0xff] }
 0xcfa   :  { %3651 = vmatprep.subr.bf16.mxu0 %v3508_v22  ;;  %3733 = vmatprep.subr.bf16.mxu1 %v3510_v30  ;;  %v3529_v20 = vld [vmem:[#allocation3 + $0x110] sm:$0xff]  ;;  %v3532_v23 = vld [vmem:[#allocation3 + $0x128] sm:$0xff]  ;;  %v3534_v24 = vld [vmem:[#allocation3 + $0x138] sm:$0xff]  ;;  %v3491_v22 = vpack.c.bf16 %v3485_v51, %v3485_v51 }
 0xcfb   :  { %v3531_v57 = vld [vmem:[#allocation3 + $0x120] sm:$0xff]  ;;  %v3533_v35 = vld [vmem:[#allocation3 + $0x130] sm:$0xff]  ;;  %v3536_v45 = vld [vmem:[#allocation3 + $0x148] sm:$0xff] }
 0xcfc   :  { %v3538_v1 = vld [vmem:[#allocation3 + $0x158] sm:$0xff]  ;;  %v3535_v5 = vld [vmem:[#allocation3 + $0x140] sm:$0xff]  ;;  %v3537_v0 = vld [vmem:[#allocation3 + $0x150] sm:$0xff] }
 0xcfd   :  { %3652 = vmatpush1.bf16.msra.mxu0 %v3507_v28  ;;  %3734 = vmatpush1.bf16.msra.mxu1 %v3509_v58  ;;  %v3540_v44 = vld [vmem:[#allocation3 + $0x168] sm:$0xff]  ;;  %v3542_v46 = vld [vmem:[#allocation3 + $0x178] sm:$0xff]  ;;  %v3539_v42 = vld [vmem:[#allocation3 + $0x160] sm:$0xff] }
 0xcfe   :  { %3653 = vmatprep.subr.bf16.mxu0 %v3512_v29  ;;  %3735 = vmatprep.subr.bf16.mxu1 %v3514_v33  ;;  %v3541_v49 = vld [vmem:[#allocation3 + $0x170] sm:$0xff]  ;;  %v3544_v43 = vld [vmem:[#allocation3 + $0x188] sm:$0xff]  ;;  %v3546_v62 = vld [vmem:[#allocation3 + $0x198] sm:$0xff]  ;;  %v3494_v33 = vpack.c.bf16 %v3488_v12, %v3488_v12 }
 0xcff   :  { %v3543_v31 = vld [vmem:[#allocation3 + $0x180] sm:$0xff]  ;;  %v3545_v17 = vld [vmem:[#allocation3 + $0x190] sm:$0xff]  ;;  %v3548_v16 = vld [vmem:[#allocation3 + $0x1a8] sm:$0xff] }
 0xd00   :  { %v3550_v25 = vld [vmem:[#allocation3 + $0x1b8] sm:$0xff]  ;;  %v3547_v27 = vld [vmem:[#allocation3 + $0x1a0] sm:$0xff]  ;;  %v3549_v55 = vld [vmem:[#allocation3 + $0x1b0] sm:$0xff] }
 0xd01   :  { %3654 = vmatpush1.bf16.msra.mxu0 %v3511_v34  ;;  %3736 = vmatpush1.bf16.msra.mxu1 %v3513_v6  ;;  %v3552_v59 = vld [vmem:[#allocation3 + $0x1c8] sm:$0xff]  ;;  %v3554_v26 = vld [vmem:[#allocation3 + $0x1d8] sm:$0xff]  ;;  %v3551_v3 = vld [vmem:[#allocation3 + $0x1c0] sm:$0xff] }
 0xd02   :  { %3655 = vmatprep.subr.bf16.mxu0 %v3516_v2  ;;  %3737 = vmatprep.subr.bf16.mxu1 %v3518_v47  ;;  %v3553_v8 = vld [vmem:[#allocation3 + $0x1d0] sm:$0xff]  ;;  %v3556_v56 = vld [vmem:[#allocation3 + $0x1e8] sm:$0xff]  ;;  %v3558_v61 = vld [vmem:[#allocation3 + $0x1f8] sm:$0xff] }
 0xd03   :  { %v3555_v10 = vld [vmem:[#allocation3 + $0x1e0] sm:$0xff]  ;;  %v3557_v63 = vld [vmem:[#allocation3 + $0x1f0] sm:$0xff]  ;;  %v3560_v11 = vld [vmem:[#allocation3 + $0x208] sm:$0xff] }
 0xd04   :  { %v3562_v18 = vld [vmem:[#allocation3 + $0x218] sm:$0xff]  ;;  %v3559_v30 = vld [vmem:[#allocation3 + $0x200] sm:$0xff]  ;;  %v3561_v28 = vld [vmem:[#allocation3 + $0x210] sm:$0xff] }
 0xd05   :  { %3656 = vmatpush1.bf16.msra.mxu0 %v3515_v4  ;;  %3738 = vmatpush1.bf16.msra.mxu1 %v3517_v37  ;;  %v3564_v58 = vld [vmem:[#allocation3 + $0x228] sm:$0xff]  ;;  %v3566_v29 = vld [vmem:[#allocation3 + $0x238] sm:$0xff]  ;;  %v3563_v39 = vld [vmem:[#allocation3 + $0x220] sm:$0xff] }
 0xd06   :  { %3657 = vmatprep.subr.bf16.mxu0 %v3520_v32  ;;  %3739 = vmatprep.subr.bf16.mxu1 %v3522_v38  ;;  %v3565_v51 = vld [vmem:[#allocation3 + $0x230] sm:$0xff]  ;;  %v3568_v34 = vld [vmem:[#allocation3 + $0x248] sm:$0xff]  ;;  %v3570_v6 = vld [vmem:[#allocation3 + $0x258] sm:$0xff] }
 0xd07   :  { %v3567_v2 = vld [vmem:[#allocation3 + $0x240] sm:$0xff]  ;;  %v3569_v14 = vld [vmem:[#allocation3 + $0x250] sm:$0xff]  ;;  %v3572_v47 = vld [vmem:[#allocation3 + $0x268] sm:$0xff] }
 0xd08   :  { %v3574_v12 = vld [vmem:[#allocation3 + $0x278] sm:$0xff]  ;;  %v3571_v4 = vld [vmem:[#allocation3 + $0x260] sm:$0xff]  ;;  %v3573_v37 = vld [vmem:[#allocation3 + $0x270] sm:$0xff] }
 0xd09   :  { %3658 = vmatpush1.bf16.msra.mxu0 %v3519_v40  ;;  %3740 = vmatpush1.bf16.msra.mxu1 %v3521_v41  ;;  %v3576_v32 = vld [vmem:[#allocation3 + $0x288] sm:$0xff]  ;;  %v3578_v38 = vld [vmem:[#allocation3 + $0x298] sm:$0xff]  ;;  %v3575_v40 = vld [vmem:[#allocation3 + $0x280] sm:$0xff] }
 0xd0a   :  { %3659 = vmatprep.subr.bf16.mxu0 %v3524_v50  ;;  %3741 = vmatprep.subr.bf16.mxu1 %v3526_v52  ;;  %v3577_v41 = vld [vmem:[#allocation3 + $0x290] sm:$0xff]  ;;  %v3580_v50 = vld [vmem:[#allocation3 + $0x2a8] sm:$0xff]  ;;  %v3582_v52 = vld [vmem:[#allocation3 + $0x2b8] sm:$0xff] }
 0xd0d   :  { %3660 = vmatpush1.bf16.msra.mxu0 %v3523_v48  ;;  %3742 = vmatpush1.bf16.msra.mxu1 %v3525_v53  ;;  %v3579_v48 = vld [vmem:[#allocation3 + $0x2a0] sm:$0xff]  ;;  %v3581_v53 = vld [vmem:[#allocation3 + $0x2b0] sm:$0xff] }
 0xd0e   :  { %3661 = vmatprep.subr.bf16.mxu0 %v3528_v7  ;;  %3743 = vmatprep.subr.bf16.mxu1 %v3530_v15  ;;  %v3584_v7 = vld [vmem:[#allocation3 + $0x2c8] sm:$0xff]  ;;  %v3586_v15 = vld [vmem:[#allocation3 + $0x2d8] sm:$0xff] }
 0xd11   :  { %3662 = vmatpush1.bf16.msra.mxu0 %v3527_v19  ;;  %3744 = vmatpush1.bf16.msra.mxu1 %v3529_v20  ;;  %v3583_v19 = vld [vmem:[#allocation3 + $0x2c0] sm:$0xff]  ;;  %v3585_v20 = vld [vmem:[#allocation3 + $0x2d0] sm:$0xff] }
 0xd12   :  { %3663 = vmatprep.subr.bf16.mxu0 %v3532_v23  ;;  %3745 = vmatprep.subr.bf16.mxu1 %v3534_v24  ;;  %v3588_v23 = vld [vmem:[#allocation3 + $0x2e8] sm:$0xff]  ;;  %v3590_v24 = vld [vmem:[#allocation3 + $0x2f8] sm:$0xff] }
 0xd15   :  { %3664 = vmatpush1.bf16.msra.mxu0 %v3531_v57  ;;  %3746 = vmatpush1.bf16.msra.mxu1 %v3533_v35  ;;  %v3587_v57 = vld [vmem:[#allocation3 + $0x2e0] sm:$0xff]  ;;  %v3589_v35 = vld [vmem:[#allocation3 + $0x2f0] sm:$0xff] }
 0xd16   :  { %3665 = vmatprep.subr.bf16.mxu0 %v3536_v45  ;;  %3747 = vmatprep.subr.bf16.mxu1 %v3538_v1  ;;  %v3592_v45 = vld [vmem:[#allocation3 + $0x308] sm:$0xff]  ;;  %v3594_v1 = vld [vmem:[#allocation3 + $0x318] sm:$0xff] }
 0xd19   :  { %3666 = vmatpush1.bf16.msra.mxu0 %v3535_v5  ;;  %3748 = vmatpush1.bf16.msra.mxu1 %v3537_v0  ;;  %v3591_v5 = vld [vmem:[#allocation3 + $0x300] sm:$0xff]  ;;  %v3593_v0 = vld [vmem:[#allocation3 + $0x310] sm:$0xff] }
 0xd1a   :  { %3667 = vmatprep.subr.bf16.mxu0 %v3540_v44  ;;  %3749 = vmatprep.subr.bf16.mxu1 %v3542_v46  ;;  %v3596_v44 = vld [vmem:[#allocation3 + $0x328] sm:$0xff]  ;;  %v3598_v46 = vld [vmem:[#allocation3 + $0x338] sm:$0xff] }
 0xd1d   :  { %3668 = vmatpush1.bf16.msra.mxu0 %v3539_v42  ;;  %3750 = vmatpush1.bf16.msra.mxu1 %v3541_v49  ;;  %v3595_v42 = vld [vmem:[#allocation3 + $0x320] sm:$0xff]  ;;  %v3597_v49 = vld [vmem:[#allocation3 + $0x330] sm:$0xff] }
 0xd1e   :  { %3669 = vmatprep.subr.bf16.mxu0 %v3544_v43  ;;  %3751 = vmatprep.subr.bf16.mxu1 %v3546_v62  ;;  %v3600_v43 = vld [vmem:[#allocation3 + $0x348] sm:$0xff]  ;;  %v3602_v62 = vld [vmem:[#allocation3 + $0x358] sm:$0xff] }
 0xd21   :  { %3670 = vmatpush1.bf16.msra.mxu0 %v3543_v31  ;;  %3752 = vmatpush1.bf16.msra.mxu1 %v3545_v17  ;;  %v3599_v31 = vld [vmem:[#allocation3 + $0x340] sm:$0xff]  ;;  %v3601_v17 = vld [vmem:[#allocation3 + $0x350] sm:$0xff] }
 0xd22   :  { %3671 = vmatprep.subr.bf16.mxu0 %v3548_v16  ;;  %3753 = vmatprep.subr.bf16.mxu1 %v3550_v25  ;;  %v3604_v16 = vld [vmem:[#allocation3 + $0x368] sm:$0xff]  ;;  %v3606_v25 = vld [vmem:[#allocation3 + $0x378] sm:$0xff] }
 0xd25   :  { %3672 = vmatpush1.bf16.msra.mxu0 %v3547_v27  ;;  %3754 = vmatpush1.bf16.msra.mxu1 %v3549_v55  ;;  %v3603_v27 = vld [vmem:[#allocation3 + $0x360] sm:$0xff]  ;;  %v3605_v55 = vld [vmem:[#allocation3 + $0x370] sm:$0xff] }
 0xd26   :  { %3673 = vmatprep.subr.bf16.mxu0 %v3552_v59  ;;  %3755 = vmatprep.subr.bf16.mxu1 %v3554_v26  ;;  %v3608_v59 = vld [vmem:[#allocation3 + $0x388] sm:$0xff]  ;;  %v3610_v26 = vld [vmem:[#allocation3 + $0x398] sm:$0xff] }
 0xd29   :  { %3674 = vmatpush1.bf16.msra.mxu0 %v3551_v3  ;;  %3756 = vmatpush1.bf16.msra.mxu1 %v3553_v8  ;;  %v3607_v3 = vld [vmem:[#allocation3 + $0x380] sm:$0xff]  ;;  %v3609_v8 = vld [vmem:[#allocation3 + $0x390] sm:$0xff] }
 0xd2a   :  { %3675 = vmatprep.subr.bf16.mxu0 %v3556_v56  ;;  %3757 = vmatprep.subr.bf16.mxu1 %v3558_v61  ;;  %v3612_v56 = vld [vmem:[#allocation3 + $0x3a8] sm:$0xff]  ;;  %v3614_v61 = vld [vmem:[#allocation3 + $0x3b8] sm:$0xff] }
 0xd2d   :  { %3676 = vmatpush1.bf16.msra.mxu0 %v3555_v10  ;;  %3758 = vmatpush1.bf16.msra.mxu1 %v3557_v63  ;;  %v3611_v10 = vld [vmem:[#allocation3 + $0x3a0] sm:$0xff]  ;;  %v3613_v63 = vld [vmem:[#allocation3 + $0x3b0] sm:$0xff] }
 0xd2e   :  { %3686 = vmatprep.subr.bf16.mxu0 %v3560_v11  ;;  %3768 = vmatprep.subr.bf16.mxu1 %v3562_v18  ;;  %v3616_v11 = vld [vmem:[#allocation3 + $0x3c8] sm:$0xff]  ;;  %v3618_v18 = vld [vmem:[#allocation3 + $0x3d8] sm:$0xff] }
 0xd30   :  { %3678 = vmatmul.mubr.bf16.vlgmr.msra.gmra.mrb[64].mxu0 %v3491_v22  ;;  %3760 = vmatmul.mubr.bf16.vlgmr.msra.gmra.mrb[64].mxu1 %v3491_v22  ;;  %v3615_v22 = vld [vmem:[#allocation3 + $0x3c0] sm:$0xff] }
 0xd31   :  { %3687 = vmatpush1.bf16.msra.mxu0 %v3559_v30  ;;  %3769 = vmatpush1.bf16.msra.mxu1 %v3561_v28  ;;  %v3617_v30 = vld [vmem:[#allocation3 + $0x3d0] sm:$0xff]  ;;  %v3620_v28 = vld [vmem:[#allocation3 + $0x3e8] sm:$0xff] }
 0xd32   :  { %3688 = vmatprep.subr.bf16.mxu0 %v3564_v58  ;;  %3770 = vmatprep.subr.bf16.mxu1 %v3566_v29  ;;  %v3622_v58 = vld [vmem:[#allocation3 + $0x3f8] sm:$0xff]  ;;  %v3619_v29 = vld [vmem:[#allocation3 + $0x3e0] sm:$0xff] }
 0xd33   :  { %3718 = vmatprep.mubr.bf16.mxu0 %v3494_v33  ;;  %3800 = vmatprep.mubr.bf16.mxu1 %v3494_v33  ;;  %v3621_v33 = vld [vmem:[#allocation3 + $0x3f0] sm:$0xff] }
 0xd35   :  { %3689 = vmatpush1.bf16.msra.mxu0 %v3563_v39  ;;  %3771 = vmatpush1.bf16.msra.mxu1 %v3565_v51  ;;  %v3493_v39 = vpack.c.bf16 %v3487_v60, %v3487_v60  ;;  %v3623_v51 = vld [vmem:[#allocation12] sm:$0xf] }
 0xd36   :  { %3690 = vmatprep.subr.bf16.mxu0 %v3568_v34  ;;  %3772 = vmatprep.subr.bf16.mxu1 %v3570_v6  ;;  %v3628_v34 = vrot.slane %v3623_v51, %v6957_v21  ;;  %v3636_v6 = vrot.slane %v3623_v51, %v6958_v9  ;;  %v3640_v60 = vrot.slane %v3623_v51, %v6960_v36 }
 0xd39   :  { %3691 = vmatpush1.bf16.msra.mxu0 %v3567_v2  ;;  %3773 = vmatpush1.bf16.msra.mxu1 %v3569_v14  ;;  %v3632_v2 = vrot.slane %v3623_v51, %v6959_v13 }
 0xd3a   :  { %3692 = vmatprep.subr.bf16.mxu0 %v3572_v47  ;;  %3774 = vmatprep.subr.bf16.mxu1 %v3574_v12 }
 0xd3d   :  { %3693 = vmatpush1.bf16.msra.mxu0 %v3571_v4  ;;  %3775 = vmatpush1.bf16.msra.mxu1 %v3573_v37 }
 0xd3e   :  { %3694 = vmatprep.subr.bf16.mxu0 %v3576_v32  ;;  %3776 = vmatprep.subr.bf16.mxu1 %v3578_v38 }
 0xd41   :  { %3695 = vmatpush1.bf16.msra.mxu0 %v3575_v40  ;;  %3777 = vmatpush1.bf16.msra.mxu1 %v3577_v41 }
 0xd42   :  { %3696 = vmatprep.subr.bf16.mxu0 %v3580_v50  ;;  %3778 = vmatprep.subr.bf16.mxu1 %v3582_v52 }
 0xd45   :  { %3697 = vmatpush1.bf16.msra.mxu0 %v3579_v48  ;;  %3779 = vmatpush1.bf16.msra.mxu1 %v3581_v53 }
 0xd46   :  { %3698 = vmatprep.subr.bf16.mxu0 %v3584_v7  ;;  %3780 = vmatprep.subr.bf16.mxu1 %v3586_v15 }
 0xd49   :  { %3699 = vmatpush1.bf16.msra.mxu0 %v3583_v19  ;;  %3781 = vmatpush1.bf16.msra.mxu1 %v3585_v20 }
 0xd4a   :  { %3700 = vmatprep.subr.bf16.mxu0 %v3588_v23  ;;  %3782 = vmatprep.subr.bf16.mxu1 %v3590_v24 }
 0xd4d   :  { %3701 = vmatpush1.bf16.msra.mxu0 %v3587_v57  ;;  %3783 = vmatpush1.bf16.msra.mxu1 %v3589_v35 }
 0xd4e   :  { %3702 = vmatprep.subr.bf16.mxu0 %v3592_v45  ;;  %3784 = vmatprep.subr.bf16.mxu1 %v3594_v1 }
 0xd51   :  { %3703 = vmatpush1.bf16.msra.mxu0 %v3591_v5  ;;  %3785 = vmatpush1.bf16.msra.mxu1 %v3593_v0 }
 0xd52   :  { %3704 = vmatprep.subr.bf16.mxu0 %v3596_v44  ;;  %3786 = vmatprep.subr.bf16.mxu1 %v3598_v46 }
 0xd55   :  { %3705 = vmatpush1.bf16.msra.mxu0 %v3595_v42  ;;  %3787 = vmatpush1.bf16.msra.mxu1 %v3597_v49  ;;  %v3809_v49 = vld [vmem:[#allocation14] sm:$0xf] }
 0xd56   :  { %3706 = vmatprep.subr.bf16.mxu0 %v3600_v43  ;;  %3788 = vmatprep.subr.bf16.mxu1 %v3602_v62  ;;  %v3810_v43 = vld [vmem:[#allocation15] sm:$0xf]  ;;  %v3843_v62 = vrot.slane %v3809_v49, %v6957_v21 }
 0xd59   :  { %3707 = vmatpush1.bf16.msra.mxu0 %v3599_v31  ;;  %3789 = vmatpush1.bf16.msra.mxu1 %v3601_v17  ;;  %v3847_v31 = vrot.slane %v3809_v49, %v6959_v13  ;;  %v3851_v17 = vrot.slane %v3809_v49, %v6958_v9 }
 0xd5a   :  { %3708 = vmatprep.subr.bf16.mxu0 %v3604_v16  ;;  %3790 = vmatprep.subr.bf16.mxu1 %v3606_v25  ;;  %v3855_v16 = vrot.slane %v3809_v49, %v6960_v36 }
 0xd5d   :  { %3709 = vmatpush1.bf16.msra.mxu0 %v3603_v27  ;;  %3791 = vmatpush1.bf16.msra.mxu1 %v3605_v55 }
 0xd5e   :  { %3710 = vmatprep.subr.bf16.mxu0 %v3608_v59  ;;  %3792 = vmatprep.subr.bf16.mxu1 %v3610_v26 }
 0xd61   :  { %3711 = vmatpush1.bf16.msra.mxu0 %v3607_v3  ;;  %3793 = vmatpush1.bf16.msra.mxu1 %v3609_v8  ;;  %v3868_v3 = vrot.slane %v3810_v43, %v6957_v21  ;;  %v3872_v8 = vrot.slane %v3810_v43, %v6959_v13 }
 0xd62   :  { %3712 = vmatprep.subr.bf16.mxu0 %v3612_v56  ;;  %3794 = vmatprep.subr.bf16.mxu1 %v3614_v61  ;;  %v3876_v56 = vrot.slane %v3810_v43, %v6958_v9  ;;  %v3880_v61 = vrot.slane %v3810_v43, %v6960_v36 }
 0xd65   :  { %3713 = vmatpush1.bf16.msra.mxu0 %v3611_v10  ;;  %3795 = vmatpush1.bf16.msra.mxu1 %v3613_v63 }
 0xd66   :  { %3714 = vmatprep.subr.bf16.mxu0 %v3616_v11  ;;  %3796 = vmatprep.subr.bf16.mxu1 %v3618_v18 }
 0xd69   :  { %3715 = vmatpush1.bf16.msra.mxu0 %v3615_v22  ;;  %3797 = vmatpush1.bf16.msra.mxu1 %v3617_v30 }
 0xd6a   :  { %3716 = vmatprep.subr.bf16.mxu0 %v3620_v28  ;;  %3798 = vmatprep.subr.bf16.mxu1 %v3622_v58 }
 0xd6d   :  { %3717 = vmatpush1.bf16.msra.mxu0 %v3619_v29  ;;  %3799 = vmatpush1.bf16.msra.mxu1 %v3621_v33 }
 0xd70   :  { %3719 = vmatmul.mubr.bf16.vlgmr.msra.gmra.mrb[64].mxu0 %v3493_v39  ;;  %3801 = vmatmul.mubr.bf16.vlgmr.msra.gmra.mrb[64].mxu1 %v3493_v39 }
 0xe43   :  { %v3720_v14 = vpop.f32.mrb[64].mxu0  ;;  %v3802_v47 = vpop.f32.mrb[64].mxu1 }
 0xe44   :  { %v4767_v12 = vadd.f32 %v3720_v14, %v3628_v34  ;;  %v3722_v4 = vpop.f32.mrb[65].mxu0  ;;  %v3804_v37 = vpop.f32.mrb[65].mxu1  ;;  %v4769_v32 = vadd.f32 %v3802_v47, %v3636_v6 }
 0xe45   :  { %v4768_v54 = vadd.f32 %v3722_v4, %v3632_v2  ;;  %v3724_v38 = vpop.f32.mrb[66].mxu0  ;;  %v3806_v40 = vpop.f32.mrb[66].mxu1  ;;  %v4770_v15 = vadd.f32 %v3804_v37, %v3640_v60 }
 0xe46   :  { %v3817_v41 = vmul.f32 %v4767_v12, %v4767_v12  ;;  %v3725_v50 = vpop.f32.mrb[67].mxu0  ;;  %v3807_v52 = vpop.f32.mrb[67].mxu1  ;;  %v3819_v7 = vmul.f32 %v4769_v32, %v4769_v32 }
 0xe47   :  { %v3818_v48 = vmul.f32 %v4768_v54, %v4768_v54  ;;  %v3811_v53 = vadd.f32 %v4768_v54, %v4767_v12  ;;  %v3820_v57 = vmul.f32 %v4770_v15, %v4770_v15 }
 0xe49   :  { %v3812_v19 = vadd.f32 %v4769_v32, %v3811_v53  ;;  %v3821_v20 = vadd.f32 %v3818_v48, %v3817_v41 }
 0xe4b   :  { %v3813_v23 = vadd.f32 %v4770_v15, %v3812_v19  ;;  %v3822_v24 = vadd.f32 %v3821_v20, %v3819_v7 }
 0xe4d   :  { %3814 = vadd.xlane.f32.xlu0 %v3813_v23  ;;  %v3823_v35 = vadd.f32 %v3822_v24, %v3820_v57 }
 0xe51   :  { %3824 = vadd.xlane.f32.xlu0 %v3823_v35 }
 0xeda   :  { %v3815_v45 = vpop.xlane.xlu0 %3814 }
 0xedb   :  { %v3816_v1 = vmul.f32 0.001953125, %v3815_v45 }
 0xedd   :  { %v3827_v0 = vmul.f32 %v3816_v1, %v3816_v1  ;;  %v3829_v25 = vsub.f32 %v4767_v12, %v3816_v1  ;;  %v3830_v27 = vsub.f32 %v4768_v54, %v3816_v1  ;;  %v3831_v55 = vsub.f32 %v4769_v32, %v3816_v1 }
 0xede   :  { %v3825_v5 = vpop.xlane.xlu0 %3824  ;;  %v3832_v59 = vsub.f32 %v4770_v15, %v3816_v1 }
 0xedf   :  { %v3826_v44 = vmul.f32 0.001953125, %v3825_v5 }
 0xee1   :  { %v3828_v46 = vsub.f32 %v3826_v44, %v3827_v0 }
 0xee3   :  { %v3833_v42 = vadd.f32 1e-05, %v3828_v46 }
 0xee5   :  { %5326 = vrsqrt.f32 %v3833_v42 }
 0xeef   :  { %v5327_v26 = vpop.eup %5326 }
 0xef0   :  { %v3835_v10 = vmul.f32 %v5327_v26, %v3829_v25  ;;  %v3836_v63 = vmul.f32 %v5327_v26, %v3830_v27  ;;  %v3837_v11 = vmul.f32 %v5327_v26, %v3831_v55  ;;  %v3838_v18 = vmul.f32 %v5327_v26, %v3832_v59 }
 0xef2   :  { %v3860_v22 = vmul.f32 %v3843_v62, %v3835_v10  ;;  %v3861_v30 = vmul.f32 %v3847_v31, %v3836_v63  ;;  %v3862_v28 = vmul.f32 %v3851_v17, %v3837_v11  ;;  %v3863_v58 = vmul.f32 %v3855_v16, %v3838_v18 }
 0xef4   :  { %v6801_v29 = vadd.f32 %v3868_v3, %v3860_v22  ;;  %v3886_v33 = vadd.f32 %v3872_v8, %v3861_v30  ;;  %v6803_v39 = vadd.f32 %v3876_v56, %v3862_v28  ;;  %v6805_v51 = vadd.f32 %v3880_v61, %v3863_v58 }
 0xef6   :  { %v3889_v34 = vmax.f32 %v6801_v29, 0.0  ;;  %v3890_v6 = vmax.f32 %v3886_v33, 0.0  ;;  %v3891_v2 = vmax.f32 %v6803_v39, 0.0  ;;  %v3892_v14 = vmax.f32 %v6805_v51, 0.0 }
 0xef7   :  { %5564 = dma.done.wait [#allocation6 + $0x2], 16384 }
 0xef8   :  { %5565 = vsyncadd [#allocation6 + $0x2], 4294950912  ;;  %v3896_v47 = vpack.c.bf16 %v3890_v6, %v3890_v6  ;;  %v3900_v12 = vld [vmem:[#allocation4 + $0x8] sm:$0xff]  ;;  %v3902_v4 = vld [vmem:[#allocation4 + $0x18] sm:$0xff] }
 0xef9   :  { %v3899_v37 = vld [vmem:[#allocation4] sm:$0xff]  ;;  %4049 = vmatprep.subr.bf16.mxu0 %v3900_v12  ;;  %4131 = vmatprep.subr.bf16.mxu1 %v3902_v4  ;;  %v3901_v32 = vld [vmem:[#allocation4 + $0x10] sm:$0xff]  ;;  %v3904_v54 = vld [vmem:[#allocation4 + $0x28] sm:$0xff] }
 0xefa   :  { %4081 = vmatprep.mubr.bf16.mxu0 %v3896_v47  ;;  %4163 = vmatprep.mubr.bf16.mxu1 %v3896_v47  ;;  %v3906_v60 = vld [vmem:[#allocation4 + $0x38] sm:$0xff]  ;;  %v3903_v38 = vld [vmem:[#allocation4 + $0x20] sm:$0xff]  ;;  %v3905_v40 = vld [vmem:[#allocation4 + $0x30] sm:$0xff] }
 0xefb   :  { %4050 = vmatpush1.bf16.msra.mxu0 %v3899_v37  ;;  %4132 = vmatpush1.bf16.msra.mxu1 %v3901_v32  ;;  %v3908_v41 = vld [vmem:[#allocation4 + $0x48] sm:$0xff]  ;;  %v3910_v50 = vld [vmem:[#allocation4 + $0x58] sm:$0xff]  ;;  %v3907_v52 = vld [vmem:[#allocation4 + $0x40] sm:$0xff] }
 0xefc   :  { %4051 = vmatprep.subr.bf16.mxu0 %v3904_v54  ;;  %4133 = vmatprep.subr.bf16.mxu1 %v3906_v60  ;;  %v3909_v48 = vld [vmem:[#allocation4 + $0x50] sm:$0xff]  ;;  %v3912_v53 = vld [vmem:[#allocation4 + $0x68] sm:$0xff]  ;;  %v3914_v7 = vld [vmem:[#allocation4 + $0x78] sm:$0xff] }
 0xefd   :  { %v3911_v15 = vld [vmem:[#allocation4 + $0x60] sm:$0xff]  ;;  %v3913_v19 = vld [vmem:[#allocation4 + $0x70] sm:$0xff]  ;;  %v3916_v20 = vld [vmem:[#allocation4 + $0x88] sm:$0xff] }
 0xefe   :  { %v3918_v23 = vld [vmem:[#allocation4 + $0x98] sm:$0xff]  ;;  %v3915_v24 = vld [vmem:[#allocation4 + $0x80] sm:$0xff]  ;;  %v3917_v57 = vld [vmem:[#allocation4 + $0x90] sm:$0xff] }
 0xeff   :  { %4052 = vmatpush1.bf16.msra.mxu0 %v3903_v38  ;;  %4134 = vmatpush1.bf16.msra.mxu1 %v3905_v40  ;;  %v3920_v35 = vld [vmem:[#allocation4 + $0xa8] sm:$0xff]  ;;  %v3922_v45 = vld [vmem:[#allocation4 + $0xb8] sm:$0xff]  ;;  %v3919_v1 = vld [vmem:[#allocation4 + $0xa0] sm:$0xff] }
 0xf00   :  { %4053 = vmatprep.subr.bf16.mxu0 %v3908_v41  ;;  %4135 = vmatprep.subr.bf16.mxu1 %v3910_v50  ;;  %v3921_v5 = vld [vmem:[#allocation4 + $0xb0] sm:$0xff]  ;;  %v3924_v0 = vld [vmem:[#allocation4 + $0xc8] sm:$0xff]  ;;  %v3926_v44 = vld [vmem:[#allocation4 + $0xd8] sm:$0xff] }
 0xf01   :  { %v3923_v46 = vld [vmem:[#allocation4 + $0xc0] sm:$0xff]  ;;  %v3925_v42 = vld [vmem:[#allocation4 + $0xd0] sm:$0xff]  ;;  %v3928_v49 = vld [vmem:[#allocation4 + $0xe8] sm:$0xff] }
 0xf02   :  { %v3930_v43 = vld [vmem:[#allocation4 + $0xf8] sm:$0xff]  ;;  %v3927_v62 = vld [vmem:[#allocation4 + $0xe0] sm:$0xff]  ;;  %v3929_v31 = vld [vmem:[#allocation4 + $0xf0] sm:$0xff] }
 0xf03   :  { %4054 = vmatpush1.bf16.msra.mxu0 %v3907_v52  ;;  %4136 = vmatpush1.bf16.msra.mxu1 %v3909_v48  ;;  %v3932_v17 = vld [vmem:[#allocation4 + $0x108] sm:$0xff]  ;;  %v3934_v16 = vld [vmem:[#allocation4 + $0x118] sm:$0xff]  ;;  %v3931_v25 = vld [vmem:[#allocation4 + $0x100] sm:$0xff] }
 0xf04   :  { %4055 = vmatprep.subr.bf16.mxu0 %v3912_v53  ;;  %4137 = vmatprep.subr.bf16.mxu1 %v3914_v7  ;;  %v3933_v27 = vld [vmem:[#allocation4 + $0x110] sm:$0xff]  ;;  %v3936_v55 = vld [vmem:[#allocation4 + $0x128] sm:$0xff]  ;;  %v3938_v59 = vld [vmem:[#allocation4 + $0x138] sm:$0xff]  ;;  %v3895_v53 = vpack.c.bf16 %v3889_v34, %v3889_v34 }
 0xf05   :  { %v3935_v26 = vld [vmem:[#allocation4 + $0x120] sm:$0xff]  ;;  %v3937_v3 = vld [vmem:[#allocation4 + $0x130] sm:$0xff]  ;;  %v3940_v8 = vld [vmem:[#allocation4 + $0x148] sm:$0xff] }
 0xf06   :  { %v3942_v56 = vld [vmem:[#allocation4 + $0x158] sm:$0xff]  ;;  %v3939_v61 = vld [vmem:[#allocation4 + $0x140] sm:$0xff]  ;;  %v3941_v10 = vld [vmem:[#allocation4 + $0x150] sm:$0xff] }
 0xf07   :  { %4056 = vmatpush1.bf16.msra.mxu0 %v3911_v15  ;;  %4138 = vmatpush1.bf16.msra.mxu1 %v3913_v19  ;;  %v3944_v63 = vld [vmem:[#allocation4 + $0x168] sm:$0xff]  ;;  %v3946_v11 = vld [vmem:[#allocation4 + $0x178] sm:$0xff]  ;;  %v3943_v18 = vld [vmem:[#allocation4 + $0x160] sm:$0xff] }
 0xf08   :  { %4057 = vmatprep.subr.bf16.mxu0 %v3916_v20  ;;  %4139 = vmatprep.subr.bf16.mxu1 %v3918_v23  ;;  %v3945_v22 = vld [vmem:[#allocation4 + $0x170] sm:$0xff]  ;;  %v3948_v30 = vld [vmem:[#allocation4 + $0x188] sm:$0xff]  ;;  %v3950_v28 = vld [vmem:[#allocation4 + $0x198] sm:$0xff]  ;;  %v3898_v23 = vpack.c.bf16 %v3892_v14, %v3892_v14 }
 0xf09   :  { %v3947_v58 = vld [vmem:[#allocation4 + $0x180] sm:$0xff]  ;;  %v3949_v33 = vld [vmem:[#allocation4 + $0x190] sm:$0xff]  ;;  %v3952_v6 = vld [vmem:[#allocation4 + $0x1a8] sm:$0xff] }
 0xf0a   :  { %v3954_v47 = vld [vmem:[#allocation4 + $0x1b8] sm:$0xff]  ;;  %v3951_v12 = vld [vmem:[#allocation4 + $0x1a0] sm:$0xff]  ;;  %v3953_v4 = vld [vmem:[#allocation4 + $0x1b0] sm:$0xff] }
 0xf0b   :  { %4058 = vmatpush1.bf16.msra.mxu0 %v3915_v24  ;;  %4140 = vmatpush1.bf16.msra.mxu1 %v3917_v57  ;;  %v3956_v37 = vld [vmem:[#allocation4 + $0x1c8] sm:$0xff]  ;;  %v3958_v32 = vld [vmem:[#allocation4 + $0x1d8] sm:$0xff]  ;;  %v3955_v54 = vld [vmem:[#allocation4 + $0x1c0] sm:$0xff] }
 0xf0c   :  { %4059 = vmatprep.subr.bf16.mxu0 %v3920_v35  ;;  %4141 = vmatprep.subr.bf16.mxu1 %v3922_v45  ;;  %v3957_v60 = vld [vmem:[#allocation4 + $0x1d0] sm:$0xff]  ;;  %v3960_v38 = vld [vmem:[#allocation4 + $0x1e8] sm:$0xff]  ;;  %v3962_v40 = vld [vmem:[#allocation4 + $0x1f8] sm:$0xff] }
 0xf0d   :  { %v3959_v41 = vld [vmem:[#allocation4 + $0x1e0] sm:$0xff]  ;;  %v3961_v50 = vld [vmem:[#allocation4 + $0x1f0] sm:$0xff]  ;;  %v3964_v52 = vld [vmem:[#allocation4 + $0x208] sm:$0xff] }
 0xf0e   :  { %v3966_v48 = vld [vmem:[#allocation4 + $0x218] sm:$0xff]  ;;  %v3963_v7 = vld [vmem:[#allocation4 + $0x200] sm:$0xff]  ;;  %v3965_v15 = vld [vmem:[#allocation4 + $0x210] sm:$0xff] }
 0xf0f   :  { %4060 = vmatpush1.bf16.msra.mxu0 %v3919_v1  ;;  %4142 = vmatpush1.bf16.msra.mxu1 %v3921_v5  ;;  %v3968_v19 = vld [vmem:[#allocation4 + $0x228] sm:$0xff]  ;;  %v3970_v20 = vld [vmem:[#allocation4 + $0x238] sm:$0xff]  ;;  %v3967_v29 = vld [vmem:[#allocation4 + $0x220] sm:$0xff] }
 0xf10   :  { %4061 = vmatprep.subr.bf16.mxu0 %v3924_v0  ;;  %4143 = vmatprep.subr.bf16.mxu1 %v3926_v44  ;;  %v3969_v34 = vld [vmem:[#allocation4 + $0x230] sm:$0xff]  ;;  %v3972_v24 = vld [vmem:[#allocation4 + $0x248] sm:$0xff]  ;;  %v3974_v57 = vld [vmem:[#allocation4 + $0x258] sm:$0xff] }
 0xf11   :  { %v3971_v35 = vld [vmem:[#allocation4 + $0x240] sm:$0xff]  ;;  %v3973_v51 = vld [vmem:[#allocation4 + $0x250] sm:$0xff]  ;;  %v3976_v45 = vld [vmem:[#allocation4 + $0x268] sm:$0xff] }
 0xf12   :  { %v3978_v14 = vld [vmem:[#allocation4 + $0x278] sm:$0xff]  ;;  %v3975_v1 = vld [vmem:[#allocation4 + $0x260] sm:$0xff]  ;;  %v3977_v5 = vld [vmem:[#allocation4 + $0x270] sm:$0xff] }
 0xf13   :  { %4062 = vmatpush1.bf16.msra.mxu0 %v3923_v46  ;;  %4144 = vmatpush1.bf16.msra.mxu1 %v3925_v42  ;;  %v3980_v0 = vld [vmem:[#allocation4 + $0x288] sm:$0xff]  ;;  %v3982_v44 = vld [vmem:[#allocation4 + $0x298] sm:$0xff]  ;;  %v3979_v46 = vld [vmem:[#allocation4 + $0x280] sm:$0xff] }
 0xf14   :  { %4063 = vmatprep.subr.bf16.mxu0 %v3928_v49  ;;  %4145 = vmatprep.subr.bf16.mxu1 %v3930_v43  ;;  %v3981_v42 = vld [vmem:[#allocation4 + $0x290] sm:$0xff]  ;;  %v3984_v49 = vld [vmem:[#allocation4 + $0x2a8] sm:$0xff]  ;;  %v3986_v43 = vld [vmem:[#allocation4 + $0x2b8] sm:$0xff] }
 0xf17   :  { %4064 = vmatpush1.bf16.msra.mxu0 %v3927_v62  ;;  %4146 = vmatpush1.bf16.msra.mxu1 %v3929_v31  ;;  %v3983_v62 = vld [vmem:[#allocation4 + $0x2a0] sm:$0xff]  ;;  %v3985_v31 = vld [vmem:[#allocation4 + $0x2b0] sm:$0xff] }
 0xf18   :  { %4065 = vmatprep.subr.bf16.mxu0 %v3932_v17  ;;  %4147 = vmatprep.subr.bf16.mxu1 %v3934_v16  ;;  %v3988_v17 = vld [vmem:[#allocation4 + $0x2c8] sm:$0xff]  ;;  %v3990_v16 = vld [vmem:[#allocation4 + $0x2d8] sm:$0xff] }
 0xf1b   :  { %4066 = vmatpush1.bf16.msra.mxu0 %v3931_v25  ;;  %4148 = vmatpush1.bf16.msra.mxu1 %v3933_v27  ;;  %v3987_v25 = vld [vmem:[#allocation4 + $0x2c0] sm:$0xff]  ;;  %v3989_v27 = vld [vmem:[#allocation4 + $0x2d0] sm:$0xff] }
 0xf1c   :  { %4067 = vmatprep.subr.bf16.mxu0 %v3936_v55  ;;  %4149 = vmatprep.subr.bf16.mxu1 %v3938_v59  ;;  %v3992_v55 = vld [vmem:[#allocation4 + $0x2e8] sm:$0xff]  ;;  %v3994_v59 = vld [vmem:[#allocation4 + $0x2f8] sm:$0xff] }
 0xf1f   :  { %4068 = vmatpush1.bf16.msra.mxu0 %v3935_v26  ;;  %4150 = vmatpush1.bf16.msra.mxu1 %v3937_v3  ;;  %v3991_v26 = vld [vmem:[#allocation4 + $0x2e0] sm:$0xff]  ;;  %v3993_v3 = vld [vmem:[#allocation4 + $0x2f0] sm:$0xff] }
 0xf20   :  { %4069 = vmatprep.subr.bf16.mxu0 %v3940_v8  ;;  %4151 = vmatprep.subr.bf16.mxu1 %v3942_v56  ;;  %v3996_v8 = vld [vmem:[#allocation4 + $0x308] sm:$0xff]  ;;  %v3998_v56 = vld [vmem:[#allocation4 + $0x318] sm:$0xff] }
 0xf23   :  { %4070 = vmatpush1.bf16.msra.mxu0 %v3939_v61  ;;  %4152 = vmatpush1.bf16.msra.mxu1 %v3941_v10  ;;  %v3995_v61 = vld [vmem:[#allocation4 + $0x300] sm:$0xff]  ;;  %v3997_v10 = vld [vmem:[#allocation4 + $0x310] sm:$0xff] }
 0xf24   :  { %4071 = vmatprep.subr.bf16.mxu0 %v3944_v63  ;;  %4153 = vmatprep.subr.bf16.mxu1 %v3946_v11  ;;  %v4000_v63 = vld [vmem:[#allocation4 + $0x328] sm:$0xff]  ;;  %v4002_v11 = vld [vmem:[#allocation4 + $0x338] sm:$0xff] }
 0xf27   :  { %4072 = vmatpush1.bf16.msra.mxu0 %v3943_v18  ;;  %4154 = vmatpush1.bf16.msra.mxu1 %v3945_v22  ;;  %v3999_v18 = vld [vmem:[#allocation4 + $0x320] sm:$0xff]  ;;  %v4001_v22 = vld [vmem:[#allocation4 + $0x330] sm:$0xff] }
 0xf28   :  { %4073 = vmatprep.subr.bf16.mxu0 %v3948_v30  ;;  %4155 = vmatprep.subr.bf16.mxu1 %v3950_v28  ;;  %v4004_v30 = vld [vmem:[#allocation4 + $0x348] sm:$0xff]  ;;  %v4006_v28 = vld [vmem:[#allocation4 + $0x358] sm:$0xff] }
 0xf2b   :  { %4074 = vmatpush1.bf16.msra.mxu0 %v3947_v58  ;;  %4156 = vmatpush1.bf16.msra.mxu1 %v3949_v33  ;;  %v4003_v58 = vld [vmem:[#allocation4 + $0x340] sm:$0xff]  ;;  %v4005_v33 = vld [vmem:[#allocation4 + $0x350] sm:$0xff] }
 0xf2c   :  { %4075 = vmatprep.subr.bf16.mxu0 %v3952_v6  ;;  %4157 = vmatprep.subr.bf16.mxu1 %v3954_v47  ;;  %v4008_v6 = vld [vmem:[#allocation4 + $0x368] sm:$0xff]  ;;  %v4010_v47 = vld [vmem:[#allocation4 + $0x378] sm:$0xff] }
 0xf2f   :  { %4076 = vmatpush1.bf16.msra.mxu0 %v3951_v12  ;;  %4158 = vmatpush1.bf16.msra.mxu1 %v3953_v4  ;;  %v4007_v12 = vld [vmem:[#allocation4 + $0x360] sm:$0xff]  ;;  %v4009_v4 = vld [vmem:[#allocation4 + $0x370] sm:$0xff] }
 0xf30   :  { %4077 = vmatprep.subr.bf16.mxu0 %v3956_v37  ;;  %4159 = vmatprep.subr.bf16.mxu1 %v3958_v32  ;;  %v4012_v37 = vld [vmem:[#allocation4 + $0x388] sm:$0xff]  ;;  %v4014_v32 = vld [vmem:[#allocation4 + $0x398] sm:$0xff] }
 0xf33   :  { %4078 = vmatpush1.bf16.msra.mxu0 %v3955_v54  ;;  %4160 = vmatpush1.bf16.msra.mxu1 %v3957_v60  ;;  %v4011_v54 = vld [vmem:[#allocation4 + $0x380] sm:$0xff]  ;;  %v4013_v60 = vld [vmem:[#allocation4 + $0x390] sm:$0xff] }
 0xf34   :  { %4079 = vmatprep.subr.bf16.mxu0 %v3960_v38  ;;  %4161 = vmatprep.subr.bf16.mxu1 %v3962_v40  ;;  %v4016_v38 = vld [vmem:[#allocation4 + $0x3a8] sm:$0xff]  ;;  %v4018_v40 = vld [vmem:[#allocation4 + $0x3b8] sm:$0xff] }
 0xf37   :  { %4080 = vmatpush1.bf16.msra.mxu0 %v3959_v41  ;;  %4162 = vmatpush1.bf16.msra.mxu1 %v3961_v50  ;;  %v4015_v41 = vld [vmem:[#allocation4 + $0x3a0] sm:$0xff]  ;;  %v4017_v50 = vld [vmem:[#allocation4 + $0x3b0] sm:$0xff] }
 0xf38   :  { %4090 = vmatprep.subr.bf16.mxu0 %v3964_v52  ;;  %4172 = vmatprep.subr.bf16.mxu1 %v3966_v48  ;;  %v4020_v52 = vld [vmem:[#allocation4 + $0x3c8] sm:$0xff]  ;;  %v4022_v48 = vld [vmem:[#allocation4 + $0x3d8] sm:$0xff] }
 0xf3a   :  { %4082 = vmatmul.mubr.bf16.vlgmr.msra.gmra.mrb[68].mxu0 %v3895_v53  ;;  %4164 = vmatmul.mubr.bf16.vlgmr.msra.gmra.mrb[68].mxu1 %v3895_v53  ;;  %v4019_v53 = vld [vmem:[#allocation4 + $0x3c0] sm:$0xff] }
 0xf3b   :  { %4091 = vmatpush1.bf16.msra.mxu0 %v3963_v7  ;;  %4173 = vmatpush1.bf16.msra.mxu1 %v3965_v15  ;;  %v4021_v7 = vld [vmem:[#allocation4 + $0x3d0] sm:$0xff]  ;;  %v4024_v15 = vld [vmem:[#allocation4 + $0x3e8] sm:$0xff] }
 0xf3c   :  { %4092 = vmatprep.subr.bf16.mxu0 %v3968_v19  ;;  %4174 = vmatprep.subr.bf16.mxu1 %v3970_v20  ;;  %v4026_v19 = vld [vmem:[#allocation4 + $0x3f8] sm:$0xff]  ;;  %v4023_v20 = vld [vmem:[#allocation4 + $0x3e0] sm:$0xff] }
 0xf3d   :  { %4122 = vmatprep.mubr.bf16.mxu0 %v3898_v23  ;;  %4204 = vmatprep.mubr.bf16.mxu1 %v3898_v23  ;;  %v4025_v23 = vld [vmem:[#allocation4 + $0x3f0] sm:$0xff] }
 0xf3f   :  { %4093 = vmatpush1.bf16.msra.mxu0 %v3967_v29  ;;  %4175 = vmatpush1.bf16.msra.mxu1 %v3969_v34  ;;  %v3897_v29 = vpack.c.bf16 %v3891_v2, %v3891_v2  ;;  %v4027_v34 = vld [vmem:[#allocation17] sm:$0xf] }
 0xf40   :  { %4094 = vmatprep.subr.bf16.mxu0 %v3972_v24  ;;  %4176 = vmatprep.subr.bf16.mxu1 %v3974_v57  ;;  %v4032_v24 = vrot.slane %v4027_v34, %v6957_v21  ;;  %v4040_v57 = vrot.slane %v4027_v34, %v6958_v9  ;;  %v4044_v2 = vrot.slane %v4027_v34, %v6960_v36 }
 0xf43   :  { %4095 = vmatpush1.bf16.msra.mxu0 %v3971_v35  ;;  %4177 = vmatpush1.bf16.msra.mxu1 %v3973_v51  ;;  %v4036_v35 = vrot.slane %v4027_v34, %v6959_v13 }
 0xf44   :  { %4096 = vmatprep.subr.bf16.mxu0 %v3976_v45  ;;  %4178 = vmatprep.subr.bf16.mxu1 %v3978_v14 }
 0xf47   :  { %4097 = vmatpush1.bf16.msra.mxu0 %v3975_v1  ;;  %4179 = vmatpush1.bf16.msra.mxu1 %v3977_v5 }
 0xf48   :  { %4098 = vmatprep.subr.bf16.mxu0 %v3980_v0  ;;  %4180 = vmatprep.subr.bf16.mxu1 %v3982_v44 }
 0xf4b   :  { %4099 = vmatpush1.bf16.msra.mxu0 %v3979_v46  ;;  %4181 = vmatpush1.bf16.msra.mxu1 %v3981_v42 }
 0xf4c   :  { %4100 = vmatprep.subr.bf16.mxu0 %v3984_v49  ;;  %4182 = vmatprep.subr.bf16.mxu1 %v3986_v43 }
 0xf4f   :  { %4101 = vmatpush1.bf16.msra.mxu0 %v3983_v62  ;;  %4183 = vmatpush1.bf16.msra.mxu1 %v3985_v31 }
 0xf50   :  { %4102 = vmatprep.subr.bf16.mxu0 %v3988_v17  ;;  %4184 = vmatprep.subr.bf16.mxu1 %v3990_v16 }
 0xf53   :  { %4103 = vmatpush1.bf16.msra.mxu0 %v3987_v25  ;;  %4185 = vmatpush1.bf16.msra.mxu1 %v3989_v27 }
 0xf54   :  { %4104 = vmatprep.subr.bf16.mxu0 %v3992_v55  ;;  %4186 = vmatprep.subr.bf16.mxu1 %v3994_v59 }
 0xf57   :  { %4105 = vmatpush1.bf16.msra.mxu0 %v3991_v26  ;;  %4187 = vmatpush1.bf16.msra.mxu1 %v3993_v3 }
 0xf58   :  { %4106 = vmatprep.subr.bf16.mxu0 %v3996_v8  ;;  %4188 = vmatprep.subr.bf16.mxu1 %v3998_v56 }
 0xf5b   :  { %4107 = vmatpush1.bf16.msra.mxu0 %v3995_v61  ;;  %4189 = vmatpush1.bf16.msra.mxu1 %v3997_v10 }
 0xf5c   :  { %4108 = vmatprep.subr.bf16.mxu0 %v4000_v63  ;;  %4190 = vmatprep.subr.bf16.mxu1 %v4002_v11 }
 0xf5f   :  { %4109 = vmatpush1.bf16.msra.mxu0 %v3999_v18  ;;  %4191 = vmatpush1.bf16.msra.mxu1 %v4001_v22  ;;  %v4213_v22 = vld [vmem:[#allocation18] sm:$0xf] }
 0xf60   :  { %4110 = vmatprep.subr.bf16.mxu0 %v4004_v30  ;;  %4192 = vmatprep.subr.bf16.mxu1 %v4006_v28  ;;  %v4214_v30 = vld [vmem:[#allocation20] sm:$0xf]  ;;  %v4247_v28 = vrot.slane %v4213_v22, %v6957_v21 }
 0xf63   :  { %4111 = vmatpush1.bf16.msra.mxu0 %v4003_v58  ;;  %4193 = vmatpush1.bf16.msra.mxu1 %v4005_v33  ;;  %v4251_v58 = vrot.slane %v4213_v22, %v6959_v13  ;;  %v4255_v33 = vrot.slane %v4213_v22, %v6958_v9 }
 0xf64   :  { %4112 = vmatprep.subr.bf16.mxu0 %v4008_v6  ;;  %4194 = vmatprep.subr.bf16.mxu1 %v4010_v47  ;;  %v4259_v6 = vrot.slane %v4213_v22, %v6960_v36 }
 0xf67   :  { %4113 = vmatpush1.bf16.msra.mxu0 %v4007_v12  ;;  %4195 = vmatpush1.bf16.msra.mxu1 %v4009_v4 }
 0xf68   :  { %4114 = vmatprep.subr.bf16.mxu0 %v4012_v37  ;;  %4196 = vmatprep.subr.bf16.mxu1 %v4014_v32 }
 0xf6b   :  { %4115 = vmatpush1.bf16.msra.mxu0 %v4011_v54  ;;  %4197 = vmatpush1.bf16.msra.mxu1 %v4013_v60  ;;  %v4272_v54 = vrot.slane %v4214_v30, %v6957_v21  ;;  %v4276_v60 = vrot.slane %v4214_v30, %v6959_v13 }
 0xf6c   :  { %4116 = vmatprep.subr.bf16.mxu0 %v4016_v38  ;;  %4198 = vmatprep.subr.bf16.mxu1 %v4018_v40  ;;  %v4280_v38 = vrot.slane %v4214_v30, %v6958_v9  ;;  %v4284_v40 = vrot.slane %v4214_v30, %v6960_v36 }
 0xf6f   :  { %4117 = vmatpush1.bf16.msra.mxu0 %v4015_v41  ;;  %4199 = vmatpush1.bf16.msra.mxu1 %v4017_v50 }
 0xf70   :  { %4118 = vmatprep.subr.bf16.mxu0 %v4020_v52  ;;  %4200 = vmatprep.subr.bf16.mxu1 %v4022_v48 }
 0xf73   :  { %4119 = vmatpush1.bf16.msra.mxu0 %v4019_v53  ;;  %4201 = vmatpush1.bf16.msra.mxu1 %v4021_v7 }
 0xf74   :  { %4120 = vmatprep.subr.bf16.mxu0 %v4024_v15  ;;  %4202 = vmatprep.subr.bf16.mxu1 %v4026_v19 }
 0xf77   :  { %4121 = vmatpush1.bf16.msra.mxu0 %v4023_v20  ;;  %4203 = vmatpush1.bf16.msra.mxu1 %v4025_v23 }
 0xf7a   :  { %4123 = vmatmul.mubr.bf16.vlgmr.msra.gmra.mrb[68].mxu0 %v3897_v29  ;;  %4205 = vmatmul.mubr.bf16.vlgmr.msra.gmra.mrb[68].mxu1 %v3897_v29 }
0x104d   :  { %v4124_v51 = vpop.f32.mrb[68].mxu0  ;;  %v4206_v45 = vpop.f32.mrb[68].mxu1 }
0x104e   :  { %v4771_v14 = vadd.f32 %v4124_v51, %v4032_v24  ;;  %v4126_v1 = vpop.f32.mrb[69].mxu0  ;;  %v4208_v5 = vpop.f32.mrb[69].mxu1  ;;  %v4773_v0 = vadd.f32 %v4206_v45, %v4040_v57 }
0x104f   :  { %v4772_v39 = vadd.f32 %v4126_v1, %v4036_v35  ;;  %v4128_v44 = vpop.f32.mrb[70].mxu0  ;;  %v4210_v46 = vpop.f32.mrb[70].mxu1  ;;  %v4774_v16 = vadd.f32 %v4208_v5, %v4044_v2 }
0x1050   :  { %v4221_v42 = vmul.f32 %v4771_v14, %v4771_v14  ;;  %v4129_v49 = vpop.f32.mrb[71].mxu0  ;;  %v4211_v43 = vpop.f32.mrb[71].mxu1  ;;  %v4223_v17 = vmul.f32 %v4773_v0, %v4773_v0 }
0x1051   :  { %v4222_v62 = vmul.f32 %v4772_v39, %v4772_v39  ;;  %v4215_v31 = vadd.f32 %v4772_v39, %v4771_v14  ;;  %v4224_v26 = vmul.f32 %v4774_v16, %v4774_v16 }
0x1053   :  { %v4216_v25 = vadd.f32 %v4773_v0, %v4215_v31  ;;  %v4225_v27 = vadd.f32 %v4222_v62, %v4221_v42 }
0x1055   :  { %v4217_v55 = vadd.f32 %v4774_v16, %v4216_v25  ;;  %v4226_v59 = vadd.f32 %v4225_v27, %v4223_v17 }
0x1057   :  { %4218 = vadd.xlane.f32.xlu0 %v4217_v55  ;;  %v4227_v3 = vadd.f32 %v4226_v59, %v4224_v26 }
0x105b   :  { %4228 = vadd.xlane.f32.xlu0 %v4227_v3 }
0x10e4   :  { %v4219_v8 = vpop.xlane.xlu0 %4218 }
0x10e5   :  { %v4220_v56 = vmul.f32 0.001953125, %v4219_v8 }
0x10e7   :  { %v4231_v10 = vmul.f32 %v4220_v56, %v4220_v56  ;;  %v4233_v47 = vsub.f32 %v4771_v14, %v4220_v56  ;;  %v4234_v12 = vsub.f32 %v4772_v39, %v4220_v56  ;;  %v4235_v4 = vsub.f32 %v4773_v0, %v4220_v56 }
0x10e8   :  { %v4229_v61 = vpop.xlane.xlu0 %4228  ;;  %v4236_v37 = vsub.f32 %v4774_v16, %v4220_v56 }
0x10e9   :  { %v4230_v63 = vmul.f32 0.001953125, %v4229_v61 }
0x10eb   :  { %v4232_v11 = vsub.f32 %v4230_v63, %v4231_v10 }
0x10ed   :  { %v4237_v18 = vadd.f32 1e-05, %v4232_v11 }
0x10ef   :  { %5328 = vrsqrt.f32 %v4237_v18 }
0x10f9   :  { %v5329_v32 = vpop.eup %5328 }
0x10fa   :  { %v4239_v41 = vmul.f32 %v5329_v32, %v4233_v47  ;;  %v4240_v50 = vmul.f32 %v5329_v32, %v4234_v12  ;;  %v4241_v52 = vmul.f32 %v5329_v32, %v4235_v4  ;;  %v4242_v48 = vmul.f32 %v5329_v32, %v4236_v37 }
0x10fc   :  { %v4264_v53 = vmul.f32 %v4247_v28, %v4239_v41  ;;  %v4265_v7 = vmul.f32 %v4251_v58, %v4240_v50  ;;  %v4266_v15 = vmul.f32 %v4255_v33, %v4241_v52  ;;  %v4267_v19 = vmul.f32 %v4259_v6, %v4242_v48 }
0x10fe   :  { %v6831_v20 = vadd.f32 %v4272_v54, %v4264_v53  ;;  %v4290_v23 = vadd.f32 %v4276_v60, %v4265_v7  ;;  %v6833_v29 = vadd.f32 %v4280_v38, %v4266_v15  ;;  %v4292_v21 = vadd.f32 %v4284_v40, %v4267_v19 }
0x1100   :  { %v4293_v13 = vmax.f32 %v6831_v20, 0.0  ;;  %v4294_v34 = vmax.f32 %v4290_v23, 0.0  ;;  %v4295_v9 = vmax.f32 %v6833_v29, 0.0  ;;  %v4296_v36 = vmax.f32 %v4292_v21, 0.0 }
0x1101   :  { %5566 = dma.done.wait [#allocation6 + $0x3], 4096 }
0x1102   :  { %5567 = vsyncadd [#allocation6 + $0x3], 4294963200  ;;  %v4301_v24 = vpack.c.bf16 %v4294_v34, %v4294_v34  ;;  %v4303_v57 = vpack.c.bf16 %v4296_v36, %v4296_v36  ;;  %v4312_v35 = vld [vmem:[#allocation5 + $0x40] sm:$0xff]  ;;  %v4313_v1 = vld [vmem:[#allocation5 + $0x48] sm:$0xff]  ;;  %v4300_v30 = vpack.c.bf16 %v4293_v13, %v4293_v13  ;;  %v4302_v28 = vpack.c.bf16 %v4295_v9, %v4295_v9 }
0x1103   :  { %v4328_v51 = vld [vmem:[#allocation5 + $0xc0] sm:$0xff]  ;;  %4719 = vmatprep.subr.bf16.mxu0 %v4312_v35  ;;  %v4329_v5 = vld [vmem:[#allocation5 + $0xc8] sm:$0xff]  ;;  %v4314_v2 = vld [vmem:[#allocation5 + $0x50] sm:$0xff] }
0x1104   :  { %4375 = vmatprep.mubr.bf16.mxu0 %v4301_v24  ;;  %4415 = vmatprep.mubr.bf16.mxu1 %v4303_v57  ;;  %v4304_v45 = vld [vmem:[#allocation5] sm:$0xff]  ;;  %v4305_v0 = vld [vmem:[#allocation5 + $0x8] sm:$0xff]  ;;  %v4330_v44 = vld [vmem:[#allocation5 + $0xd0] sm:$0xff] }
0x1105   :  { %4741 = vmatprep.subr.bf16.mxu1 %v4328_v51  ;;  %v4320_v14 = vld [vmem:[#allocation5 + $0x80] sm:$0xff]  ;;  %4720 = vmatpush3.bf16.msra.mxu0 %v4304_v45  ;;  %v4321_v39 = vld [vmem:[#allocation5 + $0x88] sm:$0xff]  ;;  %v4306_v46 = vld [vmem:[#allocation5 + $0x10] sm:$0xff] }
0x1106   :  { %4742 = vmatpush3.bf16.msra.mxu1 %v4320_v14  ;;  %4721 = vmatprep.subr.bf16.mxu0 %v4313_v1  ;;  %v4322_v42 = vld [vmem:[#allocation5 + $0x90] sm:$0xff]  ;;  %v4315_v49 = vld [vmem:[#allocation5 + $0x58] sm:$0xff]  ;;  %v4316_v17 = vld [vmem:[#allocation5 + $0x60] sm:$0xff] }
0x1107   :  { %4743 = vmatprep.subr.bf16.mxu1 %v4329_v5  ;;  %v4331_v43 = vld [vmem:[#allocation5 + $0xd8] sm:$0xff]  ;;  %v4332_v16 = vld [vmem:[#allocation5 + $0xe0] sm:$0xff]  ;;  %v4317_v55 = vld [vmem:[#allocation5 + $0x68] sm:$0xff] }
0x1108   :  { %v4307_v62 = vld [vmem:[#allocation5 + $0x18] sm:$0xff]  ;;  %v4308_v25 = vld [vmem:[#allocation5 + $0x20] sm:$0xff]  ;;  %v4333_v59 = vld [vmem:[#allocation5 + $0xe8] sm:$0xff] }
0x1109   :  { %4722 = vmatpush3.bf16.msra.mxu0 %v4305_v0  ;;  %v4323_v31 = vld [vmem:[#allocation5 + $0x98] sm:$0xff]  ;;  %v4324_v27 = vld [vmem:[#allocation5 + $0xa0] sm:$0xff]  ;;  %v4309_v26 = vld [vmem:[#allocation5 + $0x28] sm:$0xff] }
0x110a   :  { %4744 = vmatpush3.bf16.msra.mxu1 %v4321_v39  ;;  %4723 = vmatprep.subr.bf16.mxu0 %v4314_v2  ;;  %v4325_v3 = vld [vmem:[#allocation5 + $0xa8] sm:$0xff]  ;;  %v4318_v8 = vld [vmem:[#allocation5 + $0x70] sm:$0xff]  ;;  %v4319_v63 = vld [vmem:[#allocation5 + $0x78] sm:$0xff] }
0x110b   :  { %4745 = vmatprep.subr.bf16.mxu1 %v4330_v44  ;;  %v4334_v56 = vld [vmem:[#allocation5 + $0xf0] sm:$0xff]  ;;  %v4335_v11 = vld [vmem:[#allocation5 + $0xf8] sm:$0xff]  ;;  %v4714_v6 = vld [vmem:[%s6872_s23] ss:$0 sm:$0xff] }
0x110c   :  { %v4310_v61 = vld [vmem:[#allocation5 + $0x30] sm:$0xff]  ;;  %v4311_v18 = vld [vmem:[#allocation5 + $0x38] sm:$0xff] }
0x110d   :  { %4724 = vmatpush3.bf16.msra.mxu0 %v4306_v46  ;;  %v4326_v10 = vld [vmem:[#allocation5 + $0xb0] sm:$0xff]  ;;  %v4327_v22 = vld [vmem:[#allocation5 + $0xb8] sm:$0xff] }
0x110e   :  { %4746 = vmatpush3.bf16.msra.mxu1 %v4322_v42  ;;  %4725 = vmatprep.subr.bf16.mxu0 %v4315_v49 }
0x110f   :  { %4747 = vmatprep.subr.bf16.mxu1 %v4331_v43 }
0x1111   :  { %4726 = vmatpush3.bf16.msra.mxu0 %v4307_v62 }
0x1112   :  { %4748 = vmatpush3.bf16.msra.mxu1 %v4323_v31  ;;  %4727 = vmatprep.subr.bf16.mxu0 %v4316_v17 }
0x1113   :  { %4749 = vmatprep.subr.bf16.mxu1 %v4332_v16 }
0x1115   :  { %4728 = vmatpush3.bf16.msra.mxu0 %v4308_v25 }
0x1116   :  { %4750 = vmatpush3.bf16.msra.mxu1 %v4324_v27  ;;  %4729 = vmatprep.subr.bf16.mxu0 %v4317_v55 }
0x1117   :  { %4751 = vmatprep.subr.bf16.mxu1 %v4333_v59 }
0x1119   :  { %4730 = vmatpush3.bf16.msra.mxu0 %v4309_v26 }
0x111a   :  { %4752 = vmatpush3.bf16.msra.mxu1 %v4325_v3  ;;  %4731 = vmatprep.subr.bf16.mxu0 %v4318_v8 }
0x111b   :  { %4753 = vmatprep.subr.bf16.mxu1 %v4334_v56 }
0x111d   :  { %4732 = vmatpush3.bf16.msra.mxu0 %v4310_v61 }
0x111e   :  { %4754 = vmatpush3.bf16.msra.mxu1 %v4326_v10  ;;  %4733 = vmatprep.subr.bf16.mxu0 %v4319_v63 }
0x111f   :  { %4755 = vmatprep.subr.bf16.mxu1 %v4335_v11 }
0x1121   :  { %4734 = vmatpush3.bf16.msra.mxu0 %v4311_v18 }
0x1122   :  { %4756 = vmatpush3.bf16.msra.mxu1 %v4327_v22 }
0x1124   :  { %4376 = vmatmul.mubr.bf16.vlgmr.msra.gmra.mrb[72].mxu0 %v4300_v30 }
0x1125   :  { %4416 = vmatmul.mubr.bf16.vlgmr.msra.gmra.mrb[72].mxu1 %v4302_v28 }
0x11f7   :  { %v4735_v58 = vpop.f32.mrb[72].mxu0 }
0x11f8   :  { %v4757_v33 = vpop.f32.mrb[72].mxu1  ;;  %v4736_v47 = vpop.f32.mrb[73].mxu0 }
0x11f9   :  { %v4758_v12 = vpop.f32.mrb[73].mxu1  ;;  %v4737_v4 = vadd.f32 %v4736_v47, %v4735_v58  ;;  %v4738_v32 = vpop.f32.mrb[74].mxu0 }
0x11fa   :  { %v4759_v37 = vadd.f32 %v4758_v12, %v4757_v33  ;;  %v4760_v54 = vpop.f32.mrb[74].mxu1  ;;  %v4739_v60 = vpop.f32.mrb[75].mxu0 }
0x11fb   :  { %v4761_v38 = vpop.f32.mrb[75].mxu1  ;;  %v4378_v40 = vadd.f32 %v4737_v4, %v4714_v6 }
0x11fd   :  { %v4418_v41 = vadd.f32 %v4759_v37, %v4378_v40 }
0x11ff   :  { %4423 = vst [vmem:[%s6873_s24] sm:$0xff] %v4418_v41 }
0x1200   :  { %4428 = vsyncpa [#allocation8], 1 }
0x1201   :  { %4429 = vsyncpa [#allocation10], 1 }
0x1202   :  { %4430 = vsyncpa [#allocation13], 1 }
0x1203   :  { %4431 = vsyncpa [#allocation16], 1 }
0x1204   :  { %4432 = vsyncpa [#allocation19], 1 }
0x1205   :  { %4433 = vsyncmov [#allocation6] }
0x1208   :  { %s4434_s23 = vpop.sfrf %4433 }
0x1209   :  { %p4715_p10 = scmp.ne.s32.totalorder %s4434_s23, 0 }
0x120b   :  { %4438 = shalt.err (%p4715_p10)  }
0x120c   :  { %4440 = vsyncmov [#allocation6 + $0x1] }
0x120f   :  { %s4441_s10 = vpop.sfrf %4440 }
0x1210   :  { %p4716_p11 = scmp.ne.s32.totalorder %s4441_s10, 0 }
0x1212   :  { %4445 = shalt.err (%p4716_p11)  }
0x1213   :  { %4447 = vsyncmov [#allocation6 + $0x2] }
0x1216   :  { %s4448_s8 = vpop.sfrf %4447 }
0x1217   :  { %p4717_p12 = scmp.ne.s32.totalorder %s4448_s8, 0 }
0x1219   :  { %4452 = shalt.err (%p4717_p12)  }
0x121a   :  { %4454 = vsyncmov [#allocation6 + $0x3] }
0x121d   :  { %s4455_s5 = vpop.sfrf %4454 }
0x121e   :  { %p4718_p13 = scmp.ne.s32.totalorder %s4455_s5, 0 }
0x1220   :  { %4459 = shalt.err (%p4718_p13)  }

</bundles_post_ra>
